<compile_context>
chip_gen: v6e
topology: v6e:2x2x1
jax: 0.10.0
libtpu: 0.0.40
codegen_flags: <defaults>
</compile_context>

<pallas_src>
import functools

import numpy as np

import jax
import jax.numpy as jnp
from jax.experimental import pallas as pl
from jax.experimental.pallas import tpu as pltpu

MATMUL_DTYPE = jnp.bfloat16     # matmul operand dtype (set jnp.float32 for exact math)


def _round_up(n, m):
    return -(-n // m) * m


# ----------------------------------------------------------------------------
# Fused kernel: conv stack (7->5->3->1) + merged MLP head + sigmoid
# Everything is a lane-dense 2-D GEMM on values; no scratch, no concat,
# no sub-8/128 slices.
# ----------------------------------------------------------------------------
def _fused_kernel(x_ref, w1_ref, b1_ref, w2_ref, b2_ref, w3_ref, b3_ref,
                  rr_ref, wa_ref, wb_ref, bh_ref, wfr_ref, bfr_ref,
                  wout_ref, bout_ref, out_ref):
    f32 = jnp.float32
    cdt = w1_ref.dtype

    def gemm_bias_relu(x, w_ref, b_ref):
        y = jnp.dot(x, w_ref[...], preferred_element_type=f32) + b_ref[...]
        return jnp.maximum(y, 0.0)

    # --- conv stack: one GEMM per conv (2-D Toeplitz weights), f32 epilogue
    a1 = gemm_bias_relu(x_ref[...], w1_ref, b1_ref)            # 7x7 -> 5x5
    a2 = gemm_bias_relu(a1.astype(cdt), w2_ref, b2_ref)        # 5x5 -> 3x3
    spat = gemm_bias_relu(a2.astype(cdt), w3_ref, b3_ref)      # 3x3 -> 1x1

    # --- merged compare_reid + vis_fuse as a split-K GEMM (no lane concat)
    hid = (jnp.dot(rr_ref[...], wa_ref[...], preferred_element_type=f32)
           + jnp.dot(spat.astype(cdt), wb_ref[...], preferred_element_type=f32)
           + bh_ref[...])
    hid = jnp.maximum(hid, 0.0)            # == [compared_reid | vis_feature]

    # --- fuse_reid_roi (output pre-padded to 128 lanes at prepare time)
    fused = jnp.maximum(
        jnp.dot(hid.astype(cdt), wfr_ref[...], preferred_element_type=f32)
        + bfr_ref[...], 0.0)                                    # (tb, FRP)

    # --- vis_out (out dim 1) as a lane reduction instead of a 1-wide matmul
    logit = jnp.sum(fused * wout_ref[...], axis=1, keepdims=True) + bout_ref[...]
    sig = jax.nn.sigmoid(logit)

    # One lane-dense output slab: [ fused (FRP lanes) | sigmoid (128 lanes) ].
    frp = wfr_ref.shape[1]
    out_ref[:, :frp] = fused
    out_ref[:, frp:] = jnp.broadcast_to(
        sig, (out_ref.shape[0], out_ref.shape[1] - frp))


# ----------------------------------------------------------------------------
# Forward wrapper (single pallas_call, batch-tiled parallel grid)
# ----------------------------------------------------------------------------
def vis_simple_reid_forward(prep, early_reid, curr_reid, roi_pool_output,
                            representation_feature, output_feature=False,
                            vis_repr_dim=None):
    cdt = prep["w1"].dtype
    b = early_reid.shape[0]
    pool = roi_pool_output.shape[2]
    cin = roi_pool_output.shape[1]
    assert pool == 7 and roi_pool_output.shape[3] == 7, \
        "module needs pool_size=7 (three valid 3x3 convs -> 1x1)"

    k1 = prep["w1"].shape[0]          # padded conv1 K  (H*W*Cin -> mult of 128)
    ka = prep["wa"].shape[0]          # padded rr width
    frp = prep["wfr"].shape[1]        # padded fused width (mult of 128)
    out_width = frp + 128

    # Batch tiling: rows padded to the bf16 sublane packing (16) / f32 (8);
    # large batches get a parallel grid axis (uses both TensorCores on v7x).
    row_mult = 16 if cdt == jnp.bfloat16 else 8
    tb = min(256, _round_up(b, row_mult))
    bp = _round_up(b, tb)
    grid = (bp // tb,)

    # NCHW -> NHWC -> (B, H*W*Cin); rows zero-padded to bp, lanes to K1.
    x = jnp.transpose(roi_pool_output, (0, 2, 3, 1)).reshape(b, pool * pool * cin)
    x = jnp.pad(x, ((0, bp - b), (0, k1 - x.shape[1]))).astype(cdt)
    rr = jnp.concatenate([early_reid, curr_reid, representation_feature], axis=1)
    rr = jnp.pad(rr, ((0, bp - b), (0, ka - rr.shape[1]))).astype(cdt)

    kernel_inputs = (x, prep["w1"], prep["b1"], prep["w2"], prep["b2"],
                     prep["w3"], prep["b3"], rr, prep["wa"], prep["wb"],
                     prep["bh"], prep["wfr"], prep["bfr"], prep["wout"],
                     prep["bout"])

    def tiled(a):       # batch-tiled activations / output
        return pl.BlockSpec((tb, a.shape[1]), lambda i: (i, 0))

    def whole(a):       # weights / biases: full array, constant index map
        return pl.BlockSpec(a.shape, lambda i: (0, 0))

    in_specs = [tiled(x),
                whole(prep["w1"]), whole(prep["b1"]),
                whole(prep["w2"]), whole(prep["b2"]),
                whole(prep["w3"]), whole(prep["b3"]),
                tiled(rr),
                whole(prep["wa"]), whole(prep["wb"]), whole(prep["bh"]),
                whole(prep["wfr"]), whole(prep["bfr"]),
                whole(prep["wout"]), whole(prep["bout"])]

    # Advisory cost estimate so XLA schedules surrounding ops sensibly.
    flops = 0
    for w in (prep["w1"], prep["w2"], prep["w3"], prep["wa"], prep["wb"],
              prep["wfr"]):
        flops += 2 * bp * w.shape[0] * w.shape[1]
    flops += 2 * bp * frp
    bytes_accessed = sum(int(a.size) * a.dtype.itemsize for a in kernel_inputs)
    bytes_accessed += bp * out_width * 4

    out_slab = pl.pallas_call(
        _fused_kernel,
        grid=grid,
        out_shape=jax.ShapeDtypeStruct((bp, out_width), jnp.float32),
        in_specs=in_specs,
        out_specs=pl.BlockSpec((tb, out_width), lambda i: (i, 0)),
        compiler_params=pltpu.CompilerParams(
            dimension_semantics=("parallel",)),
        cost_estimate=pl.CostEstimate(flops=int(flops),
                                      transcendentals=int(bp),
                                      bytes_accessed=int(bytes_accessed)),
    )(*kernel_inputs)

    vis_output = out_slab[:b, frp]          # any lane of the sigmoid block
    if output_feature:
        if vis_repr_dim is None:
            raise ValueError("output_feature=True requires vis_repr_dim")
        return vis_output, out_slab[:b, :vis_repr_dim]
    return vis_output


# ----------------------------------------------------------------------------
# One-time host-side weight packing into the kernel layout
# ----------------------------------------------------------------------------
def prepare_params(params, pool_size=7, compute_dtype=MATMUL_DTYPE):
    # TODO(synk): at the module's default sizes (roi_output_dim=256) a dense
    # 2-D Toeplitz conv1 weight would be ~320 MB; there a per-kh Toeplitz +
    # pltpu.roll accumulation variant is needed instead. At the sizes used
    # here the single-GEMM-per-conv form is the clear win (per perf review).
    cin = params["w_conv1"].shape[2]
    c1 = params["w_conv1"].shape[3]
    c2 = params["w_conv2"].shape[3]
    repr_dim = params["w_conv3"].shape[3]
    reid2 = params["w_cmp"].shape[0]
    vis_repr = params["w_fr"].shape[1]

    h0 = pool_size
    h1, h2 = h0 - 2, h0 - 4
    assert h0 - 6 == 1, "pool_size must be 7"

    k1 = _round_up(h0 * h0 * cin, 128)
    n1 = _round_up(h1 * h1 * c1, 128)
    n2 = _round_up(h2 * h2 * c2, 128)
    n3 = _round_up(repr_dim, 128)
    nh = _round_up(reid2 + repr_dim, 128)
    ka = nh
    frp = _round_up(vis_repr, 128)

    def toeplitz2d(w_hwio, hin, k_pad, n_pad):
        # Full (kh,kw) Toeplitz: valid 3x3 conv over an (hin,hin,ci) feature
        # map with lanes (ih*hin+iw)*ci + c becomes ONE GEMM against this.
        kh_n, kw_n, ci, co = w_hwio.shape
        ho = hin - kh_n + 1
        w_np = np.asarray(w_hwio, np.float32)
        m = np.zeros((k_pad, n_pad), np.float32)
        for oh in range(ho):
            for ow in range(ho):
                c0 = (oh * ho + ow) * co
                for kh in range(kh_n):
                    for kw in range(kw_n):
                        r0 = ((oh + kh) * hin + (ow + kw)) * ci
                        m[r0:r0 + ci, c0:c0 + co] = w_np[kh, kw]
        return jnp.asarray(m, compute_dtype)

    def tiled_bias(b_row, reps, n_pad):
        v = np.tile(np.asarray(b_row, np.float32).reshape(1, -1), (1, reps))
        out = np.zeros((1, n_pad), np.float32)
        out[:, :v.shape[1]] = v
        return jnp.asarray(out)

    # compare_reid + vis_fuse merged into one output slab [cmp | vis_feature],
    # split along K so the kernel needs no lane concat:
    #   hid = rr @ Wa + spat @ Wb + bh,  rr = [early|curr|repr_feat].
    w_cmp = np.asarray(params["w_cmp"], np.float32)
    w_fuse = np.asarray(params["w_fuse"], np.float32)
    wa = np.zeros((ka, nh), np.float32)
    wa[:reid2, :reid2] = w_cmp
    wa[reid2:reid2 + repr_dim, reid2:reid2 + repr_dim] = w_fuse[:repr_dim]
    wb = np.zeros((n3, nh), np.float32)
    wb[:repr_dim, reid2:reid2 + repr_dim] = w_fuse[repr_dim:]
    bh = np.zeros((1, nh), np.float32)
    bh[0, :reid2] = np.asarray(params["b_cmp"], np.float32).ravel()
    bh[0, reid2:reid2 + repr_dim] = np.asarray(params["b_fuse"], np.float32).ravel()

    # fuse_reid_roi padded to 128 output lanes so 'fused' is born lane-dense;
    # vis_out row padded the same way (zero padding lanes keep the reduce exact).
    wfr = np.zeros((nh, frp), np.float32)
    wfr[:reid2 + repr_dim, :vis_repr] = np.asarray(params["w_fr"], np.float32)
    bfr = np.zeros((1, frp), np.float32)
    bfr[0, :vis_repr] = np.asarray(params["b_fr"], np.float32).ravel()
    wout = np.zeros((1, frp), np.float32)
    wout[0, :vis_repr] = np.asarray(params["w_out"], np.float32).ravel()

    return {
        "w1": toeplitz2d(params["w_conv1"], h0, k1, n1),
        "b1": tiled_bias(params["b_conv1"], h1 * h1, n1),
        "w2": toeplitz2d(params["w_conv2"], h1, n1, n2),
        "b2": tiled_bias(params["b_conv2"], h2 * h2, n2),
        "w3": toeplitz2d(params["w_conv3"], h2, n2, n3),
        "b3": tiled_bias(params["b_conv3"], 1, n3),
        "wa": jnp.asarray(wa, compute_dtype),
        "wb": jnp.asarray(wb, compute_dtype),
        "bh": jnp.asarray(bh),
        "wfr": jnp.asarray(wfr, compute_dtype),
        "bfr": jnp.asarray(bfr),
        "wout": jnp.asarray(wout),
        "bout": jnp.asarray(params["b_out"], jnp.float32).reshape(1, 1),
    }


# ----------------------------------------------------------------------------
# Deterministic parameter init (synthetic; shapes follow the module __init__)
# ----------------------------------------------------------------------------
def init_params(key, reid_dim, roi_output_dim, representation_dim):
    vis_repr_dim = representation_dim // 2
    ks = jax.random.split(key, 14)

    def w(k, shape):
        return (0.05 * jax.random.normal(k, shape)).astype(jnp.float32)

    def b(k, n):
        return (0.01 * jax.random.normal(k, (1, n))).astype(jnp.float32)

    return {
        "w_cmp": w(ks[0], (2 * reid_dim, 2 * reid_dim)),
        "b_cmp": b(ks[1], 2 * reid_dim),
        "w_conv1": w(ks[2], (3, 3, roi_output_dim, 2 * roi_output_dim)),
        "b_conv1": b(ks[3], 2 * roi_output_dim),
        "w_conv2": w(ks[4], (3, 3, 2 * roi_output_dim, 2 * roi_output_dim)),
        "b_conv2": b(ks[5], 2 * roi_output_dim),
        "w_conv3": w(ks[6], (3, 3, 2 * roi_output_dim, representation_dim)),
        "b_conv3": b(ks[7], representation_dim),
        "w_fuse": w(ks[8], (2 * representation_dim, representation_dim)),
        "b_fuse": b(ks[9], representation_dim),
        "w_fr": w(ks[10], (2 * reid_dim + representation_dim, vis_repr_dim)),
        "b_fr": b(ks[11], vis_repr_dim),
        "w_out": w(ks[12], (vis_repr_dim, 1)),
        "b_out": b(ks[13], 1),
    }


# ----------------------------------------------------------------------------
# Pure-JAX reference (f32) for a loose correctness check
# ----------------------------------------------------------------------------
def _reference_forward(params, early_reid, curr_reid, roi_pool_output,
                       representation_feature):
    x = jnp.transpose(roi_pool_output, (0, 2, 3, 1)).astype(jnp.float32)

    def conv(x, w, b):
        y = jax.lax.conv_general_dilated(
            x, w, window_strides=(1, 1), padding="VALID",
            dimension_numbers=("NHWC", "HWIO", "NHWC"))
        return jnp.maximum(y + b.reshape(1, 1, 1, -1), 0.0)

    x = conv(x, params["w_conv1"], params["b_conv1"])
    x = conv(x, params["w_conv2"], params["b_conv2"])
    x = conv(x, params["w_conv3"], params["b_conv3"])
    spat = x.reshape(x.shape[0], -1)
    cmp_feat = jnp.maximum(
        jnp.concatenate([early_reid, curr_reid], 1) @ params["w_cmp"]
        + params["b_cmp"], 0.0)
    vis_feat = jnp.maximum(
        jnp.concatenate([representation_feature, spat], 1) @ params["w_fuse"]
        + params["b_fuse"], 0.0)
    fused = jnp.maximum(
        jnp.concatenate([cmp_feat, vis_feat], 1) @ params["w_fr"]
        + params["b_fr"], 0.0)
    logit = fused @ params["w_out"] + params["b_out"]
    return jax.nn.sigmoid(logit)[:, 0], fused


if __name__ == "__main__":
    B = 8
    reid_dim = 32
    roi_output_dim = 16
    pool_size = 7            # must be 7: three valid 3x3 convs -> 1x1 spatial
    representation_dim = 64

    root = jax.random.PRNGKey(0)
    kp, kk1, kk2, kk3, kk4 = jax.random.split(root, 5)
    params = init_params(kp, reid_dim, roi_output_dim, representation_dim)
    prep = prepare_params(params, pool_size=pool_size)

    early_reid = jax.random.normal(kk1, (B, reid_dim), jnp.float32)
    curr_reid = jax.random.normal(kk2, (B, reid_dim), jnp.float32)
    roi_pool_output = jax.random.normal(
        kk3, (B, roi_output_dim, pool_size, pool_size), jnp.float32)  # NCHW
    representation_feature = jax.random.normal(
        kk4, (B, representation_dim), jnp.float32)

    fwd = jax.jit(functools.partial(vis_simple_reid_forward,
                                    output_feature=False))
    vis_output = fwd(prep, early_reid, curr_reid, roi_pool_output,
                     representation_feature)
    jax.block_until_ready(vis_output)
    assert vis_output.shape == (B,), vis_output.shape
    assert bool(jnp.all(jnp.isfinite(vis_output)))

    fwd_feat = jax.jit(functools.partial(
        vis_simple_reid_forward, output_feature=True,
        vis_repr_dim=representation_dim // 2))
    vis_output2, feat = fwd_feat(prep, early_reid, curr_reid, roi_pool_output,
                                 representation_feature)
    jax.block_until_ready(feat)
    assert feat.shape == (B, representation_dim // 2), feat.shape

    # Loose tolerance: kernel uses bf16 matmul operands (f32 accumulate).
    ref_out, ref_feat = _reference_forward(
        params, early_reid, curr_reid, roi_pool_output, representation_feature)
    assert bool(jnp.max(jnp.abs(vis_output - ref_out)) < 5e-2)
    assert bool(jnp.max(jnp.abs(feat - ref_feat)) < 1e-1)

    print("KERNEL_OK")
</pallas_src>

<mosaic_0001>
module attributes {stable_mosaic.version = 11 : i64} {
  func.func @_fused_kernel(%arg0: i32, %arg1: memref<16x896xbf16, #tpu.memory_space<vmem>>, %arg2: memref<896x896xbf16, #tpu.memory_space<vmem>>, %arg3: memref<1x896xf32, #tpu.memory_space<vmem>>, %arg4: memref<896x384xbf16, #tpu.memory_space<vmem>>, %arg5: memref<1x384xf32, #tpu.memory_space<vmem>>, %arg6: memref<384x128xbf16, #tpu.memory_space<vmem>>, %arg7: memref<1x128xf32, #tpu.memory_space<vmem>>, %arg8: memref<16x128xbf16, #tpu.memory_space<vmem>>, %arg9: memref<128x128xbf16, #tpu.memory_space<vmem>>, %arg10: memref<128x128xbf16, #tpu.memory_space<vmem>>, %arg11: memref<1x128xf32, #tpu.memory_space<vmem>>, %arg12: memref<128x128xbf16, #tpu.memory_space<vmem>>, %arg13: memref<1x128xf32, #tpu.memory_space<vmem>>, %arg14: memref<1x128xf32, #tpu.memory_space<vmem>>, %arg15: memref<1x1xf32, #tpu.memory_space<vmem>>, %arg16: memref<16x256xf32, #tpu.memory_space<vmem>>) attributes {dimension_semantics = [#tpu.dimension_semantics<parallel>], iteration_bounds = array<i64: 1>, scalar_prefetch = 0 : i64, scratch_operands = 0 : i64, tpu.core_type = #tpu.core_type<tc>, window_params = [{transform_indices = @transform_0, window_bounds = array<i64: 16, 896>}, {pipeline_mode = #tpu.pipeline_mode<synchronous>, transform_indices = @transform_1, window_bounds = array<i64: 896, 896>}, {pipeline_mode = #tpu.pipeline_mode<synchronous>, transform_indices = @transform_2, window_bounds = array<i64: 1, 896>}, {pipeline_mode = #tpu.pipeline_mode<synchronous>, transform_indices = @transform_3, window_bounds = array<i64: 896, 384>}, {pipeline_mode = #tpu.pipeline_mode<synchronous>, transform_indices = @transform_4, window_bounds = array<i64: 1, 384>}, {pipeline_mode = #tpu.pipeline_mode<synchronous>, transform_indices = @transform_5, window_bounds = array<i64: 384, 128>}, {pipeline_mode = #tpu.pipeline_mode<synchronous>, transform_indices = @transform_6, window_bounds = array<i64: 1, 128>}, {transform_indices = @transform_7, window_bounds = array<i64: 16, 128>}, {pipeline_mode = #tpu.pipeline_mode<synchronous>, transform_indices = @transform_8, window_bounds = array<i64: 128, 128>}, {pipeline_mode = #tpu.pipeline_mode<synchronous>, transform_indices = @transform_9, window_bounds = array<i64: 128, 128>}, {pipeline_mode = #tpu.pipeline_mode<synchronous>, transform_indices = @transform_10, window_bounds = array<i64: 1, 128>}, {pipeline_mode = #tpu.pipeline_mode<synchronous>, transform_indices = @transform_11, window_bounds = array<i64: 128, 128>}, {pipeline_mode = #tpu.pipeline_mode<synchronous>, transform_indices = @transform_12, window_bounds = array<i64: 1, 128>}, {pipeline_mode = #tpu.pipeline_mode<synchronous>, transform_indices = @transform_13, window_bounds = array<i64: 1, 128>}, {pipeline_mode = #tpu.pipeline_mode<synchronous>, transform_indices = @transform_14, window_bounds = array<i64: 1, 1>}, {transform_indices = @transform_15, window_bounds = array<i64: 16, 256>}]} {
    %c0 = arith.constant 0 : index
    %c0_0 = arith.constant 0 : index
    %0 = vector.load %arg1[%c0, %c0_0] : memref<16x896xbf16, #tpu.memory_space<vmem>>, vector<16x896xbf16>
    %c0_1 = arith.constant 0 : index
    %c0_2 = arith.constant 0 : index
    %1 = vector.load %arg2[%c0_1, %c0_2] : memref<896x896xbf16, #tpu.memory_space<vmem>>, vector<896x896xbf16>
    %cst = arith.constant dense<0.000000e+00> : vector<16x896xf32>
    %2 = tpu.matmul %0, %1, %cst {dimension_numbers = #tpu.dot_dimension_numbers<[1], [0], [0], [1], [0, 0, 1, 1], [], []>} : vector<16x896xbf16>, vector<896x896xbf16>, vector<16x896xf32> -> vector<16x896xf32>
    %c0_3 = arith.constant 0 : index
    %c0_4 = arith.constant 0 : index
    %3 = vector.load %arg3[%c0_3, %c0_4] : memref<1x896xf32, #tpu.memory_space<vmem>>, vector<1x896xf32>
    %4 = vector.broadcast %3 : vector<1x896xf32> to vector<16x896xf32>
    %5 = arith.addf %2, %4 : vector<16x896xf32>
    %cst_5 = arith.constant 0.000000e+00 : f32
    %6 = vector.broadcast %cst_5 : f32 to vector<16x896xf32>
    %7 = arith.maximumf %5, %6 : vector<16x896xf32>
    %8 = arith.truncf %7 : vector<16x896xf32> to vector<16x896xbf16>
    %c0_6 = arith.constant 0 : index
    %c0_7 = arith.constant 0 : index
    %9 = vector.load %arg4[%c0_6, %c0_7] : memref<896x384xbf16, #tpu.memory_space<vmem>>, vector<896x384xbf16>
    %cst_8 = arith.constant dense<0.000000e+00> : vector<16x384xf32>
    %10 = tpu.matmul %8, %9, %cst_8 {dimension_numbers = #tpu.dot_dimension_numbers<[1], [0], [0], [1], [0, 0, 1, 1], [], []>} : vector<16x896xbf16>, vector<896x384xbf16>, vector<16x384xf32> -> vector<16x384xf32>
    %c0_9 = arith.constant 0 : index
    %c0_10 = arith.constant 0 : index
    %11 = vector.load %arg5[%c0_9, %c0_10] : memref<1x384xf32, #tpu.memory_space<vmem>>, vector<1x384xf32>
    %12 = vector.broadcast %11 : vector<1x384xf32> to vector<16x384xf32>
    %13 = arith.addf %10, %12 : vector<16x384xf32>
    %cst_11 = arith.constant 0.000000e+00 : f32
    %14 = vector.broadcast %cst_11 : f32 to vector<16x384xf32>
    %15 = arith.maximumf %13, %14 : vector<16x384xf32>
    %16 = arith.truncf %15 : vector<16x384xf32> to vector<16x384xbf16>
    %c0_12 = arith.constant 0 : index
    %c0_13 = arith.constant 0 : index
    %17 = vector.load %arg6[%c0_12, %c0_13] : memref<384x128xbf16, #tpu.memory_space<vmem>>, vector<384x128xbf16>
    %cst_14 = arith.constant dense<0.000000e+00> : vector<16x128xf32>
    %18 = tpu.matmul %16, %17, %cst_14 {dimension_numbers = #tpu.dot_dimension_numbers<[1], [0], [0], [1], [0, 0, 1, 1], [], []>} : vector<16x384xbf16>, vector<384x128xbf16>, vector<16x128xf32> -> vector<16x128xf32>
    %c0_15 = arith.constant 0 : index
    %c0_16 = arith.constant 0 : index
    %19 = vector.load %arg7[%c0_15, %c0_16] : memref<1x128xf32, #tpu.memory_space<vmem>>, vector<1x128xf32>
    %20 = vector.broadcast %19 : vector<1x128xf32> to vector<16x128xf32>
    %21 = arith.addf %18, %20 : vector<16x128xf32>
    %cst_17 = arith.constant 0.000000e+00 : f32
    %22 = vector.broadcast %cst_17 : f32 to vector<16x128xf32>
    %23 = arith.maximumf %21, %22 : vector<16x128xf32>
    %c0_18 = arith.constant 0 : index
    %c0_19 = arith.constant 0 : index
    %24 = vector.load %arg8[%c0_18, %c0_19] : memref<16x128xbf16, #tpu.memory_space<vmem>>, vector<16x128xbf16>
    %c0_20 = arith.constant 0 : index
    %c0_21 = arith.constant 0 : index
    %25 = vector.load %arg9[%c0_20, %c0_21] : memref<128x128xbf16, #tpu.memory_space<vmem>>, vector<128x128xbf16>
    %cst_22 = arith.constant dense<0.000000e+00> : vector<16x128xf32>
    %26 = tpu.matmul %24, %25, %cst_22 {dimension_numbers = #tpu.dot_dimension_numbers<[1], [0], [0], [1], [0, 0, 1, 1], [], []>} : vector<16x128xbf16>, vector<128x128xbf16>, vector<16x128xf32> -> vector<16x128xf32>
    %27 = arith.truncf %23 : vector<16x128xf32> to vector<16x128xbf16>
    %c0_23 = arith.constant 0 : index
    %c0_24 = arith.constant 0 : index
    %28 = vector.load %arg10[%c0_23, %c0_24] : memref<128x128xbf16, #tpu.memory_space<vmem>>, vector<128x128xbf16>
    %cst_25 = arith.constant dense<0.000000e+00> : vector<16x128xf32>
    %29 = tpu.matmul %27, %28, %cst_25 {dimension_numbers = #tpu.dot_dimension_numbers<[1], [0], [0], [1], [0, 0, 1, 1], [], []>} : vector<16x128xbf16>, vector<128x128xbf16>, vector<16x128xf32> -> vector<16x128xf32>
    %30 = arith.addf %26, %29 : vector<16x128xf32>
    %c0_26 = arith.constant 0 : index
    %c0_27 = arith.constant 0 : index
    %31 = vector.load %arg11[%c0_26, %c0_27] : memref<1x128xf32, #tpu.memory_space<vmem>>, vector<1x128xf32>
    %32 = vector.broadcast %31 : vector<1x128xf32> to vector<16x128xf32>
    %33 = arith.addf %30, %32 : vector<16x128xf32>
    %cst_28 = arith.constant 0.000000e+00 : f32
    %34 = vector.broadcast %cst_28 : f32 to vector<16x128xf32>
    %35 = arith.maximumf %33, %34 : vector<16x128xf32>
    %36 = arith.truncf %35 : vector<16x128xf32> to vector<16x128xbf16>
    %c0_29 = arith.constant 0 : index
    %c0_30 = arith.constant 0 : index
    %37 = vector.load %arg12[%c0_29, %c0_30] : memref<128x128xbf16, #tpu.memory_space<vmem>>, vector<128x128xbf16>
    %cst_31 = arith.constant dense<0.000000e+00> : vector<16x128xf32>
    %38 = tpu.matmul %36, %37, %cst_31 {dimension_numbers = #tpu.dot_dimension_numbers<[1], [0], [0], [1], [0, 0, 1, 1], [], []>} : vector<16x128xbf16>, vector<128x128xbf16>, vector<16x128xf32> -> vector<16x128xf32>
    %c0_32 = arith.constant 0 : index
    %c0_33 = arith.constant 0 : index
    %39 = vector.load %arg13[%c0_32, %c0_33] : memref<1x128xf32, #tpu.memory_space<vmem>>, vector<1x128xf32>
    %40 = vector.broadcast %39 : vector<1x128xf32> to vector<16x128xf32>
    %41 = arith.addf %38, %40 : vector<16x128xf32>
    %cst_34 = arith.constant 0.000000e+00 : f32
    %42 = vector.broadcast %cst_34 : f32 to vector<16x128xf32>
    %43 = arith.maximumf %41, %42 : vector<16x128xf32>
    %c0_35 = arith.constant 0 : index
    %c0_36 = arith.constant 0 : index
    %44 = vector.load %arg14[%c0_35, %c0_36] : memref<1x128xf32, #tpu.memory_space<vmem>>, vector<1x128xf32>
    %45 = vector.broadcast %44 : vector<1x128xf32> to vector<16x128xf32>
    %46 = arith.mulf %43, %45 : vector<16x128xf32>
    %cst_37 = arith.constant dense<0.000000e+00> : vector<16xf32>
    %47 = vector.multi_reduction <add>, %46, %cst_37 [1] : vector<16x128xf32> to vector<16xf32>
    %48 = vector.shape_cast %47 : vector<16xf32> to vector<16x1xf32>
    %c0_38 = arith.constant 0 : index
    %c0_39 = arith.constant 0 : index
    %49 = vector.load %arg15[%c0_38, %c0_39] : memref<1x1xf32, #tpu.memory_space<vmem>>, vector<1x1xf32>
    %50 = vector.broadcast %49 : vector<1x1xf32> to vector<16x1xf32>
    %51 = arith.addf %48, %50 : vector<16x1xf32>
    %52 = arith.negf %51 : vector<16x1xf32>
    %53 = math.exp %52 : vector<16x1xf32>
    %cst_40 = arith.constant 1.000000e+00 : f32
    %54 = vector.broadcast %cst_40 : f32 to vector<16x1xf32>
    %55 = arith.addf %54, %53 : vector<16x1xf32>
    %56 = arith.divf %54, %55 : vector<16x1xf32>
    %c0_41 = arith.constant 0 : index
    %c0_42 = arith.constant 0 : index
    %57 = vector.load %arg16[%c0_41, %c0_42] : memref<16x256xf32, #tpu.memory_space<vmem>>, vector<16x128xf32>
    tpu.vector_store %arg16[%c0_41, %c0_42], %43 {strides = array<i32>} : memref<16x256xf32, #tpu.memory_space<vmem>>, vector<16x128xf32>,
    %58 = vector.shape_cast %56 : vector<16x1xf32> to vector<16x1xf32>
    %59 = vector.broadcast %58 : vector<16x1xf32> to vector<16x128xf32>
    %c0_43 = arith.constant 0 : index
    %c128 = arith.constant 128 : index
    %60 = vector.load %arg16[%c0_43, %c128] : memref<16x256xf32, #tpu.memory_space<vmem>>, vector<16x128xf32>
    tpu.vector_store %arg16[%c0_43, %c128], %59 {strides = array<i32>} : memref<16x256xf32, #tpu.memory_space<vmem>>, vector<16x128xf32>,
    return
  }
  func.func @transform_0(%arg0: i32) -> (i32, i32) {
    %c0_i32 = arith.constant 0 : i32
    %c0_i32_0 = arith.constant 0 : i32
    return %arg0, %c0_i32 : i32, i32
  }
  func.func @transform_1(%arg0: i32) -> (i32, i32) {
    %c0_i32 = arith.constant 0 : i32
    %c0_i32_0 = arith.constant 0 : i32
    %c0_i32_1 = arith.constant 0 : i32
    return %c0_i32, %c0_i32_0 : i32, i32
  }
  func.func @transform_2(%arg0: i32) -> (i32, i32) {
    %c0_i32 = arith.constant 0 : i32
    %c0_i32_0 = arith.constant 0 : i32
    %c0_i32_1 = arith.constant 0 : i32
    return %c0_i32, %c0_i32_0 : i32, i32
  }
  func.func @transform_3(%arg0: i32) -> (i32, i32) {
    %c0_i32 = arith.constant 0 : i32
    %c0_i32_0 = arith.constant 0 : i32
    %c0_i32_1 = arith.constant 0 : i32
    return %c0_i32, %c0_i32_0 : i32, i32
  }
  func.func @transform_4(%arg0: i32) -> (i32, i32) {
    %c0_i32 = arith.constant 0 : i32
    %c0_i32_0 = arith.constant 0 : i32
    %c0_i32_1 = arith.constant 0 : i32
    return %c0_i32, %c0_i32_0 : i32, i32
  }
  func.func @transform_5(%arg0: i32) -> (i32, i32) {
    %c0_i32 = arith.constant 0 : i32
    %c0_i32_0 = arith.constant 0 : i32
    %c0_i32_1 = arith.constant 0 : i32
    return %c0_i32, %c0_i32_0 : i32, i32
  }
  func.func @transform_6(%arg0: i32) -> (i32, i32) {
    %c0_i32 = arith.constant 0 : i32
    %c0_i32_0 = arith.constant 0 : i32
    %c0_i32_1 = arith.constant 0 : i32
    return %c0_i32, %c0_i32_0 : i32, i32
  }
  func.func @transform_7(%arg0: i32) -> (i32, i32) {
    %c0_i32 = arith.constant 0 : i32
    %c0_i32_0 = arith.constant 0 : i32
    return %arg0, %c0_i32 : i32, i32
  }
  func.func @transform_8(%arg0: i32) -> (i32, i32) {
    %c0_i32 = arith.constant 0 : i32
    %c0_i32_0 = arith.constant 0 : i32
    %c0_i32_1 = arith.constant 0 : i32
    return %c0_i32, %c0_i32_0 : i32, i32
  }
  func.func @transform_9(%arg0: i32) -> (i32, i32) {
    %c0_i32 = arith.constant 0 : i32
    %c0_i32_0 = arith.constant 0 : i32
    %c0_i32_1 = arith.constant 0 : i32
    return %c0_i32, %c0_i32_0 : i32, i32
  }
  func.func @transform_10(%arg0: i32) -> (i32, i32) {
    %c0_i32 = arith.constant 0 : i32
    %c0_i32_0 = arith.constant 0 : i32
    %c0_i32_1 = arith.constant 0 : i32
    return %c0_i32, %c0_i32_0 : i32, i32
  }
  func.func @transform_11(%arg0: i32) -> (i32, i32) {
    %c0_i32 = arith.constant 0 : i32
    %c0_i32_0 = arith.constant 0 : i32
    %c0_i32_1 = arith.constant 0 : i32
    return %c0_i32, %c0_i32_0 : i32, i32
  }
  func.func @transform_12(%arg0: i32) -> (i32, i32) {
    %c0_i32 = arith.constant 0 : i32
    %c0_i32_0 = arith.constant 0 : i32
    %c0_i32_1 = arith.constant 0 : i32
    return %c0_i32, %c0_i32_0 : i32, i32
  }
  func.func @transform_13(%arg0: i32) -> (i32, i32) {
    %c0_i32 = arith.constant 0 : i32
    %c0_i32_0 = arith.constant 0 : i32
    %c0_i32_1 = arith.constant 0 : i32
    return %c0_i32, %c0_i32_0 : i32, i32
  }
  func.func @transform_14(%arg0: i32) -> (i32, i32) {
    %c0_i32 = arith.constant 0 : i32
    %c0_i32_0 = arith.constant 0 : i32
    %c0_i32_1 = arith.constant 0 : i32
    return %c0_i32, %c0_i32_0 : i32, i32
  }
  func.func @transform_15(%arg0: i32) -> (i32, i32) {
    %c0_i32 = arith.constant 0 : i32
    %c0_i32_0 = arith.constant 0 : i32
    return %arg0, %c0_i32 : i32, i32
  }
}

</mosaic_0001>

<bundles_post_ra>
// kernel: vis_simple_reid_forward.1
= control target key start
LH: loop header
LB: loop body
LE: loop exit
PB: predicated region body
PF: predicated region fallthrough
CT: control target
= control target key end

     0   :  { %s8141_s0 = inlined_call_operand.vmem [shape: bf16[16,896], index: 0, kind: input, shape index: {}]   ;;  %s8142_s1 = inlined_call_operand.hbm [shape: bf16[896,896], index: 1, kind: input, shape index: {}]   ;;  %s8143_s2 = inlined_call_operand.hbm [shape: f32[1,896], index: 2, kind: input, shape index: {}]   ;;  %s8144_s3 = inlined_call_operand.hbm [shape: bf16[896,384], index: 3, kind: input, shape index: {}]   ;;  %s8145_s4 = inlined_call_operand.hbm [shape: f32[1,384], index: 4, kind: input, shape index: {}]   ;;  %s8146_s5 = inlined_call_operand.hbm [shape: bf16[384,128], index: 5, kind: input, shape index: {}]   ;;  %s8147_s6 = inlined_call_operand.hbm [shape: f32[1,128], index: 6, kind: input, shape index: {}]   ;;  %s8148_s7 = inlined_call_operand.vmem [shape: bf16[16,128], index: 7, kind: input, shape index: {}]   ;;  %s8149_s8 = inlined_call_operand.hbm [shape: bf16[128,128], index: 8, kind: input, shape index: {}]   ;;  %s8150_s9 = inlined_call_operand.hbm [shape: bf16[128,128], index: 9, kind: input, shape index: {}]   ;;  %s8151_s10 = inlined_call_operand.hbm [shape: f32[1,128], index: 10, kind: input, shape index: {}]   ;;  %s8152_s11 = inlined_call_operand.hbm [shape: bf16[128,128], index: 11, kind: input, shape index: {}]   ;;  %s8153_s12 = inlined_call_operand.hbm [shape: f32[1,128], index: 12, kind: input, shape index: {}]   ;;  %s8154_s13 = inlined_call_operand.hbm [shape: f32[1,128], index: 13, kind: input, shape index: {}]   ;;  %s8155_s14 = inlined_call_operand.<no memory space> [shape: f32[1,1], index: 14, kind: input, shape index: {}]   ;;  %s8156_s15 = inlined_call_operand.vmem [shape: f32[16,256], index: 15, kind: output, shape index: {}]  }
   0x1   :  { %v20_v0 = vstv %s8155_s14 }
   0x2   :  { %21 = vst [vmem:[#allocation2] sm:$0x1] %v20_v0 }
   0x3   :  { %22 = vsyncpa [#allocation4], 0 }
   0x4   :  { %23 = vsyncpa [#allocation6], 0 }
   0x5   :  { %24 = vsyncpa [#allocation9], 0 }
   0x6   :  { %25 = vsyncpa [#allocation12], 0 }
   0x7   :  { %26 = vsyncpa [#allocation15], 0 }
   0x8   :  { %27 = vsyncpa [#allocation18], 0 }
   0x9   :  { %28 = vsyncpa [#allocation21], 0  ;;  %s7707_s20 = smov [#allocation5]   ;;  %s7708_s22 = smov [#allocation8]  }
   0xa   :  { %s49_s21 = sshll.u32 %s7707_s20, 4  ;;  %s71_s23 = sshll.u32 %s7708_s22, 4  ;;  %s50_s21 = int_to_ptr.vmem [resolvable:$true] %s49_s21  ;;  %s72_s23 = int_to_ptr.vmem [resolvable:$true] %s71_s23 }
   0xb   :  { %s7461_s24 = scalar_lea.vmem %s50_s21, 112  ;;  %s7465_s25 = scalar_lea.vmem %s50_s21, 128 }
   0xc   :  { %p7462_p0 = scmp.ne.s32.totalorder %s50_s21, %s7461_s24  ;;  %p7466_p1 = scmp.lt.s32.totalorder %s50_s21, %s50_s21 }
   0xd   :  { %p7467_p2 = scmp.lt.s32.totalorder %s7465_s25, %s7461_s24 }
   0xf   :  { %p7468_p3 = por %p7467_p2, %p7466_p1 }
  0x11   :  { %p7469_p4 = pnand %p7468_p3, %p7462_p0 }
  0x13   :  { %7472 = shalt.err (!%p7469_p4)
}
  0x14   :  { %52 = dma.hbm_to_vmem [thread:$0]  %s8143_s2, 112, %s50_s21, [#allocation6]  }
  0x15   :  { %s7481_s27 = scalar_lea.vmem %s72_s23, 48  ;;  %s7485_s28 = scalar_lea.vmem %s72_s23, 64 }
  0x16   :  { %p7482_p5 = scmp.ne.s32.totalorder %s72_s23, %s7481_s27  ;;  %p7486_p6 = scmp.lt.s32.totalorder %s72_s23, %s72_s23 }
  0x17   :  { %p7487_p7 = scmp.lt.s32.totalorder %s7485_s28, %s7481_s27 }
  0x19   :  { %p7488_p8 = por %p7487_p7, %p7486_p6 }
  0x1b   :  { %p7489_p9 = pnand %p7488_p8, %p7482_p5 }
  0x1d   :  { %7492 = shalt.err (!%p7489_p9)
}
  0x1e   :  { %74 = dma.hbm_to_vmem [thread:$0]  %s8145_s4, 48, %s72_s23, [#allocation9]  }
  0x1f   :  { %s7709_s16 = smov [#allocation11]  }
  0x20   :  { %s93_s17 = sshll.u32 %s7709_s16, 4  ;;  %s94_s17 = int_to_ptr.vmem [resolvable:$true] %s93_s17 }
  0x21   :  { %s7501_s18 = scalar_lea.vmem %s94_s17, 16  ;;  %s7505_s19 = scalar_lea.vmem %s94_s17, 32 }
  0x22   :  { %p7502_p10 = scmp.ne.s32.totalorder %s94_s17, %s7501_s18  ;;  %p7506_p11 = scmp.lt.s32.totalorder %s94_s17, %s94_s17 }
  0x23   :  { %p7507_p12 = scmp.lt.s32.totalorder %s7505_s19, %s7501_s18 }
  0x25   :  { %p7508_p13 = por %p7507_p12, %p7506_p11 }
  0x27   :  { %p7509_p0 = pnand %p7508_p13, %p7502_p10 }
  0x29   :  { %7512 = shalt.err (!%p7509_p0)
}
  0x2a   :  { %96 = dma.hbm_to_vmem [thread:$0]  %s8147_s6, 16, %s94_s17, [#allocation12]  }
  0x2b   :  { %s7710_s21 = smov [#allocation14]   ;;  %s7711_s24 = smov [#allocation17]  }
  0x2c   :  { %s116_s22 = sshll.u32 %s7710_s21, 4  ;;  %s138_s4 = sshll.u32 %s7711_s24, 4  ;;  %s117_s22 = int_to_ptr.vmem [resolvable:$true] %s116_s22  ;;  %s139_s4 = int_to_ptr.vmem [resolvable:$true] %s138_s4 }
  0x2d   :  { %s7521_s23 = scalar_lea.vmem %s117_s22, 1024  ;;  %p7526_p2 = scmp.lt.s32.totalorder %s117_s22, %s117_s22 }
  0x2e   :  { %p7522_p1 = scmp.ne.s32.totalorder %s117_s22, %s7521_s23  ;;  %p7527_p3 = scmp.lt.s32.totalorder %s7521_s23, %s7521_s23 }
  0x30   :  { %p7528_p4 = por %p7527_p3, %p7526_p2 }
  0x32   :  { %p7529_p5 = pnand %p7528_p4, %p7522_p1 }
  0x34   :  { %7532 = shalt.err (!%p7529_p5)
}
  0x35   :  { %s7712_s25 = smov 64   ;;  %s7713_s14 = smov 4  }
  0x36   :  { %122 = dma.hbm_to_vmem [thread:$0]  %s8150_s9, 1024, %s117_s22, [#allocation15], %s7712_s25, %s7712_s25, %s7713_s14  }
  0x37   :  { %s7541_s6 = scalar_lea.vmem %s139_s4, 1024  ;;  %p7546_p7 = scmp.lt.s32.totalorder %s139_s4, %s139_s4 }
  0x38   :  { %p7542_p6 = scmp.ne.s32.totalorder %s139_s4, %s7541_s6  ;;  %p7547_p8 = scmp.lt.s32.totalorder %s7541_s6, %s7541_s6 }
  0x3a   :  { %p7548_p9 = por %p7547_p8, %p7546_p7 }
  0x3c   :  { %p7549_p10 = pnand %p7548_p9, %p7542_p6 }
  0x3e   :  { %7552 = shalt.err (!%p7549_p10)
}
  0x3f   :  { %144 = dma.hbm_to_vmem [thread:$0]  %s8152_s11, 1024, %s139_s4, [#allocation18], %s7712_s25, %s7712_s25, %s7713_s14  }
  0x40   :  { %s7714_s30 = smov [#allocation3]  }
  0x41   :  { %s36_s16 = sshll.u32 %s7714_s30, 4  ;;  %s37_s16 = int_to_ptr.vmem [resolvable:$true] %s36_s16 }
  0x42   :  { %s7561_s17 = scalar_lea.vmem %s37_s16, 50176  ;;  %p7566_p12 = scmp.lt.s32.totalorder %s37_s16, %s37_s16 }
  0x43   :  { %p7562_p11 = scmp.ne.s32.totalorder %s37_s16, %s7561_s17  ;;  %p7567_p13 = scmp.lt.s32.totalorder %s7561_s17, %s7561_s17 }
  0x45   :  { %p7568_p0 = por %p7567_p13, %p7566_p12 }
  0x47   :  { %p7569_p1 = pnand %p7568_p0, %p7562_p11 }
  0x49   :  { %7572 = shalt.err (!%p7569_p1)
}
  0x4a   :  { %s7715_s9 = smov 448   ;;  %s7716_s18 = smov 28  }
  0x4b   :  { %42 = dma.hbm_to_vmem [thread:$0]  %s8142_s1, 50176, %s37_s16, [#allocation4], %s7715_s9, %s7715_s9, %s7716_s18  }
  0x4c   :  { %s7717_s20 = smov [#allocation7]  }
  0x4d   :  { %s58_s21 = sshll.u32 %s7717_s20, 4  ;;  %s59_s21 = int_to_ptr.vmem [resolvable:$true] %s58_s21 }
  0x4e   :  { %s7581_s11 = scalar_lea.vmem %s59_s21, 21504  ;;  %p7586_p3 = scmp.lt.s32.totalorder %s59_s21, %s59_s21 }
  0x4f   :  { %p7582_p2 = scmp.ne.s32.totalorder %s59_s21, %s7581_s11  ;;  %p7587_p4 = scmp.lt.s32.totalorder %s7581_s11, %s7581_s11 }
  0x51   :  { %p7588_p5 = por %p7587_p4, %p7586_p3 }
  0x53   :  { %p7589_p6 = pnand %p7588_p5, %p7582_p2 }
  0x55   :  { %7592 = shalt.err (!%p7589_p6)
}
  0x56   :  { %s7718_s22 = smov 192   ;;  %s7719_s24 = smov 12  }
  0x57   :  { %64 = dma.hbm_to_vmem [thread:$0]  %s8144_s3, 21504, %s59_s21, [#allocation6], %s7718_s22, %s7718_s22, %s7719_s24  }
  0x58   :  { %s7720_s26 = smov [#allocation10]   ;;  %s7721_s1 = smov [#allocation13]  }
  0x59   :  { %s80_s27 = sshll.u32 %s7720_s26, 4  ;;  %s104_s6 = sshll.u32 %s7721_s1, 4  ;;  %s81_s27 = int_to_ptr.vmem [resolvable:$true] %s80_s27  ;;  %s105_s6 = int_to_ptr.vmem [resolvable:$true] %s104_s6 }
  0x5a   :  { %s7601_s28 = scalar_lea.vmem %s81_s27, 3072  ;;  %p7606_p8 = scmp.lt.s32.totalorder %s81_s27, %s81_s27 }
  0x5b   :  { %p7602_p7 = scmp.ne.s32.totalorder %s81_s27, %s7601_s28  ;;  %p7607_p9 = scmp.lt.s32.totalorder %s7601_s28, %s7601_s28 }
  0x5d   :  { %p7608_p10 = por %p7607_p9, %p7606_p8 }
  0x5f   :  { %p7609_p11 = pnand %p7608_p10, %p7602_p7 }
  0x61   :  { %7612 = shalt.err (!%p7609_p11)
}
  0x62   :  { %86 = dma.hbm_to_vmem [thread:$0]  %s8146_s5, 3072, %s81_s27, [#allocation9], %s7712_s25, %s7712_s25, %s7713_s14  }
  0x63   :  { %s7621_s3 = scalar_lea.vmem %s105_s6, 1024  ;;  %p7626_p13 = scmp.lt.s32.totalorder %s105_s6, %s105_s6 }
  0x64   :  { %p7622_p12 = scmp.ne.s32.totalorder %s105_s6, %s7621_s3  ;;  %p7627_p0 = scmp.lt.s32.totalorder %s7621_s3, %s7621_s3 }
  0x66   :  { %p7628_p1 = por %p7627_p0, %p7626_p13 }
  0x68   :  { %p7629_p2 = pnand %p7628_p1, %p7622_p12 }
  0x6a   :  { %7632 = shalt.err (!%p7629_p2)
}
  0x6b   :  { %110 = dma.hbm_to_vmem [thread:$0]  %s8149_s8, 1024, %s105_s6, [#allocation12], %s7712_s25, %s7712_s25, %s7713_s14  }
  0x6c   :  { %s7722_s9 = smov [#allocation16]   ;;  %s7723_s19 = smov [#allocation19]  }
  0x6d   :  { %s129_s18 = sshll.u32 %s7722_s9, 4  ;;  %s151_s5 = sshll.u32 %s7723_s19, 4  ;;  %s130_s18 = int_to_ptr.vmem [resolvable:$true] %s129_s18  ;;  %s152_s5 = int_to_ptr.vmem [resolvable:$true] %s151_s5 }
  0x6e   :  { %s7641_s2 = scalar_lea.vmem %s130_s18, 16  ;;  %s7645_s20 = scalar_lea.vmem %s130_s18, 32 }
  0x6f   :  { %p7642_p3 = scmp.ne.s32.totalorder %s130_s18, %s7641_s2  ;;  %p7646_p4 = scmp.lt.s32.totalorder %s130_s18, %s130_s18 }
  0x70   :  { %p7647_p5 = scmp.lt.s32.totalorder %s7645_s20, %s7641_s2 }
  0x72   :  { %p7648_p6 = por %p7647_p5, %p7646_p4 }
  0x74   :  { %p7649_p7 = pnand %p7648_p6, %p7642_p3 }
  0x76   :  { %7652 = shalt.err (!%p7649_p7)
}
  0x77   :  { %132 = dma.hbm_to_vmem [thread:$0]  %s8151_s10, 16, %s130_s18, [#allocation15]  }
  0x78   :  { %s7661_s22 = scalar_lea.vmem %s152_s5, 16  ;;  %s7665_s8 = scalar_lea.vmem %s152_s5, 32 }
  0x79   :  { %p7662_p8 = scmp.ne.s32.totalorder %s152_s5, %s7661_s22  ;;  %p7666_p9 = scmp.lt.s32.totalorder %s152_s5, %s152_s5 }
  0x7a   :  { %p7667_p10 = scmp.lt.s32.totalorder %s7665_s8, %s7661_s22 }
  0x7c   :  { %p7668_p11 = por %p7667_p10, %p7666_p9 }
  0x7e   :  { %p7669_p12 = pnand %p7668_p11, %p7662_p8 }
  0x80   :  { %7672 = shalt.err (!%p7669_p12)
}
  0x81   :  { %154 = dma.hbm_to_vmem [thread:$0]  %s8153_s12, 16, %s152_s5, [#allocation18]  }
  0x82   :  { %s7724_s24 = smov [#allocation20]  }
  0x83   :  { %s161_s4 = sshll.u32 %s7724_s24, 4  ;;  %s162_s4 = int_to_ptr.vmem [resolvable:$true] %s161_s4 }
  0x84   :  { %s7681_s23 = scalar_lea.vmem %s162_s4, 16  ;;  %s7685_s26 = scalar_lea.vmem %s162_s4, 32 }
  0x85   :  { %p7682_p13 = scmp.ne.s32.totalorder %s162_s4, %s7681_s23  ;;  %p7686_p0 = scmp.lt.s32.totalorder %s162_s4, %s162_s4 }
  0x86   :  { %p7687_p1 = scmp.lt.s32.totalorder %s7685_s26, %s7681_s23 }
  0x88   :  { %p7688_p2 = por %p7687_p1, %p7686_p0 }
  0x8a   :  { %p7689_p3 = pnand %p7688_p2, %p7682_p13 }
  0x8c   :  { %7692 = shalt.err (!%p7689_p3)
}
  0x8d   :  { %164 = dma.hbm_to_vmem [thread:$0]  %s8154_s13, 16, %s162_s4, [#allocation21]  }
  0x8e   :  { %7693 = dma.done.wait [#allocation4], 50176  }
  0x8f   :  { %7694 = vsyncadd [#allocation4], 4294917120 }
  0x90   :  { %7695 = dma.done.wait [#allocation6], 21616  }
  0x91   :  { %7696 = vsyncadd [#allocation6], 4294945680 }
  0x92   :  { %7697 = dma.done.wait [#allocation9], 3120  }
  0x93   :  { %7698 = vsyncadd [#allocation9], 4294964176 }
  0x94   :  { %7699 = dma.done.wait [#allocation12], 1040  }
  0x95   :  { %7700 = vsyncadd [#allocation12], 4294966256 }
  0x96   :  { %7701 = dma.done.wait [#allocation15], 1040  }
  0x97   :  { %7702 = vsyncadd [#allocation15], 4294966256 }
  0x98   :  { %7703 = dma.done.wait [#allocation18], 1040  }
  0x99   :  { %7704 = vsyncadd [#allocation18], 4294966256 }
  0x9a   :  { %7705 = dma.done.wait [#allocation21], 16  }
  0x9b   :  { %7706 = vsyncadd [#allocation21], 4294967280  ;;  %v7725_v1 = vmov 0   ;;  %v6593_v2 = vld [vmem:[#allocation3 + $0x18c] ss:$28 sps:$4 sm:$0xff]   ;;  %vm7727_vm0 = vmmov 0  }
  0x9c   :  { %6591 = vset.pattern.permute.xlu1 %v7725_v1  ;;  %6592 = vset.pattern.permute.xlu0 %v7725_v1  ;;  %v6595_v3 = vld [vmem:[#allocation3 + $0x50c] ss:$28 sps:$4 sm:$0xff]   ;;  %v6599_v6 = vld [vmem:[#allocation3 + $0x154] ss:$28 sps:$4 sm:$0xff]   ;;  %v6605_v10 = vld [vmem:[#allocation3 + $0x11c] ss:$28 sps:$4 sm:$0xff]  }
  0x9d   :  { %2749 = vmatprep.subr.bf16.mxu0 %v6593_v2  ;;  %v6597_v4 = vld [vmem:[#allocation3 + $0x188] ss:$28 sps:$4 sm:$0xff]   ;;  %2792 = vmatprep.subr.bf16.mxu1 %v6595_v3  ;;  %v6601_v7 = vld [vmem:[#allocation3 + $0x4d4] ss:$28 sps:$4 sm:$0xff]   ;;  %v6607_v11 = vld [vmem:[#allocation3 + $0x49c] ss:$28 sps:$4 sm:$0xff]  }
  0x9e   :  { %v6598_v5 = vld [vmem:[#allocation3 + $0x508] ss:$28 sps:$4 sm:$0xff]   ;;  %2750 = vmatpush1.bf16.msra.mxu0 %v6597_v4  ;;  %v6603_v8 = vld [vmem:[#allocation3 + $0x150] ss:$28 sps:$4 sm:$0xff]   ;;  %v6609_v12 = vld [vmem:[#allocation3 + $0x118] ss:$28 sps:$4 sm:$0xff]  }
  0x9f   :  { %2793 = vmatpush1.bf16.msra.mxu1 %v6598_v5  ;;  %2751 = vmatprep.subr.bf16.mxu0 %v6599_v6  ;;  %v6604_v9 = vld [vmem:[#allocation3 + $0x4d0] ss:$28 sps:$4 sm:$0xff]   ;;  %v6610_v13 = vld [vmem:[#allocation3 + $0x498] ss:$28 sps:$4 sm:$0xff]   ;;  %v6611_v14 = vld [vmem:[#allocation3 + $0xe4] ss:$28 sps:$4 sm:$0xff]  }
  0xa0   :  { %2794 = vmatprep.subr.bf16.mxu1 %v6601_v7  ;;  %v6613_v15 = vld [vmem:[#allocation3 + $0x464] ss:$28 sps:$4 sm:$0xff]   ;;  %v6617_v18 = vld [vmem:[#allocation3 + $0xac] ss:$28 sps:$4 sm:$0xff]   ;;  %v6623_v22 = vld [vmem:[#allocation3 + $0x74] ss:$28 sps:$4 sm:$0xff]  }
  0xa1   :  { %v6615_v16 = vld [vmem:[#allocation3 + $0xe0] ss:$28 sps:$4 sm:$0xff]   ;;  %v6619_v19 = vld [vmem:[#allocation3 + $0x42c] ss:$28 sps:$4 sm:$0xff]   ;;  %v6625_v23 = vld [vmem:[#allocation3 + $0x3f4] ss:$28 sps:$4 sm:$0xff]  }
  0xa2   :  { %2752 = vmatpush1.bf16.msra.mxu0 %v6603_v8  ;;  %v6616_v17 = vld [vmem:[#allocation3 + $0x460] ss:$28 sps:$4 sm:$0xff]   ;;  %v6621_v20 = vld [vmem:[#allocation3 + $0xa8] ss:$28 sps:$4 sm:$0xff]   ;;  %v6627_v24 = vld [vmem:[#allocation3 + $0x70] ss:$28 sps:$4 sm:$0xff]  }
  0xa3   :  { %2795 = vmatpush1.bf16.msra.mxu1 %v6604_v9  ;;  %2753 = vmatprep.subr.bf16.mxu0 %v6605_v10  ;;  %v6622_v21 = vld [vmem:[#allocation3 + $0x428] ss:$28 sps:$4 sm:$0xff]   ;;  %v6628_v25 = vld [vmem:[#allocation3 + $0x3f0] ss:$28 sps:$4 sm:$0xff]   ;;  %v6629_v26 = vld [vmem:[#allocation3 + $0x3c] ss:$28 sps:$4 sm:$0xff]  }
  0xa4   :  { %2796 = vmatprep.subr.bf16.mxu1 %v6607_v11  ;;  %v6631_v27 = vld [vmem:[#allocation3 + $0x3bc] ss:$28 sps:$4 sm:$0xff]   ;;  %v6635_v30 = vld [vmem:[#allocation3 + $0x4] ss:$28 sps:$4 sm:$0xff]   ;;  %v6641_v34 = vld [vmem:[#allocation3 + $0x34c] ss:$28 sps:$4 sm:$0xff]  }
  0xa5   :  { %v6633_v28 = vld [vmem:[#allocation3 + $0x38] ss:$28 sps:$4 sm:$0xff]   ;;  %v6637_v31 = vld [vmem:[#allocation3 + $0x384] ss:$28 sps:$4 sm:$0xff]   ;;  %v6643_v35 = vld [vmem:[#allocation3 + $0x6cc] ss:$28 sps:$4 sm:$0xff]  }
  0xa6   :  { %2754 = vmatpush1.bf16.msra.mxu0 %v6609_v12  ;;  %v6634_v29 = vld [vmem:[#allocation3 + $0x3b8] ss:$28 sps:$4 sm:$0xff]   ;;  %v6639_v32 = vld [vmem:[#allocation3] ss:$28 sps:$4 sm:$0xff]   ;;  %v6645_v36 = vld [vmem:[#allocation3 + $0x348] ss:$28 sps:$4 sm:$0xff]  }
  0xa7   :  { %2797 = vmatpush1.bf16.msra.mxu1 %v6610_v13  ;;  %2755 = vmatprep.subr.bf16.mxu0 %v6611_v14  ;;  %v6640_v33 = vld [vmem:[#allocation3 + $0x380] ss:$28 sps:$4 sm:$0xff]   ;;  %v6646_v37 = vld [vmem:[#allocation3 + $0x6c8] ss:$28 sps:$4 sm:$0xff]   ;;  %v6647_v38 = vld [vmem:[#allocation3 + $0x314] ss:$28 sps:$4 sm:$0xff]  }
  0xa8   :  { %2798 = vmatprep.subr.bf16.mxu1 %v6613_v15  ;;  %v6649_v39 = vld [vmem:[#allocation3 + $0x694] ss:$28 sps:$4 sm:$0xff]   ;;  %v6653_v42 = vld [vmem:[#allocation3 + $0x2dc] ss:$28 sps:$4 sm:$0xff]   ;;  %v6659_v46 = vld [vmem:[#allocation3 + $0x2a4] ss:$28 sps:$4 sm:$0xff]  }
  0xa9   :  { %v6651_v40 = vld [vmem:[#allocation3 + $0x310] ss:$28 sps:$4 sm:$0xff]   ;;  %v6655_v43 = vld [vmem:[#allocation3 + $0x65c] ss:$28 sps:$4 sm:$0xff]   ;;  %v6661_v47 = vld [vmem:[#allocation3 + $0x624] ss:$28 sps:$4 sm:$0xff]  }
  0xaa   :  { %2756 = vmatpush1.bf16.msra.mxu0 %v6615_v16  ;;  %v6652_v41 = vld [vmem:[#allocation3 + $0x690] ss:$28 sps:$4 sm:$0xff]   ;;  %v6657_v44 = vld [vmem:[#allocation3 + $0x2d8] ss:$28 sps:$4 sm:$0xff]   ;;  %v6663_v48 = vld [vmem:[#allocation3 + $0x2a0] ss:$28 sps:$4 sm:$0xff]  }
  0xab   :  { %2799 = vmatpush1.bf16.msra.mxu1 %v6616_v17  ;;  %2757 = vmatprep.subr.bf16.mxu0 %v6617_v18  ;;  %v6658_v45 = vld [vmem:[#allocation3 + $0x658] ss:$28 sps:$4 sm:$0xff]   ;;  %v6664_v49 = vld [vmem:[#allocation3 + $0x620] ss:$28 sps:$4 sm:$0xff]   ;;  %v6665_v50 = vld [vmem:[#allocation3 + $0x26c] ss:$28 sps:$4 sm:$0xff]  }
  0xac   :  { %2800 = vmatprep.subr.bf16.mxu1 %v6619_v19  ;;  %v7864_v51 = vld [vmem:[%s8141_s0 + $0x4] ss:$28 sps:$4 sm:$0xff]   ;;  %v7869_v52 = vld [vmem:[%s8141_s0 + $0xc] ss:$28 sps:$4 sm:$0xff]   ;;  %v6671_v56 = vld [vmem:[#allocation3 + $0x234] ss:$28 sps:$4 sm:$0xff]  }
  0xad   :  { %v6667_v53 = vld [vmem:[#allocation3 + $0x5ec] ss:$28 sps:$4 sm:$0xff]   ;;  %2781 = vmatprep.mubr.bf16.mxu0 %v7864_v51  ;;  %2824 = vmatprep.mubr.bf16.mxu1 %v7869_v52  ;;  %v6673_v57 = vld [vmem:[#allocation3 + $0x5b4] ss:$28 sps:$4 sm:$0xff]   ;;  %v6677_v60 = vld [vmem:[#allocation3 + $0x1fc] ss:$28 sps:$4 sm:$0xff]  }
  0xae   :  { %2758 = vmatpush1.bf16.msra.mxu0 %v6621_v20  ;;  %v6669_v54 = vld [vmem:[#allocation3 + $0x268] ss:$28 sps:$4 sm:$0xff]   ;;  %v6675_v58 = vld [vmem:[#allocation3 + $0x230] ss:$28 sps:$4 sm:$0xff]   ;;  %v6679_v61 = vld [vmem:[#allocation3 + $0x57c] ss:$28 sps:$4 sm:$0xff]  }
  0xaf   :  { %2801 = vmatpush1.bf16.msra.mxu1 %v6622_v21  ;;  %2759 = vmatprep.subr.bf16.mxu0 %v6623_v22  ;;  %v6670_v55 = vld [vmem:[#allocation3 + $0x5e8] ss:$28 sps:$4 sm:$0xff]   ;;  %v6676_v59 = vld [vmem:[#allocation3 + $0x5b0] ss:$28 sps:$4 sm:$0xff]   ;;  %v6681_v62 = vld [vmem:[#allocation3 + $0x1f8] ss:$28 sps:$4 sm:$0xff]  }
  0xb0   :  { %2802 = vmatprep.subr.bf16.mxu1 %v6625_v23  ;;  %v6682_v63 = vld [vmem:[#allocation3 + $0x578] ss:$28 sps:$4 sm:$0xff]   ;;  %v6683_v0 = vld [vmem:[#allocation3 + $0x1c4] ss:$28 sps:$4 sm:$0xff]   ;;  %v6696_v5 = vld [vmem:[#allocation3 + $0x88c] ss:$28 sps:$4 sm:$0xff]  }
  0xb1   :  { %v6685_v2 = vld [vmem:[#allocation3 + $0x544] ss:$28 sps:$4 sm:$0xff]   ;;  %v6699_v6 = vld [vmem:[#allocation3 + $0xc0c] ss:$28 sps:$4 sm:$0xff]   ;;  %v6703_v11 = vld [vmem:[#allocation3 + $0x854] ss:$28 sps:$4 sm:$0xff]  }
  0xb2   :  { %2760 = vmatpush1.bf16.msra.mxu0 %v6627_v24  ;;  %v6687_v3 = vld [vmem:[#allocation3 + $0x1c0] ss:$28 sps:$4 sm:$0xff]   ;;  %v6694_v8 = vld [vmem:[#allocation3 + $0x888] ss:$28 sps:$4 sm:$0xff]   ;;  %v6706_v12 = vld [vmem:[#allocation3 + $0xbd4] ss:$28 sps:$4 sm:$0xff]  }
  0xb3   :  { %2803 = vmatpush1.bf16.msra.mxu1 %v6628_v25  ;;  %2761 = vmatprep.subr.bf16.mxu0 %v6629_v26  ;;  %v6688_v4 = vld [vmem:[#allocation3 + $0x540] ss:$28 sps:$4 sm:$0xff]   ;;  %v6697_v9 = vld [vmem:[#allocation3 + $0xc08] ss:$28 sps:$4 sm:$0xff]   ;;  %v6701_v13 = vld [vmem:[#allocation3 + $0x850] ss:$28 sps:$4 sm:$0xff]  }
  0xb4   :  { %2804 = vmatprep.subr.bf16.mxu1 %v6631_v27  ;;  %v7876_v7 = vld [vmem:[%s8141_s0] ss:$28 sps:$4 sm:$0xff]   ;;  %v7881_v10 = vld [vmem:[%s8141_s0 + $0x8] ss:$28 sps:$4 sm:$0xff]   ;;  %v6704_v14 = vld [vmem:[#allocation3 + $0xbd0] ss:$28 sps:$4 sm:$0xff]  }
  0xb5   :  { %v6709_v15 = vld [vmem:[#allocation3 + $0x81c] ss:$28 sps:$4 sm:$0xff]   ;;  %v6715_v19 = vld [vmem:[#allocation3 + $0x7e4] ss:$28 sps:$4 sm:$0xff]   ;;  %v6721_v23 = vld [vmem:[#allocation3 + $0x7ac] ss:$28 sps:$4 sm:$0xff]  }
  0xb6   :  { %2762 = vmatpush1.bf16.msra.mxu0 %v6633_v28  ;;  %v6712_v16 = vld [vmem:[#allocation3 + $0xb9c] ss:$28 sps:$4 sm:$0xff]   ;;  %v6718_v20 = vld [vmem:[#allocation3 + $0xb64] ss:$28 sps:$4 sm:$0xff]   ;;  %v6724_v24 = vld [vmem:[#allocation3 + $0xb2c] ss:$28 sps:$4 sm:$0xff]  }
  0xb7   :  { %2805 = vmatpush1.bf16.msra.mxu1 %v6634_v29  ;;  %2763 = vmatprep.subr.bf16.mxu0 %v6635_v30  ;;  %v6707_v17 = vld [vmem:[#allocation3 + $0x818] ss:$28 sps:$4 sm:$0xff]   ;;  %v6713_v21 = vld [vmem:[#allocation3 + $0x7e0] ss:$28 sps:$4 sm:$0xff]   ;;  %v6719_v25 = vld [vmem:[#allocation3 + $0x7a8] ss:$28 sps:$4 sm:$0xff]  }
  0xb8   :  { %2806 = vmatprep.subr.bf16.mxu1 %v6637_v31  ;;  %v6710_v18 = vld [vmem:[#allocation3 + $0xb98] ss:$28 sps:$4 sm:$0xff]   ;;  %v6716_v22 = vld [vmem:[#allocation3 + $0xb60] ss:$28 sps:$4 sm:$0xff]   ;;  %v6722_v26 = vld [vmem:[#allocation3 + $0xb28] ss:$28 sps:$4 sm:$0xff]  }
  0xb9   :  { %v6727_v27 = vld [vmem:[#allocation3 + $0x774] ss:$28 sps:$4 sm:$0xff]   ;;  %v6733_v31 = vld [vmem:[#allocation3 + $0x73c] ss:$28 sps:$4 sm:$0xff]  }
  0xba   :  { %2764 = vmatpush1.bf16.msra.mxu0 %v6639_v32  ;;  %v6730_v28 = vld [vmem:[#allocation3 + $0xaf4] ss:$28 sps:$4 sm:$0xff]   ;;  %v6736_v32 = vld [vmem:[#allocation3 + $0xabc] ss:$28 sps:$4 sm:$0xff]  }
  0xbb   :  { %2807 = vmatpush1.bf16.msra.mxu1 %v6640_v33  ;;  %2765 = vmatprep.subr.bf16.mxu0 %v6641_v34  ;;  %v6725_v29 = vld [vmem:[#allocation3 + $0x770] ss:$28 sps:$4 sm:$0xff]   ;;  %v6731_v33 = vld [vmem:[#allocation3 + $0x738] ss:$28 sps:$4 sm:$0xff]  }
  0xbc   :  { %2808 = vmatprep.subr.bf16.mxu1 %v6643_v35  ;;  %v6728_v30 = vld [vmem:[#allocation3 + $0xaf0] ss:$28 sps:$4 sm:$0xff]   ;;  %v6734_v34 = vld [vmem:[#allocation3 + $0xab8] ss:$28 sps:$4 sm:$0xff]   ;;  %v6739_v35 = vld [vmem:[#allocation3 + $0x704] ss:$28 sps:$4 sm:$0xff]  }
  0xbe   :  { %2766 = vmatpush2.bf16.msra.mxu0 %v6645_v36  ;;  %v6742_v36 = vld [vmem:[#allocation3 + $0xa84] ss:$28 sps:$4 sm:$0xff]  }
  0xbf   :  { %2809 = vmatpush2.bf16.msra.mxu1 %v6646_v37  ;;  %2767 = vmatprep.subr.bf16.mxu0 %v6647_v38  ;;  %v7889_v37 = vld [vmem:[%s8141_s0 + $0x14] ss:$28 sps:$4 sm:$0xff]   ;;  %v6737_v38 = vld [vmem:[#allocation3 + $0x700] ss:$28 sps:$4 sm:$0xff]  }
  0xc0   :  { %2810 = vmatprep.subr.bf16.mxu1 %v6649_v39  ;;  %v6740_v39 = vld [vmem:[#allocation3 + $0xa80] ss:$28 sps:$4 sm:$0xff]  }
  0xc2   :  { %2768 = vmatpush2.bf16.msra.mxu0 %v6651_v40  ;;  %v6745_v40 = vld [vmem:[#allocation3 + $0xa4c] ss:$28 sps:$4 sm:$0xff]  }
  0xc3   :  { %2811 = vmatpush2.bf16.msra.mxu1 %v6652_v41  ;;  %2769 = vmatprep.subr.bf16.mxu0 %v6653_v42  ;;  %v6748_v41 = vld [vmem:[#allocation3 + $0x194] ss:$28 sps:$4 sm:$0xff]   ;;  %v6743_v42 = vld [vmem:[#allocation3 + $0xa48] ss:$28 sps:$4 sm:$0xff]  }
  0xc4   :  { %2812 = vmatprep.subr.bf16.mxu1 %v6655_v43  ;;  %v7895_v43 = vld [vmem:[%s8141_s0 + $0x18] ss:$28 sps:$4 sm:$0xff]  }
  0xc6   :  { %2770 = vmatpush2.bf16.msra.mxu0 %v6657_v44  ;;  %v6746_v44 = vld [vmem:[#allocation3 + $0x190] ss:$28 sps:$4 sm:$0xff]  }
  0xc7   :  { %2813 = vmatpush2.bf16.msra.mxu1 %v6658_v45  ;;  %2771 = vmatprep.subr.bf16.mxu0 %v6659_v46  ;;  %v6752_v45 = vld [vmem:[#allocation3 + $0xa14] ss:$28 sps:$4 sm:$0xff]   ;;  %v6755_v46 = vld [vmem:[#allocation3 + $0x15c] ss:$28 sps:$4 sm:$0xff]  }
  0xc8   :  { %2814 = vmatprep.subr.bf16.mxu1 %v6661_v47  ;;  %v6750_v47 = vld [vmem:[#allocation3 + $0xa10] ss:$28 sps:$4 sm:$0xff]  }
  0xca   :  { %2772 = vmatpush2.bf16.msra.mxu0 %v6663_v48  ;;  %v6753_v48 = vld [vmem:[#allocation3 + $0x158] ss:$28 sps:$4 sm:$0xff]  }
  0xcb   :  { %2815 = vmatpush2.bf16.msra.mxu1 %v6664_v49  ;;  %2773 = vmatprep.subr.bf16.mxu0 %v6665_v50  ;;  %v6758_v49 = vld [vmem:[#allocation3 + $0x9dc] ss:$28 sps:$4 sm:$0xff]   ;;  %v6761_v50 = vld [vmem:[#allocation3 + $0x124] ss:$28 sps:$4 sm:$0xff]  }
  0xcc   :  { %2816 = vmatprep.subr.bf16.mxu1 %v6667_v53  ;;  %v6756_v53 = vld [vmem:[#allocation3 + $0x9d8] ss:$28 sps:$4 sm:$0xff]  }
  0xce   :  { %2774 = vmatpush2.bf16.msra.mxu0 %v6669_v54  ;;  %v6759_v54 = vld [vmem:[#allocation3 + $0x120] ss:$28 sps:$4 sm:$0xff]  }
  0xcf   :  { %2817 = vmatpush2.bf16.msra.mxu1 %v6670_v55  ;;  %2775 = vmatprep.subr.bf16.mxu0 %v6671_v56  ;;  %v6764_v55 = vld [vmem:[#allocation3 + $0x9a4] ss:$28 sps:$4 sm:$0xff]   ;;  %v6767_v56 = vld [vmem:[#allocation3 + $0xec] ss:$28 sps:$4 sm:$0xff]  }
  0xd0   :  { %2818 = vmatprep.subr.bf16.mxu1 %v6673_v57  ;;  %v6762_v57 = vld [vmem:[#allocation3 + $0x9a0] ss:$28 sps:$4 sm:$0xff]  }
  0xd2   :  { %2776 = vmatpush2.bf16.msra.mxu0 %v6675_v58  ;;  %v6765_v58 = vld [vmem:[#allocation3 + $0xe8] ss:$28 sps:$4 sm:$0xff]  }
  0xd3   :  { %2819 = vmatpush2.bf16.msra.mxu1 %v6676_v59  ;;  %2777 = vmatprep.subr.bf16.mxu0 %v6677_v60  ;;  %v6770_v59 = vld [vmem:[#allocation3 + $0x96c] ss:$28 sps:$4 sm:$0xff]   ;;  %v6773_v60 = vld [vmem:[#allocation3 + $0xb4] ss:$28 sps:$4 sm:$0xff]  }
  0xd4   :  { %2820 = vmatprep.subr.bf16.mxu1 %v6679_v61  ;;  %v6768_v61 = vld [vmem:[#allocation3 + $0x968] ss:$28 sps:$4 sm:$0xff]  }
  0xd6   :  { %2778 = vmatpush2.bf16.msra.mxu0 %v6681_v62  ;;  %v6776_v62 = vld [vmem:[#allocation3 + $0x934] ss:$28 sps:$4 sm:$0xff]  }
  0xd7   :  { %2821 = vmatpush2.bf16.msra.mxu1 %v6682_v63  ;;  %2779 = vmatprep.subr.bf16.mxu0 %v6683_v0  ;;  %v6779_v63 = vld [vmem:[#allocation3 + $0x7c] ss:$28 sps:$4 sm:$0xff]   ;;  %v6774_v0 = vld [vmem:[#allocation3 + $0x930] ss:$28 sps:$4 sm:$0xff]  }
  0xd8   :  { %2822 = vmatprep.subr.bf16.mxu1 %v6685_v2  ;;  %v6777_v2 = vld [vmem:[#allocation3 + $0x78] ss:$28 sps:$4 sm:$0xff]  }
  0xda   :  { %2780 = vmatpush2.bf16.msra.mxu0 %v6687_v3  ;;  %v6782_v3 = vld [vmem:[#allocation3 + $0x8fc] ss:$28 sps:$4 sm:$0xff]  }
  0xdb   :  { %2823 = vmatpush2.bf16.msra.mxu1 %v6688_v4  ;;  %2835 = vmatprep.subr.bf16.mxu0 %v6696_v5  ;;  %v6785_v4 = vld [vmem:[#allocation3 + $0x44] ss:$28 sps:$4 sm:$0xff]   ;;  %v6780_v5 = vld [vmem:[#allocation3 + $0x8f8] ss:$28 sps:$4 sm:$0xff]  }
  0xdc   :  { %2878 = vmatprep.subr.bf16.mxu1 %v6699_v6  ;;  %v6783_v6 = vld [vmem:[#allocation3 + $0x40] ss:$28 sps:$4 sm:$0xff]  }
  0xdd   :  { %2782 = vmatmul.mubr.bf16.vlgmr.msra.gmra.mxu0 %v7876_v7 }
  0xde   :  { %2825 = vmatmul.mubr.bf16.vlgmr.msra.gmra.mxu1 %v7881_v10  ;;  %2836 = vmatpush1.bf16.msra.mxu0 %v6694_v8  ;;  %v6788_v8 = vld [vmem:[#allocation3 + $0x8c4] ss:$28 sps:$4 sm:$0xff]  }
  0xdf   :  { %2879 = vmatpush1.bf16.msra.mxu1 %v6697_v9  ;;  %2837 = vmatprep.subr.bf16.mxu0 %v6703_v11  ;;  %v6791_v9 = vld [vmem:[#allocation3 + $0xc] ss:$28 sps:$4 sm:$0xff]   ;;  %v6786_v11 = vld [vmem:[#allocation3 + $0x8c0] ss:$28 sps:$4 sm:$0xff]  }
  0xe0   :  { %2880 = vmatprep.subr.bf16.mxu1 %v6706_v12  ;;  %2910 = vmatprep.mubr.bf16.mxu1 %v7725_v1  ;;  %v6789_v12 = vld [vmem:[#allocation3 + $0x8] ss:$28 sps:$4 sm:$0xff]  }
  0xe1   :  { %2867 = vmatprep.mubr.bf16.mxu0 %v7889_v37 }
  0xe2   :  { %2838 = vmatpush1.bf16.msra.mxu0 %v6701_v13  ;;  %v6797_v13 = vld [vmem:[#allocation3 + $0x354] ss:$28 sps:$4 sm:$0xff]  }
  0xe3   :  { %2881 = vmatpush1.bf16.msra.mxu1 %v6704_v14  ;;  %2839 = vmatprep.subr.bf16.mxu0 %v6709_v15  ;;  %v6800_v14 = vld [vmem:[#allocation3 + $0x514] ss:$28 sps:$4 sm:$0xff]  }
  0xe4   :  { %2882 = vmatprep.subr.bf16.mxu1 %v6712_v16  ;;  %v7902_v15 = vld [vmem:[%s8141_s0 + $0x10] ss:$28 sps:$4 sm:$0xff]  }
  0xe5   :  { %v6795_v16 = vld [vmem:[#allocation3 + $0x350] ss:$28 sps:$4 sm:$0xff]  }
  0xe6   :  { %2840 = vmatpush1.bf16.msra.mxu0 %v6707_v17  ;;  %v6798_v17 = vld [vmem:[#allocation3 + $0x510] ss:$28 sps:$4 sm:$0xff]  }
  0xe7   :  { %2883 = vmatpush1.bf16.msra.mxu1 %v6710_v18  ;;  %2841 = vmatprep.subr.bf16.mxu0 %v6715_v19  ;;  %v6803_v18 = vld [vmem:[#allocation3 + $0x31c] ss:$28 sps:$4 sm:$0xff]  }
  0xe8   :  { %2884 = vmatprep.subr.bf16.mxu1 %v6718_v20  ;;  %v6806_v19 = vld [vmem:[#allocation3 + $0x4dc] ss:$28 sps:$4 sm:$0xff]  }
  0xe9   :  { %v6801_v20 = vld [vmem:[#allocation3 + $0x318] ss:$28 sps:$4 sm:$0xff]  }
  0xea   :  { %2842 = vmatpush1.bf16.msra.mxu0 %v6713_v21  ;;  %v6804_v21 = vld [vmem:[#allocation3 + $0x4d8] ss:$28 sps:$4 sm:$0xff]  }
  0xeb   :  { %2885 = vmatpush1.bf16.msra.mxu1 %v6716_v22  ;;  %2843 = vmatprep.subr.bf16.mxu0 %v6721_v23  ;;  %v6809_v22 = vld [vmem:[#allocation3 + $0x2e4] ss:$28 sps:$4 sm:$0xff]  }
  0xec   :  { %2886 = vmatprep.subr.bf16.mxu1 %v6724_v24  ;;  %v6812_v23 = vld [vmem:[#allocation3 + $0x4a4] ss:$28 sps:$4 sm:$0xff]  }
  0xed   :  { %v6807_v24 = vld [vmem:[#allocation3 + $0x2e0] ss:$28 sps:$4 sm:$0xff]  }
  0xee   :  { %2844 = vmatpush1.bf16.msra.mxu0 %v6719_v25  ;;  %v6810_v25 = vld [vmem:[#allocation3 + $0x4a0] ss:$28 sps:$4 sm:$0xff]  }
  0xef   :  { %2887 = vmatpush1.bf16.msra.mxu1 %v6722_v26  ;;  %2845 = vmatprep.subr.bf16.mxu0 %v6727_v27  ;;  %v6815_v26 = vld [vmem:[#allocation3 + $0x2ac] ss:$28 sps:$4 sm:$0xff]  }
  0xf0   :  { %2888 = vmatprep.subr.bf16.mxu1 %v6730_v28  ;;  %v6818_v27 = vld [vmem:[#allocation3 + $0x46c] ss:$28 sps:$4 sm:$0xff]  }
  0xf1   :  { %v6813_v28 = vld [vmem:[#allocation3 + $0x2a8] ss:$28 sps:$4 sm:$0xff]  }
  0xf2   :  { %2846 = vmatpush1.bf16.msra.mxu0 %v6725_v29  ;;  %v6816_v29 = vld [vmem:[#allocation3 + $0x468] ss:$28 sps:$4 sm:$0xff]  }
  0xf3   :  { %2889 = vmatpush1.bf16.msra.mxu1 %v6728_v30  ;;  %2847 = vmatprep.subr.bf16.mxu0 %v6733_v31  ;;  %v6821_v30 = vld [vmem:[#allocation3 + $0x274] ss:$28 sps:$4 sm:$0xff]  }
  0xf4   :  { %2890 = vmatprep.subr.bf16.mxu1 %v6736_v32  ;;  %v6824_v31 = vld [vmem:[#allocation3 + $0x434] ss:$28 sps:$4 sm:$0xff]  }
  0xf5   :  { %v6819_v32 = vld [vmem:[#allocation3 + $0x270] ss:$28 sps:$4 sm:$0xff]  }
  0xf6   :  { %2848 = vmatpush1.bf16.msra.mxu0 %v6731_v33  ;;  %v6827_v33 = vld [vmem:[#allocation3 + $0x23c] ss:$28 sps:$4 sm:$0xff]  }
  0xf7   :  { %2891 = vmatpush1.bf16.msra.mxu1 %v6734_v34  ;;  %2849 = vmatprep.subr.bf16.mxu0 %v6739_v35  ;;  %v6830_v34 = vld [vmem:[#allocation3 + $0x3fc] ss:$28 sps:$4 sm:$0xff]  }
  0xf8   :  { %2892 = vmatprep.subr.bf16.mxu1 %v6742_v36  ;;  %v6825_v35 = vld [vmem:[#allocation3 + $0x238] ss:$28 sps:$4 sm:$0xff]  }
  0xf9   :  { %v6828_v36 = vld [vmem:[#allocation3 + $0x3f8] ss:$28 sps:$4 sm:$0xff]  }
  0xfa   :  { %2850 = vmatpush1.bf16.msra.mxu0 %v6737_v38  ;;  %v6833_v38 = vld [vmem:[#allocation3 + $0x204] ss:$28 sps:$4 sm:$0xff]  }
  0xfb   :  { %2893 = vmatpush1.bf16.msra.mxu1 %v6740_v39  ;;  %2851 = vmatprep.subr.bf16.mxu0 %v6745_v40  ;;  %v6836_v39 = vld [vmem:[#allocation3 + $0x3c4] ss:$28 sps:$4 sm:$0xff]  }
  0xfc   :  { %2921 = vmatprep.subr.bf16.mxu1 %v6748_v41  ;;  %v6831_v40 = vld [vmem:[#allocation3 + $0x200] ss:$28 sps:$4 sm:$0xff]  }
  0xfd   :  { %v6834_v41 = vld [vmem:[#allocation3 + $0x3c0] ss:$28 sps:$4 sm:$0xff]  }
  0xfe   :  { %2911 = vmatmul.mubr.bf16.vlgmr.msra.gmra.mxu1 %v7895_v43  ;;  %2852 = vmatpush2.bf16.msra.mxu0 %v6743_v42  ;;  %v6839_v42 = vld [vmem:[#allocation3 + $0x1cc] ss:$28 sps:$4 sm:$0xff]  }
  0xff   :  { %2922 = vmatpush1.bf16.msra.mxu1 %v6746_v44  ;;  %2853 = vmatprep.subr.bf16.mxu0 %v6752_v45  ;;  %v6842_v44 = vld [vmem:[#allocation3 + $0x38c] ss:$28 sps:$4 sm:$0xff]  }
 0x100   :  { %2923 = vmatprep.subr.bf16.mxu1 %v6755_v46  ;;  %2953 = vmatprep.mubr.bf16.mxu1 %v7864_v51  ;;  %v6771_v51 = vld [vmem:[#allocation3 + $0xb0] ss:$28 sps:$4 sm:$0xff]   ;;  %v6837_v45 = vld [vmem:[#allocation3 + $0x1c8] ss:$28 sps:$4 sm:$0xff]  }
 0x101   :  { %v6840_v46 = vld [vmem:[#allocation3 + $0x388] ss:$28 sps:$4 sm:$0xff]  }
 0x102   :  { %2854 = vmatpush2.bf16.msra.mxu0 %v6750_v47  ;;  %v6845_v47 = vld [vmem:[#allocation3 + $0x6d4] ss:$28 sps:$4 sm:$0xff]  }
 0x103   :  { %2924 = vmatpush1.bf16.msra.mxu1 %v6753_v48  ;;  %2855 = vmatprep.subr.bf16.mxu0 %v6758_v49  ;;  %v6848_v48 = vld [vmem:[#allocation3 + $0x894] ss:$28 sps:$4 sm:$0xff]  }
 0x104   :  { %2925 = vmatprep.subr.bf16.mxu1 %v6761_v50  ;;  %v6843_v49 = vld [vmem:[#allocation3 + $0x6d0] ss:$28 sps:$4 sm:$0xff]  }
 0x105   :  { %v6846_v50 = vld [vmem:[#allocation3 + $0x890] ss:$28 sps:$4 sm:$0xff]  }
 0x106   :  { %2856 = vmatpush2.bf16.msra.mxu0 %v6756_v53  ;;  %v6851_v53 = vld [vmem:[#allocation3 + $0x69c] ss:$28 sps:$4 sm:$0xff]  }
 0x107   :  { %2926 = vmatpush1.bf16.msra.mxu1 %v6759_v54  ;;  %2857 = vmatprep.subr.bf16.mxu0 %v6764_v55  ;;  %v6854_v54 = vld [vmem:[#allocation3 + $0x85c] ss:$28 sps:$4 sm:$0xff]  }
 0x108   :  { %2927 = vmatprep.subr.bf16.mxu1 %v6767_v56  ;;  %v6849_v55 = vld [vmem:[#allocation3 + $0x698] ss:$28 sps:$4 sm:$0xff]  }
 0x109   :  { %v6852_v56 = vld [vmem:[#allocation3 + $0x858] ss:$28 sps:$4 sm:$0xff]  }
 0x10a   :  { %2858 = vmatpush2.bf16.msra.mxu0 %v6762_v57  ;;  %v6857_v57 = vld [vmem:[#allocation3 + $0x664] ss:$28 sps:$4 sm:$0xff]  }
 0x10b   :  { %2928 = vmatpush1.bf16.msra.mxu1 %v6765_v58  ;;  %2859 = vmatprep.subr.bf16.mxu0 %v6770_v59  ;;  %v6860_v58 = vld [vmem:[#allocation3 + $0x824] ss:$28 sps:$4 sm:$0xff]  }
 0x10c   :  { %2929 = vmatprep.subr.bf16.mxu1 %v6773_v60  ;;  %v6855_v59 = vld [vmem:[#allocation3 + $0x660] ss:$28 sps:$4 sm:$0xff]  }
 0x10d   :  { %v6858_v60 = vld [vmem:[#allocation3 + $0x820] ss:$28 sps:$4 sm:$0xff]  }
 0x10e   :  { %2860 = vmatpush2.bf16.msra.mxu0 %v6768_v61  ;;  %v6863_v61 = vld [vmem:[#allocation3 + $0x62c] ss:$28 sps:$4 sm:$0xff]  }
 0x10f   :  { %2930 = vmatpush1.bf16.msra.mxu1 %v6771_v51  ;;  %2861 = vmatprep.subr.bf16.mxu0 %v6776_v62  ;;  %v6866_v51 = vld [vmem:[#allocation3 + $0x7ec] ss:$28 sps:$4 sm:$0xff]  }
 0x110   :  { %2931 = vmatprep.subr.bf16.mxu1 %v6779_v63  ;;  %v6861_v62 = vld [vmem:[#allocation3 + $0x628] ss:$28 sps:$4 sm:$0xff]   ;;  %v6869_v63 = vld [vmem:[#allocation3 + $0x5f4] ss:$28 sps:$4 sm:$0xff]  }
 0x112   :  { %2862 = vmatpush2.bf16.msra.mxu0 %v6774_v0  ;;  %v6872_v0 = vld [vmem:[#allocation3 + $0x7b4] ss:$28 sps:$4 sm:$0xff]  }
 0x113   :  { %2932 = vmatpush1.bf16.msra.mxu1 %v6777_v2  ;;  %2863 = vmatprep.subr.bf16.mxu0 %v6782_v3  ;;  %v6867_v2 = vld [vmem:[#allocation3 + $0x5f0] ss:$28 sps:$4 sm:$0xff]  }
 0x114   :  { %2933 = vmatprep.subr.bf16.mxu1 %v6785_v4  ;;  %v6870_v3 = vld [vmem:[#allocation3 + $0x7b0] ss:$28 sps:$4 sm:$0xff]   ;;  %v6878_v4 = vld [vmem:[#allocation3 + $0x77c] ss:$28 sps:$4 sm:$0xff]  }
 0x116   :  { %2864 = vmatpush2.bf16.msra.mxu0 %v6780_v5  ;;  %v6873_v5 = vld [vmem:[#allocation3 + $0x5b8] ss:$28 sps:$4 sm:$0xff]  }
 0x117   :  { %2934 = vmatpush1.bf16.msra.mxu1 %v6783_v6  ;;  %2865 = vmatprep.subr.bf16.mxu0 %v6788_v8  ;;  %v6876_v6 = vld [vmem:[#allocation3 + $0x778] ss:$28 sps:$4 sm:$0xff]   ;;  %v6881_v8 = vld [vmem:[#allocation3 + $0x584] ss:$28 sps:$4 sm:$0xff]  }
 0x118   :  { %2935 = vmatprep.subr.bf16.mxu1 %v6791_v9  ;;  %v6884_v9 = vld [vmem:[#allocation3 + $0x744] ss:$28 sps:$4 sm:$0xff]  }
 0x11a   :  { %2866 = vmatpush2.bf16.msra.mxu0 %v6786_v11  ;;  %v6879_v11 = vld [vmem:[#allocation3 + $0x580] ss:$28 sps:$4 sm:$0xff]  }
 0x11b   :  { %2936 = vmatpush1.bf16.msra.mxu1 %v6789_v12  ;;  %2964 = vmatprep.subr.bf16.mxu0 %v6800_v14  ;;  %v6882_v12 = vld [vmem:[#allocation3 + $0x740] ss:$28 sps:$4 sm:$0xff]   ;;  %v6890_v14 = vld [vmem:[#allocation3 + $0x70c] ss:$28 sps:$4 sm:$0xff]  }
 0x11c   :  { %2937 = vmatprep.subr.bf16.mxu1 %v6797_v13  ;;  %v6887_v13 = vld [vmem:[#allocation3 + $0x54c] ss:$28 sps:$4 sm:$0xff]  }
 0x11d   :  { %2868 = vmatmul.mubr.bf16.vlgmr.msra.gmra.mxu0 %v7902_v15 }
 0x11e   :  { %2965 = vmatpush1.bf16.msra.mxu0 %v6798_v17  ;;  %2996 = vmatprep.mubr.bf16.mxu0 %v7869_v52  ;;  %v6822_v52 = vld [vmem:[#allocation3 + $0x430] ss:$28 sps:$4 sm:$0xff]   ;;  %v6888_v17 = vld [vmem:[#allocation3 + $0x708] ss:$28 sps:$4 sm:$0xff]  }
 0x11f   :  { %2938 = vmatpush2.bf16.msra.mxu1 %v6795_v16  ;;  %2966 = vmatprep.subr.bf16.mxu0 %v6806_v19  ;;  %v6885_v16 = vld [vmem:[#allocation3 + $0x548] ss:$28 sps:$4 sm:$0xff]   ;;  %v6896_v19 = vld [vmem:[#allocation3 + $0xc14] ss:$28 sps:$4 sm:$0xff]  }
 0x120   :  { %2939 = vmatprep.subr.bf16.mxu1 %v6803_v18  ;;  %v6893_v18 = vld [vmem:[#allocation3 + $0xa54] ss:$28 sps:$4 sm:$0xff]  }
 0x122   :  { %2967 = vmatpush1.bf16.msra.mxu0 %v6804_v21  ;;  %v6894_v21 = vld [vmem:[#allocation3 + $0xc10] ss:$28 sps:$4 sm:$0xff]  }
 0x123   :  { %2940 = vmatpush2.bf16.msra.mxu1 %v6801_v20  ;;  %2968 = vmatprep.subr.bf16.mxu0 %v6812_v23  ;;  %v6891_v20 = vld [vmem:[#allocation3 + $0xa50] ss:$28 sps:$4 sm:$0xff]   ;;  %v6902_v23 = vld [vmem:[#allocation3 + $0xbdc] ss:$28 sps:$4 sm:$0xff]  }
 0x124   :  { %2941 = vmatprep.subr.bf16.mxu1 %v6809_v22  ;;  %v6899_v22 = vld [vmem:[#allocation3 + $0xa1c] ss:$28 sps:$4 sm:$0xff]  }
 0x126   :  { %2969 = vmatpush1.bf16.msra.mxu0 %v6810_v25  ;;  %v6900_v25 = vld [vmem:[#allocation3 + $0xbd8] ss:$28 sps:$4 sm:$0xff]  }
 0x127   :  { %2942 = vmatpush2.bf16.msra.mxu1 %v6807_v24  ;;  %2970 = vmatprep.subr.bf16.mxu0 %v6818_v27  ;;  %v6897_v24 = vld [vmem:[#allocation3 + $0xa18] ss:$28 sps:$4 sm:$0xff]   ;;  %v6908_v27 = vld [vmem:[#allocation3 + $0xba4] ss:$28 sps:$4 sm:$0xff]  }
 0x128   :  { %2943 = vmatprep.subr.bf16.mxu1 %v6815_v26  ;;  %v6905_v26 = vld [vmem:[#allocation3 + $0x9e4] ss:$28 sps:$4 sm:$0xff]  }
 0x12a   :  { %2971 = vmatpush1.bf16.msra.mxu0 %v6816_v29  ;;  %v6906_v29 = vld [vmem:[#allocation3 + $0xba0] ss:$28 sps:$4 sm:$0xff]  }
 0x12b   :  { %2944 = vmatpush2.bf16.msra.mxu1 %v6813_v28  ;;  %2972 = vmatprep.subr.bf16.mxu0 %v6824_v31  ;;  %v6903_v28 = vld [vmem:[#allocation3 + $0x9e0] ss:$28 sps:$4 sm:$0xff]   ;;  %v6914_v31 = vld [vmem:[#allocation3 + $0xb6c] ss:$28 sps:$4 sm:$0xff]  }
 0x12c   :  { %2945 = vmatprep.subr.bf16.mxu1 %v6821_v30  ;;  %v6911_v30 = vld [vmem:[#allocation3 + $0x9ac] ss:$28 sps:$4 sm:$0xff]  }
 0x12e   :  { %2973 = vmatpush1.bf16.msra.mxu0 %v6822_v52  ;;  %v6917_v52 = vld [vmem:[#allocation3 + $0x974] ss:$28 sps:$4 sm:$0xff]  }
 0x12f   :  { %2946 = vmatpush2.bf16.msra.mxu1 %v6819_v32  ;;  %2974 = vmatprep.subr.bf16.mxu0 %v6830_v34  ;;  %v6909_v32 = vld [vmem:[#allocation3 + $0x9a8] ss:$28 sps:$4 sm:$0xff]   ;;  %v6915_v34 = vld [vmem:[#allocation3 + $0x970] ss:$28 sps:$4 sm:$0xff]  }
 0x130   :  { %2947 = vmatprep.subr.bf16.mxu1 %v6827_v33  ;;  %v6920_v33 = vld [vmem:[#allocation3 + $0xb34] ss:$28 sps:$4 sm:$0xff]  }
 0x132   :  { %2975 = vmatpush1.bf16.msra.mxu0 %v6828_v36  ;;  %v6923_v36 = vld [vmem:[#allocation3 + $0x93c] ss:$28 sps:$4 sm:$0xff]  }
 0x133   :  { %2948 = vmatpush2.bf16.msra.mxu1 %v6825_v35  ;;  %2976 = vmatprep.subr.bf16.mxu0 %v6836_v39  ;;  %v6918_v35 = vld [vmem:[#allocation3 + $0xb30] ss:$28 sps:$4 sm:$0xff]   ;;  %v6921_v39 = vld [vmem:[#allocation3 + $0x938] ss:$28 sps:$4 sm:$0xff]  }
 0x134   :  { %2949 = vmatprep.subr.bf16.mxu1 %v6833_v38  ;;  %v6926_v38 = vld [vmem:[#allocation3 + $0xafc] ss:$28 sps:$4 sm:$0xff]  }
 0x136   :  { %2977 = vmatpush1.bf16.msra.mxu0 %v6834_v41  ;;  %v6929_v41 = vld [vmem:[#allocation3 + $0x904] ss:$28 sps:$4 sm:$0xff]  }
 0x137   :  { %2950 = vmatpush2.bf16.msra.mxu1 %v6831_v40  ;;  %2978 = vmatprep.subr.bf16.mxu0 %v6842_v44  ;;  %v6924_v40 = vld [vmem:[#allocation3 + $0xaf8] ss:$28 sps:$4 sm:$0xff]   ;;  %v6927_v44 = vld [vmem:[#allocation3 + $0x900] ss:$28 sps:$4 sm:$0xff]  }
 0x138   :  { %2951 = vmatprep.subr.bf16.mxu1 %v6839_v42  ;;  %v6932_v42 = vld [vmem:[#allocation3 + $0xac4] ss:$28 sps:$4 sm:$0xff]  }
 0x13a   :  { %2979 = vmatpush1.bf16.msra.mxu0 %v6840_v46  ;;  %v6935_v46 = vld [vmem:[#allocation3 + $0x8cc] ss:$28 sps:$4 sm:$0xff]  }
 0x13b   :  { %2952 = vmatpush2.bf16.msra.mxu1 %v6837_v45  ;;  %2980 = vmatprep.subr.bf16.mxu0 %v6845_v47  ;;  %v6930_v45 = vld [vmem:[#allocation3 + $0xac0] ss:$28 sps:$4 sm:$0xff]   ;;  %v6938_v47 = vld [vmem:[#allocation3 + $0xa8c] ss:$28 sps:$4 sm:$0xff]  }
 0x13c   :  { %3007 = vmatprep.subr.bf16.mxu1 %v6848_v48  ;;  %v6933_v48 = vld [vmem:[#allocation3 + $0x8c8] ss:$28 sps:$4 sm:$0xff]  }
 0x13e   :  { %2954 = vmatmul.mubr.bf16.vlgmr.msra.gmra.mxu1 %v7876_v7  ;;  %2981 = vmatpush2.bf16.msra.mxu0 %v6843_v49  ;;  %v6864_v7 = vld [vmem:[#allocation3 + $0x7e8] ss:$28 sps:$4 sm:$0xff]  }
 0x13f   :  { %3008 = vmatpush1.bf16.msra.mxu1 %v6846_v50  ;;  %2982 = vmatprep.subr.bf16.mxu0 %v6851_v53  ;;  %v6936_v49 = vld [vmem:[#allocation3 + $0xa88] ss:$28 sps:$4 sm:$0xff]   ;;  %v6941_v50 = vld [vmem:[#allocation3 + $0x19c] ss:$28 sps:$4 sm:$0xff]  }
 0x140   :  { %3009 = vmatprep.subr.bf16.mxu1 %v6854_v54  ;;  %3039 = vmatprep.mubr.bf16.mxu1 %v7889_v37  ;;  %v6875_v37 = vld [vmem:[#allocation3 + $0x5bc] ss:$28 sps:$4 sm:$0xff]  }
 0x141   :  { %v6944_v53 = vld [vmem:[#allocation3 + $0x51c] ss:$28 sps:$4 sm:$0xff]  }
 0x142   :  { %2983 = vmatpush2.bf16.msra.mxu0 %v6849_v55  ;;  %v6939_v54 = vld [vmem:[#allocation3 + $0x198] ss:$28 sps:$4 sm:$0xff]  }
 0x143   :  { %3010 = vmatpush1.bf16.msra.mxu1 %v6852_v56  ;;  %2984 = vmatprep.subr.bf16.mxu0 %v6857_v57  ;;  %v6942_v55 = vld [vmem:[#allocation3 + $0x518] ss:$28 sps:$4 sm:$0xff]   ;;  %v6947_v56 = vld [vmem:[#allocation3 + $0x164] ss:$28 sps:$4 sm:$0xff]  }
 0x144   :  { %3011 = vmatprep.subr.bf16.mxu1 %v6860_v58  ;;  %v6950_v57 = vld [vmem:[#allocation3 + $0x4e4] ss:$28 sps:$4 sm:$0xff]  }
 0x145   :  { %v6945_v58 = vld [vmem:[#allocation3 + $0x160] ss:$28 sps:$4 sm:$0xff]  }
 0x146   :  { %2985 = vmatpush2.bf16.msra.mxu0 %v6855_v59  ;;  %v6948_v59 = vld [vmem:[#allocation3 + $0x4e0] ss:$28 sps:$4 sm:$0xff]  }
 0x147   :  { %3012 = vmatpush1.bf16.msra.mxu1 %v6858_v60  ;;  %2986 = vmatprep.subr.bf16.mxu0 %v6863_v61  ;;  %v6953_v60 = vld [vmem:[#allocation3 + $0x12c] ss:$28 sps:$4 sm:$0xff]  }
 0x148   :  { %3013 = vmatprep.subr.bf16.mxu1 %v6866_v51  ;;  %v6956_v61 = vld [vmem:[#allocation3 + $0x4ac] ss:$28 sps:$4 sm:$0xff]  }
 0x149   :  { %v6951_v51 = vld [vmem:[#allocation3 + $0x128] ss:$28 sps:$4 sm:$0xff]  }
 0x14a   :  { %2987 = vmatpush2.bf16.msra.mxu0 %v6861_v62  ;;  %v7915_v62 = vld [vmem:[%s8141_s0 + $0x4] ss:$28 sps:$4 sm:$0xff]  }
 0x14b   :  { %3014 = vmatpush1.bf16.msra.mxu1 %v6864_v7  ;;  %2988 = vmatprep.subr.bf16.mxu0 %v6869_v63  ;;  %v6959_v7 = vld [vmem:[#allocation3 + $0xf4] ss:$28 sps:$4 sm:$0xff]  }
 0x14c   :  { %3015 = vmatprep.subr.bf16.mxu1 %v6872_v0  ;;  %v6962_v63 = vld [vmem:[#allocation3 + $0x474] ss:$28 sps:$4 sm:$0xff]  }
 0x14d   :  { %v6957_v0 = vld [vmem:[#allocation3 + $0xf0] ss:$28 sps:$4 sm:$0xff]  }
 0x14e   :  { %2989 = vmatpush2.bf16.msra.mxu0 %v6867_v2  ;;  %v6960_v2 = vld [vmem:[#allocation3 + $0x470] ss:$28 sps:$4 sm:$0xff]  }
 0x14f   :  { %3016 = vmatpush1.bf16.msra.mxu1 %v6870_v3  ;;  %2990 = vmatprep.subr.bf16.mxu0 %v6875_v37  ;;  %v6965_v3 = vld [vmem:[#allocation3 + $0xbc] ss:$28 sps:$4 sm:$0xff]  }
 0x150   :  { %3017 = vmatprep.subr.bf16.mxu1 %v6878_v4  ;;  %v6968_v37 = vld [vmem:[#allocation3 + $0x43c] ss:$28 sps:$4 sm:$0xff]   ;;  %v662_v4 = vlaneseq }
 0x152   :  { %2991 = vmatpush2.bf16.msra.mxu0 %v6873_v5  ;;  %v6963_v5 = vld [vmem:[#allocation3 + $0xb8] ss:$28 sps:$4 sm:$0xff]  }
 0x153   :  { %3018 = vmatpush1.bf16.msra.mxu1 %v6876_v6  ;;  %2992 = vmatprep.subr.bf16.mxu0 %v6881_v8  ;;  %v6966_v6 = vld [vmem:[#allocation3 + $0x438] ss:$28 sps:$4 sm:$0xff]   ;;  %v6971_v8 = vld [vmem:[#allocation3 + $0x84] ss:$28 sps:$4 sm:$0xff]  }
 0x154   :  { %3019 = vmatprep.subr.bf16.mxu1 %v6884_v9  ;;  %v6974_v9 = vld [vmem:[#allocation3 + $0x404] ss:$28 sps:$4 sm:$0xff]  }
 0x156   :  { %2993 = vmatpush2.bf16.msra.mxu0 %v6879_v11  ;;  %v6969_v11 = vld [vmem:[#allocation3 + $0x80] ss:$28 sps:$4 sm:$0xff]  }
 0x157   :  { %3020 = vmatpush1.bf16.msra.mxu1 %v6882_v12  ;;  %2994 = vmatprep.subr.bf16.mxu0 %v6887_v13  ;;  %v7921_v12 = vshrl.u32 %v662_v4, 7  ;;  %v6972_v13 = vld [vmem:[#allocation3 + $0x400] ss:$28 sps:$4 sm:$0xff]  }
 0x158   :  { %3021 = vmatprep.subr.bf16.mxu1 %v6890_v14  ;;  %v6977_v14 = vld [vmem:[#allocation3 + $0x4c] ss:$28 sps:$4 sm:$0xff]   ;;  %v7040_v4 = vld [vmem:[#allocation3 + $0xc1c] ss:$28 sps:$4 sm:$0xff]  }
 0x15a   :  { %2995 = vmatpush2.bf16.msra.mxu0 %v6885_v16  ;;  %v6980_v16 = vld [vmem:[#allocation3 + $0x3cc] ss:$28 sps:$4 sm:$0xff]  }
 0x15b   :  { %3022 = vmatpush1.bf16.msra.mxu1 %v6888_v17  ;;  %3050 = vmatprep.subr.bf16.mxu0 %v6896_v19  ;;  %v6975_v17 = vld [vmem:[#allocation3 + $0x48] ss:$28 sps:$4 sm:$0xff]   ;;  %v6983_v19 = vld [vmem:[#allocation3 + $0x14] ss:$28 sps:$4 sm:$0xff]  }
 0x15c   :  { %3023 = vmatprep.subr.bf16.mxu1 %v6893_v18  ;;  %v6978_v18 = vld [vmem:[#allocation3 + $0x3c8] ss:$28 sps:$4 sm:$0xff]  }
 0x15d   :  { %2997 = vmatmul.mubr.bf16.vlgmr.msra.gmra.mxu0 %v7881_v10  ;;  %v6912_v10 = vld [vmem:[#allocation3 + $0xb68] ss:$28 sps:$4 sm:$0xff]  }
 0x15e   :  { %3051 = vmatpush1.bf16.msra.mxu0 %v6894_v21  ;;  %3082 = vmatprep.mubr.bf16.mxu0 %v7725_v1  ;;  %v6981_v21 = vld [vmem:[#allocation3 + $0x10] ss:$28 sps:$4 sm:$0xff]  }
 0x15f   :  { %3024 = vmatpush2.bf16.msra.mxu1 %v6891_v20  ;;  %3052 = vmatprep.subr.bf16.mxu0 %v6902_v23  ;;  %v6986_v20 = vld [vmem:[#allocation3 + $0x394] ss:$28 sps:$4 sm:$0xff]   ;;  %v7923_v23 = vld [vmem:[#allocation5] sm:$0xff] }
 0x160   :  { %3025 = vmatprep.subr.bf16.mxu1 %v6899_v22  ;;  %v6984_v22 = vld [vmem:[#allocation3 + $0x390] ss:$28 sps:$4 sm:$0xff]  }
 0x162   :  { %3053 = vmatpush1.bf16.msra.mxu0 %v6900_v25  ;;  %v6989_v25 = vld [vmem:[#allocation3 + $0x35c] ss:$28 sps:$4 sm:$0xff]  }
 0x163   :  { %3026 = vmatpush2.bf16.msra.mxu1 %v6897_v24  ;;  %3054 = vmatprep.subr.bf16.mxu0 %v6908_v27  ;;  %v664_v24 = vsub.s32 0, %v7921_v12  ;;  %v6987_v27 = vld [vmem:[#allocation3 + $0x358] ss:$28 sps:$4 sm:$0xff]  }
 0x164   :  { %3027 = vmatprep.subr.bf16.mxu1 %v6905_v26  ;;  %v6992_v26 = vld [vmem:[#allocation3 + $0x6dc] ss:$28 sps:$4 sm:$0xff]  }
 0x166   :  { %3055 = vmatpush1.bf16.msra.mxu0 %v6906_v29  ;;  %v665_v29 = vrot.slane %v7923_v23, %v664_v24 }
 0x167   :  { %3028 = vmatpush2.bf16.msra.mxu1 %v6903_v28  ;;  %3056 = vmatprep.subr.bf16.mxu0 %v6914_v31  ;;  %v6990_v28 = vld [vmem:[#allocation3 + $0x6d8] ss:$28 sps:$4 sm:$0xff]   ;;  %v6998_v31 = vld [vmem:[#allocation3 + $0x6a4] ss:$28 sps:$4 sm:$0xff]  }
 0x168   :  { %3029 = vmatprep.subr.bf16.mxu1 %v6911_v30  ;;  %v6995_v30 = vld [vmem:[#allocation3 + $0x324] ss:$28 sps:$4 sm:$0xff]  }
 0x16a   :  { %3057 = vmatpush1.bf16.msra.mxu0 %v6912_v10 }
 0x16b   :  { %3030 = vmatpush2.bf16.msra.mxu1 %v6909_v32  ;;  %3058 = vmatprep.subr.bf16.mxu0 %v6920_v33  ;;  %v6993_v32 = vld [vmem:[#allocation3 + $0x320] ss:$28 sps:$4 sm:$0xff]  }
 0x16c   :  { %3031 = vmatprep.subr.bf16.mxu1 %v6917_v52  ;;  %v6996_v33 = vld [vmem:[#allocation3 + $0x6a0] ss:$28 sps:$4 sm:$0xff]  }
 0x16e   :  { %3059 = vmatpush1.bf16.msra.mxu0 %v6918_v35  ;;  %v7001_v35 = vld [vmem:[#allocation3 + $0x2ec] ss:$28 sps:$4 sm:$0xff]  }
 0x16f   :  { %3032 = vmatpush2.bf16.msra.mxu1 %v6915_v34  ;;  %3060 = vmatprep.subr.bf16.mxu0 %v6926_v38 }
 0x170   :  { %3033 = vmatprep.subr.bf16.mxu1 %v6923_v36 }
 0x172   :  { %3061 = vmatpush1.bf16.msra.mxu0 %v6924_v40 }
 0x173   :  { %3034 = vmatpush2.bf16.msra.mxu1 %v6921_v39  ;;  %3062 = vmatprep.subr.bf16.mxu0 %v6932_v42  ;;  %v7004_v39 = vld [vmem:[#allocation3 + $0x66c] ss:$28 sps:$4 sm:$0xff]  }
 0x174   :  { %3035 = vmatprep.subr.bf16.mxu1 %v6929_v41  ;;  %v6999_v41 = vld [vmem:[#allocation3 + $0x2e8] ss:$28 sps:$4 sm:$0xff]  }
 0x176   :  { %3063 = vmatpush1.bf16.msra.mxu0 %v6930_v45  ;;  %v7002_v45 = vld [vmem:[#allocation3 + $0x668] ss:$28 sps:$4 sm:$0xff]  }
 0x177   :  { %3036 = vmatpush2.bf16.msra.mxu1 %v6927_v44  ;;  %3064 = vmatprep.subr.bf16.mxu0 %v6938_v47  ;;  %v7007_v47 = vld [vmem:[#allocation3 + $0x2b4] ss:$28 sps:$4 sm:$0xff]  }
 0x178   :  { %3037 = vmatprep.subr.bf16.mxu1 %v6935_v46 }
 0x17a   :  { %3065 = vmatpush1.bf16.msra.mxu0 %v6936_v49 }
 0x17b   :  { %3038 = vmatpush2.bf16.msra.mxu1 %v6933_v48  ;;  %3093 = vmatprep.subr.bf16.mxu0 %v6941_v50  ;;  %v7010_v48 = vld [vmem:[#allocation3 + $0x634] ss:$28 sps:$4 sm:$0xff]  }
 0x17c   :  { %3136 = vmatprep.subr.bf16.mxu1 %v6944_v53  ;;  %v7005_v50 = vld [vmem:[#allocation3 + $0x2b0] ss:$28 sps:$4 sm:$0xff]  }
 0x17d   :  { %3083 = vmatmul.mubr.bf16.vlgmr.msra.gmra.mxu0 %v7895_v43  ;;  %v7445_v43 = vld [vmem:[%s8141_s0 + $0xc] ss:$28 sps:$4 sm:$0xff]  }
 0x17e   :  { %3040 = vmatmul.mubr.bf16.vlgmr.msra.gmra.mxu1 %v7902_v15  ;;  %3094 = vmatpush1.bf16.msra.mxu0 %v6939_v54  ;;  %v6954_v15 = vld [vmem:[#allocation3 + $0x4a8] ss:$28 sps:$4 sm:$0xff]   ;;  %v7008_v53 = vld [vmem:[#allocation3 + $0x630] ss:$28 sps:$4 sm:$0xff]   ;;  %v7013_v54 = vld [vmem:[#allocation3 + $0x27c] ss:$28 sps:$4 sm:$0xff]  }
 0x17f   :  { %3137 = vmatpush1.bf16.msra.mxu1 %v6942_v55  ;;  %3095 = vmatprep.subr.bf16.mxu0 %v6947_v56  ;;  %v7016_v55 = vld [vmem:[#allocation3 + $0x5fc] ss:$28 sps:$4 sm:$0xff]  }
 0x180   :  { %3138 = vmatprep.subr.bf16.mxu1 %v6950_v57  ;;  %3125 = vmatprep.mubr.bf16.mxu0 %v7915_v62  ;;  %v7011_v56 = vld [vmem:[#allocation3 + $0x278] ss:$28 sps:$4 sm:$0xff]  }
 0x181   :  { %3168 = vmatprep.mubr.bf16.mxu1 %v7445_v43  ;;  %v7014_v57 = vld [vmem:[#allocation3 + $0x5f8] ss:$28 sps:$4 sm:$0xff]   ;;  %v7028_v43 = vld [vmem:[#allocation3 + $0x58c] ss:$28 sps:$4 sm:$0xff]  }
 0x182   :  { %3096 = vmatpush1.bf16.msra.mxu0 %v6945_v58  ;;  %v7019_v58 = vld [vmem:[#allocation3 + $0x244] ss:$28 sps:$4 sm:$0xff]  }
 0x183   :  { %3139 = vmatpush1.bf16.msra.mxu1 %v6948_v59  ;;  %3097 = vmatprep.subr.bf16.mxu0 %v6953_v60  ;;  %v7022_v59 = vld [vmem:[#allocation3 + $0x5c4] ss:$28 sps:$4 sm:$0xff]  }
 0x184   :  { %3140 = vmatprep.subr.bf16.mxu1 %v6956_v61  ;;  %v7017_v60 = vld [vmem:[#allocation3 + $0x240] ss:$28 sps:$4 sm:$0xff]  }
 0x185   :  { %v7020_v61 = vld [vmem:[#allocation3 + $0x5c0] ss:$28 sps:$4 sm:$0xff]  }
 0x186   :  { %3098 = vmatpush1.bf16.msra.mxu0 %v6951_v51  ;;  %v7025_v51 = vld [vmem:[#allocation3 + $0x20c] ss:$28 sps:$4 sm:$0xff]  }
 0x187   :  { %3141 = vmatpush1.bf16.msra.mxu1 %v6954_v15  ;;  %3099 = vmatprep.subr.bf16.mxu0 %v6959_v7  ;;  %v7023_v15 = vld [vmem:[#allocation3 + $0x208] ss:$28 sps:$4 sm:$0xff]  }
 0x188   :  { %3142 = vmatprep.subr.bf16.mxu1 %v6962_v63  ;;  %v7026_v7 = vld [vmem:[#allocation3 + $0x588] ss:$28 sps:$4 sm:$0xff]   ;;  %v7031_v63 = vld [vmem:[#allocation3 + $0x1d4] ss:$28 sps:$4 sm:$0xff]  }
 0x18a   :  { %3100 = vmatpush1.bf16.msra.mxu0 %v6957_v0  ;;  %v7034_v0 = vld [vmem:[#allocation3 + $0x554] ss:$28 sps:$4 sm:$0xff]  }
 0x18b   :  { %3143 = vmatpush1.bf16.msra.mxu1 %v6960_v2  ;;  %3101 = vmatprep.subr.bf16.mxu0 %v6965_v3  ;;  %v7029_v2 = vld [vmem:[#allocation3 + $0x1d0] ss:$28 sps:$4 sm:$0xff]  }
 0x18c   :  { %3144 = vmatprep.subr.bf16.mxu1 %v6968_v37  ;;  %v7032_v3 = vld [vmem:[#allocation3 + $0x550] ss:$28 sps:$4 sm:$0xff]   ;;  %v7037_v37 = vld [vmem:[#allocation3 + $0x89c] ss:$28 sps:$4 sm:$0xff]  }
 0x18e   :  { %3102 = vmatpush1.bf16.msra.mxu0 %v6963_v5  ;;  %v7035_v5 = vld [vmem:[#allocation3 + $0x898] ss:$28 sps:$4 sm:$0xff]  }
 0x18f   :  { %3145 = vmatpush1.bf16.msra.mxu1 %v6966_v6  ;;  %3103 = vmatprep.subr.bf16.mxu0 %v6971_v8  ;;  %v7038_v6 = vld [vmem:[#allocation3 + $0xc18] ss:$28 sps:$4 sm:$0xff]   ;;  %v7043_v8 = vld [vmem:[#allocation3 + $0x864] ss:$28 sps:$4 sm:$0xff]  }
 0x190   :  { %3146 = vmatprep.subr.bf16.mxu1 %v6974_v9  ;;  %v7046_v9 = vld [vmem:[#allocation3 + $0xbe4] ss:$28 sps:$4 sm:$0xff]  }
 0x192   :  { %3104 = vmatpush1.bf16.msra.mxu0 %v6969_v11  ;;  %v7940_v11 = vld [vmem:[%s8141_s0] ss:$28 sps:$4 sm:$0xff]  }
 0x193   :  { %3147 = vmatpush1.bf16.msra.mxu1 %v6972_v13  ;;  %3105 = vmatprep.subr.bf16.mxu0 %v6977_v14  ;;  %v7946_v13 = vld [vmem:[%s8141_s0 + $0x8] ss:$28 sps:$4 sm:$0xff]  }
 0x194   :  { %3148 = vmatprep.subr.bf16.mxu1 %v6980_v16  ;;  %v7041_v14 = vld [vmem:[#allocation3 + $0x860] ss:$28 sps:$4 sm:$0xff]  }
 0x195   :  { %v7044_v16 = vld [vmem:[#allocation3 + $0xbe0] ss:$28 sps:$4 sm:$0xff]  }
 0x196   :  { %3106 = vmatpush1.bf16.msra.mxu0 %v6975_v17  ;;  %v7049_v17 = vld [vmem:[#allocation3 + $0x82c] ss:$28 sps:$4 sm:$0xff]  }
 0x197   :  { %3149 = vmatpush1.bf16.msra.mxu1 %v6978_v18  ;;  %3107 = vmatprep.subr.bf16.mxu0 %v6983_v19  ;;  %v7052_v18 = vld [vmem:[#allocation3 + $0xbac] ss:$28 sps:$4 sm:$0xff]  }
 0x198   :  { %3150 = vmatprep.subr.bf16.mxu1 %v6986_v20  ;;  %v7953_v19 = vld [vmem:[%s8141_s0 + $0x14] ss:$28 sps:$4 sm:$0xff]   ;;  %v7047_v20 = vld [vmem:[#allocation3 + $0x828] ss:$28 sps:$4 sm:$0xff]  }
 0x19a   :  { %3108 = vmatpush1.bf16.msra.mxu0 %v6981_v21  ;;  %v7050_v21 = vld [vmem:[#allocation3 + $0xba8] ss:$28 sps:$4 sm:$0xff]  }
 0x19b   :  { %3151 = vmatpush1.bf16.msra.mxu1 %v6984_v22  ;;  %3109 = vmatprep.subr.bf16.mxu0 %v6989_v25  ;;  %v7055_v22 = vld [vmem:[#allocation3 + $0x7f4] ss:$28 sps:$4 sm:$0xff]  }
 0x19c   :  { %3152 = vmatprep.subr.bf16.mxu1 %v6992_v26  ;;  %v7058_v25 = vld [vmem:[#allocation3 + $0xb74] ss:$28 sps:$4 sm:$0xff]  }
 0x19d   :  { %v2783_v10 = vpop.f32.mrf.mxu0  ;;  %v7053_v26 = vld [vmem:[#allocation3 + $0x7f0] ss:$28 sps:$4 sm:$0xff]  }
 0x19e   :  { %v2826_v52 = vpop.f32.mrf.mxu1  ;;  %v2784_v34 = vadd.f32 %v2783_v10, %v665_v29  ;;  %3110 = vmatpush2.bf16.msra.mxu0 %v6987_v27  ;;  %v7056_v27 = vld [vmem:[#allocation3 + $0xb70] ss:$28 sps:$4 sm:$0xff]   ;;  %v7070_v10 = vld [vmem:[#allocation3 + $0xb04] ss:$28 sps:$4 sm:$0xff]  }
 0x19f   :  { %3153 = vmatpush2.bf16.msra.mxu1 %v6990_v28  ;;  %v7929_v36 = vpop.f32.mrf.mxu0  ;;  %3111 = vmatprep.subr.bf16.mxu0 %v6995_v30  ;;  %v7061_v28 = vld [vmem:[#allocation3 + $0x7bc] ss:$28 sps:$4 sm:$0xff]  }
 0x1a0   :  { %v7931_v38 = vpop.f32.mrf.mxu1  ;;  %3154 = vmatprep.subr.bf16.mxu1 %v6998_v31  ;;  %v7933_v40 = vadd.f32 %v2826_v52, %v2784_v34  ;;  %v7059_v30 = vld [vmem:[#allocation3 + $0x7b8] ss:$28 sps:$4 sm:$0xff]   ;;  %v7065_v52 = vld [vmem:[#allocation3 + $0x780] ss:$28 sps:$4 sm:$0xff]   ;;  %v7073_v34 = vld [vmem:[#allocation3 + $0x74c] ss:$28 sps:$4 sm:$0xff]  }
 0x1a1   :  { %v2787_v42 = vpop.f32.mrf.mxu0  ;;  %v7062_v31 = vld [vmem:[#allocation3 + $0xb38] ss:$28 sps:$4 sm:$0xff]  }
 0x1a2   :  { %v2830_v44 = vpop.f32.mrf.mxu1  ;;  %v2788_v46 = vadd.f32 %v2787_v42, %v665_v29  ;;  %3112 = vmatpush2.bf16.msra.mxu0 %v6993_v32  ;;  %v7064_v29 = vld [vmem:[#allocation3 + $0xb3c] ss:$28 sps:$4 sm:$0xff]   ;;  %v7067_v32 = vld [vmem:[#allocation3 + $0x784] ss:$28 sps:$4 sm:$0xff]   ;;  %v7079_v42 = vld [vmem:[#allocation3 + $0x714] ss:$28 sps:$4 sm:$0xff]  }
 0x1a3   :  { %3155 = vmatpush2.bf16.msra.mxu1 %v6996_v33  ;;  %3113 = vmatprep.subr.bf16.mxu0 %v7001_v35  ;;  %v7068_v33 = vld [vmem:[#allocation3 + $0xb00] ss:$28 sps:$4 sm:$0xff]   ;;  %v7076_v35 = vld [vmem:[#allocation3 + $0xacc] ss:$28 sps:$4 sm:$0xff]  }
 0x1a4   :  { %3156 = vmatprep.subr.bf16.mxu1 %v7004_v39  ;;  %v7935_v49 = vadd.f32 %v2830_v44, %v2788_v46  ;;  %v7071_v39 = vld [vmem:[#allocation3 + $0x748] ss:$28 sps:$4 sm:$0xff]   ;;  %v7082_v44 = vld [vmem:[#allocation3 + $0xa94] ss:$28 sps:$4 sm:$0xff]  }
 0x1a5   :  { %v7080_v46 = vld [vmem:[#allocation3 + $0xa90] ss:$28 sps:$4 sm:$0xff]  }
 0x1a6   :  { %3114 = vmatpush2.bf16.msra.mxu0 %v6999_v41  ;;  %v7074_v41 = vld [vmem:[#allocation3 + $0xac8] ss:$28 sps:$4 sm:$0xff]  }
 0x1a7   :  { %3157 = vmatpush2.bf16.msra.mxu1 %v7002_v45  ;;  %3115 = vmatprep.subr.bf16.mxu0 %v7007_v47  ;;  %v7077_v45 = vld [vmem:[#allocation3 + $0x710] ss:$28 sps:$4 sm:$0xff]   ;;  %v7085_v47 = vld [vmem:[#allocation3 + $0xa5c] ss:$28 sps:$4 sm:$0xff]  }
 0x1a8   :  { %3158 = vmatprep.subr.bf16.mxu1 %v7010_v48  ;;  %v7086_v48 = vld [vmem:[#allocation3 + $0x360] ss:$28 sps:$4 sm:$0xff]  }
 0x1aa   :  { %3116 = vmatpush2.bf16.msra.mxu0 %v7005_v50  ;;  %v7083_v50 = vld [vmem:[#allocation3 + $0xa58] ss:$28 sps:$4 sm:$0xff]  }
 0x1ab   :  { %3159 = vmatpush2.bf16.msra.mxu1 %v7008_v53  ;;  %3117 = vmatprep.subr.bf16.mxu0 %v7013_v54  ;;  %v7087_v53 = vld [vmem:[#allocation3 + $0x1a0] ss:$28 sps:$4 sm:$0xff]   ;;  %v7956_v54 = vpop.f32.mrf.mxu1 }
 0x1ac   :  { %3160 = vmatprep.subr.bf16.mxu1 %v7016_v55  ;;  %v7090_v55 = vld [vmem:[#allocation3 + $0xa24] ss:$28 sps:$4 sm:$0xff]  }
 0x1ae   :  { %3118 = vmatpush2.bf16.msra.mxu0 %v7011_v56  ;;  %v7091_v56 = vld [vmem:[#allocation3 + $0x328] ss:$28 sps:$4 sm:$0xff]  }
 0x1af   :  { %3161 = vmatpush2.bf16.msra.mxu1 %v7014_v57  ;;  %3119 = vmatprep.subr.bf16.mxu0 %v7019_v58  ;;  %v7958_v57 = vpop.f32.mrf.mxu0 }
 0x1b0   :  { %3162 = vmatprep.subr.bf16.mxu1 %v7022_v59  ;;  %v7088_v59 = vld [vmem:[#allocation3 + $0xa20] ss:$28 sps:$4 sm:$0xff]  }
 0x1b2   :  { %3120 = vmatpush2.bf16.msra.mxu0 %v7017_v60 }
 0x1b3   :  { %3163 = vmatpush2.bf16.msra.mxu1 %v7020_v61  ;;  %3121 = vmatprep.subr.bf16.mxu0 %v7025_v51  ;;  %v7963_v61 = vld [vmem:[%s8141_s0 + $0x18] ss:$28 sps:$4 sm:$0xff]   ;;  %v7092_v51 = vld [vmem:[#allocation3 + $0x168] ss:$28 sps:$4 sm:$0xff]  }
 0x1b4   :  { %3164 = vmatprep.subr.bf16.mxu1 %v7028_v43 }
 0x1b6   :  { %3122 = vmatpush2.bf16.msra.mxu0 %v7023_v15  ;;  %v7095_v15 = vld [vmem:[#allocation3 + $0x9ec] ss:$28 sps:$4 sm:$0xff]  }
 0x1b7   :  { %3165 = vmatpush2.bf16.msra.mxu1 %v7026_v7  ;;  %3123 = vmatprep.subr.bf16.mxu0 %v7031_v63  ;;  %v7096_v7 = vld [vmem:[#allocation3 + $0x2f0] ss:$28 sps:$4 sm:$0xff]  }
 0x1b8   :  { %3166 = vmatprep.subr.bf16.mxu1 %v7034_v0 }
 0x1ba   :  { %3124 = vmatpush2.bf16.msra.mxu0 %v7029_v2 }
 0x1bb   :  { %3167 = vmatpush2.bf16.msra.mxu1 %v7032_v3  ;;  %3179 = vmatprep.subr.bf16.mxu0 %v7037_v37  ;;  %v7093_v3 = vld [vmem:[#allocation3 + $0x9e8] ss:$28 sps:$4 sm:$0xff]   ;;  %v7097_v37 = vld [vmem:[#allocation3 + $0x130] ss:$28 sps:$4 sm:$0xff]  }
 0x1bc   :  { %3222 = vmatprep.subr.bf16.mxu1 %v7040_v4 }
 0x1bd   :  { %3126 = vmatmul.mubr.bf16.vlgmr.msra.gmra.mxu0 %v7940_v11 }
 0x1be   :  { %3169 = vmatmul.mubr.bf16.vlgmr.msra.gmra.mxu1 %v7946_v13  ;;  %3180 = vmatpush1.bf16.msra.mxu0 %v7035_v5  ;;  %v2912_v58 = vpop.f32.mrf.mxu1 }
 0x1bf   :  { %3223 = vmatpush1.bf16.msra.mxu1 %v7038_v6  ;;  %3181 = vmatprep.subr.bf16.mxu0 %v7043_v8  ;;  %v7101_v6 = vld [vmem:[#allocation3 + $0x2b8] ss:$28 sps:$4 sm:$0xff]  }
 0x1c0   :  { %3224 = vmatprep.subr.bf16.mxu1 %v7046_v9  ;;  %3254 = vmatprep.mubr.bf16.mxu1 %v7725_v1  ;;  %v7967_v63 = vpop.f32.mrf.mxu1 }
 0x1c1   :  { %3211 = vmatprep.mubr.bf16.mxu0 %v7953_v19 }
 0x1c2   :  { %3182 = vmatpush1.bf16.msra.mxu0 %v7041_v14  ;;  %v2916_v8 = vpop.f32.mrf.mxu1  ;;  %v7098_v14 = vld [vmem:[#allocation3 + $0x9b0] ss:$28 sps:$4 sm:$0xff]  }
 0x1c3   :  { %3225 = vmatpush1.bf16.msra.mxu1 %v7044_v16  ;;  %3183 = vmatprep.subr.bf16.mxu0 %v7049_v17  ;;  %v7102_v16 = vld [vmem:[#allocation3 + $0xf8] ss:$28 sps:$4 sm:$0xff]  }
 0x1c4   :  { %3226 = vmatprep.subr.bf16.mxu1 %v7052_v18  ;;  %v7105_v17 = vld [vmem:[#allocation3 + $0x97c] ss:$28 sps:$4 sm:$0xff]  }
 0x1c6   :  { %3184 = vmatpush1.bf16.msra.mxu0 %v7047_v20 }
 0x1c7   :  { %3227 = vmatpush1.bf16.msra.mxu1 %v7050_v21  ;;  %3185 = vmatprep.subr.bf16.mxu0 %v7055_v22  ;;  %v7106_v21 = vld [vmem:[#allocation3 + $0x280] ss:$28 sps:$4 sm:$0xff]  }
 0x1c8   :  { %3228 = vmatprep.subr.bf16.mxu1 %v7058_v25  ;;  %v7107_v22 = vld [vmem:[#allocation3 + $0xc0] ss:$28 sps:$4 sm:$0xff]  }
 0x1c9   :  { %v7110_v25 = vld [vmem:[#allocation3 + $0x944] ss:$28 sps:$4 sm:$0xff]  }
 0x1ca   :  { %3186 = vmatpush1.bf16.msra.mxu0 %v7053_v26  ;;  %v7111_v26 = vld [vmem:[#allocation3 + $0x248] ss:$28 sps:$4 sm:$0xff]  }
 0x1cb   :  { %3229 = vmatpush1.bf16.msra.mxu1 %v7056_v27  ;;  %3187 = vmatprep.subr.bf16.mxu0 %v7061_v28  ;;  %v7108_v27 = vld [vmem:[#allocation3 + $0x940] ss:$28 sps:$4 sm:$0xff]   ;;  %v7112_v28 = vld [vmem:[#allocation3 + $0x88] ss:$28 sps:$4 sm:$0xff]  }
 0x1cc   :  { %3230 = vmatprep.subr.bf16.mxu1 %v7064_v29  ;;  %v7115_v29 = vld [vmem:[#allocation3 + $0x90c] ss:$28 sps:$4 sm:$0xff]  }
 0x1ce   :  { %3188 = vmatpush1.bf16.msra.mxu0 %v7059_v30  ;;  %v7116_v30 = vld [vmem:[#allocation3 + $0x210] ss:$28 sps:$4 sm:$0xff]  }
 0x1cf   :  { %3231 = vmatpush1.bf16.msra.mxu1 %v7062_v31  ;;  %3189 = vmatprep.subr.bf16.mxu0 %v7067_v32  ;;  %v7113_v31 = vld [vmem:[#allocation3 + $0x908] ss:$28 sps:$4 sm:$0xff]   ;;  %v7117_v32 = vld [vmem:[#allocation3 + $0x50] ss:$28 sps:$4 sm:$0xff]  }
 0x1d0   :  { %3232 = vmatprep.subr.bf16.mxu1 %v7070_v10  ;;  %v7120_v10 = vld [vmem:[#allocation3 + $0x8d4] ss:$28 sps:$4 sm:$0xff]  }
 0x1d2   :  { %3190 = vmatpush1.bf16.msra.mxu0 %v7065_v52  ;;  %v7121_v52 = vld [vmem:[#allocation3 + $0x1d8] ss:$28 sps:$4 sm:$0xff]  }
 0x1d3   :  { %3233 = vmatpush1.bf16.msra.mxu1 %v7068_v33  ;;  %3191 = vmatprep.subr.bf16.mxu0 %v7073_v34  ;;  %v7118_v33 = vld [vmem:[#allocation3 + $0x8d0] ss:$28 sps:$4 sm:$0xff]   ;;  %v7122_v34 = vld [vmem:[#allocation3 + $0x18] ss:$28 sps:$4 sm:$0xff]  }
 0x1d4   :  { %3234 = vmatprep.subr.bf16.mxu1 %v7076_v35  ;;  %v668_v35 = vsub.s32 1, %v7921_v12 }
 0x1d6   :  { %3192 = vmatpush1.bf16.msra.mxu0 %v7071_v39  ;;  %v7123_v39 = vld [vmem:[#allocation3 + $0x6e0] ss:$28 sps:$4 sm:$0xff]  }
 0x1d7   :  { %3235 = vmatpush1.bf16.msra.mxu1 %v7074_v41  ;;  %3193 = vmatprep.subr.bf16.mxu0 %v7079_v42  ;;  %v7124_v41 = vld [vmem:[#allocation3 + $0xa60] ss:$28 sps:$4 sm:$0xff]  }
 0x1d8   :  { %3236 = vmatprep.subr.bf16.mxu1 %v7082_v44  ;;  %v7125_v42 = vld [vmem:[#allocation3 + $0x520] ss:$28 sps:$4 sm:$0xff]  }
 0x1d9   :  { %v7126_v44 = vld [vmem:[#allocation3 + $0x8a0] ss:$28 sps:$4 sm:$0xff]  }
 0x1da   :  { %3194 = vmatpush1.bf16.msra.mxu0 %v7077_v45  ;;  %v7127_v45 = vld [vmem:[#allocation3 + $0x6a8] ss:$28 sps:$4 sm:$0xff]  }
 0x1db   :  { %3237 = vmatpush1.bf16.msra.mxu1 %v7080_v46  ;;  %3195 = vmatprep.subr.bf16.mxu0 %v7085_v47  ;;  %v7128_v46 = vld [vmem:[#allocation3 + $0xa28] ss:$28 sps:$4 sm:$0xff]   ;;  %v669_v47 = vrot.slane %v7923_v23, %v668_v35 }
 0x1dc   :  { %6242 = vmatprep.subr.bf16.mxu1 %v7086_v48  ;;  %v7129_v48 = vld [vmem:[#allocation3 + $0x4e8] ss:$28 sps:$4 sm:$0xff]  }
 0x1dd   :  { %v2869_v60 = vpop.f32.mrf.mxu0  ;;  %v2790_v23 = vadd.f32 %v7958_v57, %v669_v47 }
 0x1de   :  { %3255 = vmatmul.mubr.bf16.vlgmr.msra.gmra.mxu1 %v7963_v61  ;;  %v2870_v43 = vadd.f32 %v2869_v60, %v7933_v40  ;;  %3196 = vmatpush2.bf16.msra.mxu0 %v7083_v50  ;;  %v7100_v40 = vld [vmem:[#allocation3 + $0x9b4] ss:$28 sps:$4 sm:$0xff]   ;;  %v7130_v50 = vld [vmem:[#allocation3 + $0x868] ss:$28 sps:$4 sm:$0xff]  }
 0x1df   :  { %6243 = vmatpush3.bf16.msra.mxu1 %v7087_v53  ;;  %v7969_v0 = vpop.f32.mrf.mxu0  ;;  %3197 = vmatprep.subr.bf16.mxu0 %v7090_v55  ;;  %v7982_v53 = vld [vmem:[%s8141_s0 + $0x10] ss:$28 sps:$4 sm:$0xff]   ;;  %v2833_v57 = vadd.f32 %v7956_v54, %v2790_v23  ;;  %v7141_v54 = vld [vmem:[#allocation3 + $0x440] ss:$28 sps:$4 sm:$0xff]  }
 0x1e0   :  { %6244 = vmatprep.subr.bf16.mxu1 %v7091_v56  ;;  %v2913_v2 = vadd.f32 %v2912_v58, %v2870_v43  ;;  %3297 = vmatprep.mubr.bf16.mxu1 %v7915_v62  ;;  %v7131_v55 = vld [vmem:[#allocation3 + $0x670] ss:$28 sps:$4 sm:$0xff]   ;;  %v2786_v58 = vadd.f32 %v7929_v36, %v669_v47  ;;  %v7135_v43 = vld [vmem:[#allocation3 + $0x638] ss:$28 sps:$4 sm:$0xff]   ;;  %v7174_v47 = vld [vmem:[#allocation3 + $0xb40] ss:$28 sps:$4 sm:$0xff]  }
 0x1e1   :  { %v2873_v4 = vpop.f32.mrf.mxu0  ;;  %v7132_v56 = vld [vmem:[#allocation3 + $0x9f0] ss:$28 sps:$4 sm:$0xff]  }
 0x1e2   :  { %v2874_v5 = vadd.f32 %v2873_v4, %v7935_v49  ;;  %3198 = vmatpush2.bf16.msra.mxu0 %v7088_v59  ;;  %v3429_v18 = vmax.f32 %v2913_v2, 0.0  ;;  %v7103_v49 = vld [vmem:[#allocation3 + $0x978] ss:$28 sps:$4 sm:$0xff]   ;;  %v7133_v59 = vld [vmem:[#allocation3 + $0x4b0] ss:$28 sps:$4 sm:$0xff]   ;;  %v2829_v36 = vadd.f32 %v7931_v38, %v2786_v58  ;;  %v2918_v4 = vpop.f32.mrf.mxu1 }
 0x1e3   :  { %6245 = vmatpush3.bf16.msra.mxu1 %v7092_v51  ;;  %3199 = vmatprep.subr.bf16.mxu0 %v7095_v15  ;;  %v7134_v60 = vld [vmem:[#allocation3 + $0x830] ss:$28 sps:$4 sm:$0xff]   ;;  %v7136_v15 = vld [vmem:[#allocation3 + $0x9b8] ss:$28 sps:$4 sm:$0xff]  }
 0x1e4   :  { %6246 = vmatprep.subr.bf16.mxu1 %v7096_v7  ;;  %v2917_v9 = vadd.f32 %v2916_v8, %v2874_v5  ;;  %v7451_v51 = vld [vmem:[%s8141_s0 + $0xc] ss:$28 sps:$4 sm:$0xff]   ;;  %v2872_v7 = vadd.f32 %v7969_v0, %v2829_v36  ;;  %v7140_v5 = vld [vmem:[#allocation3 + $0x980] ss:$28 sps:$4 sm:$0xff]  }
 0x1e5   :  { %v7143_v0 = vld [vmem:[#allocation3 + $0x5c8] ss:$28 sps:$4 sm:$0xff]   ;;  %v7179_v23 = vld [vmem:[#allocation7 + $0x18] ss:$12 sps:$4 sm:$0xff]  }
 0x1e6   :  { %v3436_v20 = vmax.f32 %v2917_v9, 0.0  ;;  %3200 = vmatpush2.bf16.msra.mxu0 %v7093_v3  ;;  %v7137_v3 = vld [vmem:[#allocation3 + $0x478] ss:$28 sps:$4 sm:$0xff]   ;;  %v2915_v38 = vadd.f32 %v7967_v63, %v2872_v7  ;;  %v7144_v8 = vld [vmem:[#allocation3 + $0x948] ss:$28 sps:$4 sm:$0xff]  }
 0x1e7   :  { %6247 = vmatpush3.bf16.msra.mxu1 %v7097_v37  ;;  %3201 = vmatprep.subr.bf16.mxu0 %v7100_v40  ;;  %v7138_v37 = vld [vmem:[#allocation3 + $0x7f8] ss:$28 sps:$4 sm:$0xff]   ;;  %v7149_v63 = vld [vmem:[#allocation3 + $0x3d0] ss:$28 sps:$4 sm:$0xff]  }
 0x1e8   :  { %6248 = vmatprep.subr.bf16.mxu1 %v7101_v6  ;;  %v7973_v62 = vpack.c.bf16 %v3436_v20, %v3429_v18  ;;  %v7142_v6 = vld [vmem:[#allocation3 + $0x7c0] ss:$28 sps:$4 sm:$0xff]   ;;  %v3430_v9 = vmax.f32 %v2915_v38, 0.0  ;;  %v7147_v18 = vld [vmem:[#allocation3 + $0x590] ss:$28 sps:$4 sm:$0xff]  }
 0x1e9   :  { %v7148_v20 = vld [vmem:[#allocation3 + $0x910] ss:$28 sps:$4 sm:$0xff]   ;;  %v7189_v36 = vld [vmem:[#allocation7 + $0x16c] ss:$12 sps:$4 sm:$0xff]   ;;  %v7198_v38 = vld [vmem:[#allocation7 + $0x214] ss:$12 sps:$4 sm:$0xff]  }
 0x1ea   :  { %3202 = vmatpush2.bf16.msra.mxu0 %v7098_v14 }
 0x1eb   :  { %6249 = vmatpush3.bf16.msra.mxu1 %v7102_v16  ;;  %3203 = vmatprep.subr.bf16.mxu0 %v7105_v17  ;;  %v7145_v16 = vld [vmem:[#allocation3 + $0x408] ss:$28 sps:$4 sm:$0xff]  }
 0x1ec   :  { %6250 = vmatprep.subr.bf16.mxu1 %v7106_v21  ;;  %v7146_v17 = vld [vmem:[#allocation3 + $0x788] ss:$28 sps:$4 sm:$0xff]   ;;  %v7150_v21 = vld [vmem:[#allocation3 + $0x750] ss:$28 sps:$4 sm:$0xff]  }
 0x1ee   :  { %3204 = vmatpush2.bf16.msra.mxu0 %v7103_v49  ;;  %v7151_v49 = vld [vmem:[#allocation3 + $0x558] ss:$28 sps:$4 sm:$0xff]  }
 0x1ef   :  { %6251 = vmatpush3.bf16.msra.mxu1 %v7107_v22  ;;  %3205 = vmatprep.subr.bf16.mxu0 %v7110_v25  ;;  %v7152_v22 = vld [vmem:[#allocation3 + $0x8d8] ss:$28 sps:$4 sm:$0xff]  }
 0x1f0   :  { %6252 = vmatprep.subr.bf16.mxu1 %v7111_v26  ;;  %v7153_v25 = vld [vmem:[#allocation3 + $0x398] ss:$28 sps:$4 sm:$0xff]  }
 0x1f1   :  { %v7154_v26 = vld [vmem:[#allocation3 + $0x718] ss:$28 sps:$4 sm:$0xff]  }
 0x1f2   :  { %3206 = vmatpush2.bf16.msra.mxu0 %v7108_v27  ;;  %v7157_v27 = vld [vmem:[#allocation7 + $0xac] ss:$12 sps:$4 sm:$0xff]  }
 0x1f3   :  { %6253 = vmatpush3.bf16.msra.mxu1 %v7112_v28  ;;  %3207 = vmatprep.subr.bf16.mxu0 %v7115_v29  ;;  %v7155_v28 = vld [vmem:[#allocation7 + $0xa8] ss:$12 sps:$4 sm:$0xff]  }
 0x1f4   :  { %6254 = vmatprep.subr.bf16.mxu1 %v7116_v30  ;;  %v7158_v29 = vld [vmem:[#allocation3 + $0xc20] ss:$28 sps:$4 sm:$0xff]  }
 0x1f5   :  { %v7161_v30 = vld [vmem:[#allocation7 + $0x94] ss:$12 sps:$4 sm:$0xff]  }
 0x1f6   :  { %3208 = vmatpush2.bf16.msra.mxu0 %v7113_v31  ;;  %v7726_v31 = vmov 0.0  }
 0x1f7   :  { %6255 = vmatpush3.bf16.msra.mxu1 %v7117_v32  ;;  %3209 = vmatprep.subr.bf16.mxu0 %v7120_v10  ;;  %v7159_v32 = vld [vmem:[#allocation7 + $0x90] ss:$12 sps:$4 sm:$0xff]  }
 0x1f8   :  { %6256 = vmatprep.subr.bf16.mxu1 %v7121_v52  ;;  %v7162_v10 = vld [vmem:[#allocation3 + $0xbe8] ss:$28 sps:$4 sm:$0xff]  }
 0x1fa   :  { %3210 = vmatpush2.bf16.msra.mxu0 %v7118_v33  ;;  %v7165_v33 = vld [vmem:[#allocation7 + $0x7c] ss:$12 sps:$4 sm:$0xff]  }
 0x1fb   :  { %6257 = vmatpush3.bf16.msra.mxu1 %v7122_v34  ;;  %6264 = vmatprep.subr.bf16.mxu0 %v7123_v39  ;;  %v7163_v34 = vld [vmem:[#allocation7 + $0x78] ss:$12 sps:$4 sm:$0xff]  }
 0x1fc   :  { %6286 = vmatprep.subr.bf16.mxu1 %v7124_v41  ;;  %v7166_v39 = vld [vmem:[#allocation3 + $0xbb0] ss:$28 sps:$4 sm:$0xff]  }
 0x1fd   :  { %3212 = vmatmul.mubr.bf16.vlgmr.msra.gmra.mxu0 %v7982_v53  ;;  %v7169_v41 = vld [vmem:[#allocation7 + $0x64] ss:$12 sps:$4 sm:$0xff]  }
 0x1fe   :  { %3298 = vmatmul.mubr.bf16.vlgmr.msra.gmra.mxu1 %v7940_v11  ;;  %6265 = vmatpush3.bf16.msra.mxu0 %v7125_v42  ;;  %v2875_v11 = vpop.f32.mrf.mxu0  ;;  %v7167_v42 = vld [vmem:[#allocation7 + $0x60] ss:$12 sps:$4 sm:$0xff]  }
 0x1ff   :  { %6287 = vmatpush3.bf16.msra.mxu1 %v7126_v44  ;;  %6266 = vmatprep.subr.bf16.mxu0 %v7127_v45  ;;  %v2876_v2 = vadd.f32 %v2875_v11, %v2833_v57  ;;  %v7170_v44 = vld [vmem:[#allocation3 + $0xb78] ss:$28 sps:$4 sm:$0xff]  }
 0x200   :  { %6288 = vmatprep.subr.bf16.mxu1 %v7128_v46  ;;  %3338 = vmatprep.mubr.bf16.mxu0 %v7451_v51  ;;  %v7173_v45 = vld [vmem:[#allocation7 + $0x4c] ss:$12 sps:$4 sm:$0xff]   ;;  %v7171_v46 = vld [vmem:[#allocation7 + $0x48] ss:$12 sps:$4 sm:$0xff]  }
 0x201   :  { %3379 = vmatprep.mubr.bf16.mxu1 %v7953_v19  ;;  %v7139_v19 = vld [vmem:[#allocation3 + $0x600] ss:$28 sps:$4 sm:$0xff]   ;;  %v2919_v40 = vadd.f32 %v2918_v4, %v2876_v2 }
 0x202   :  { %6267 = vmatpush3.bf16.msra.mxu0 %v7129_v48  ;;  %v7177_v48 = vld [vmem:[#allocation7 + $0x34] ss:$12 sps:$4 sm:$0xff]   ;;  %v7192_v57 = vld [vmem:[#allocation7 + $0x22c] ss:$12 sps:$4 sm:$0xff]  }
 0x203   :  { %6289 = vmatpush3.bf16.msra.mxu1 %v7130_v50  ;;  %6268 = vmatprep.subr.bf16.mxu0 %v7131_v55  ;;  %v3437_v14 = vmax.f32 %v2919_v40, 0.0  ;;  %v7175_v50 = vld [vmem:[#allocation7 + $0x30] ss:$12 sps:$4 sm:$0xff]   ;;  %v7187_v4 = vld [vmem:[#allocation7 + $0x168] ss:$12 sps:$4 sm:$0xff]  }
 0x204   :  { %6290 = vmatprep.subr.bf16.mxu1 %v7132_v56  ;;  %v7181_v55 = vld [vmem:[#allocation7 + $0x1c] ss:$12 sps:$4 sm:$0xff]   ;;  %v8009_v56 = vpop.f32.mrf.mxu1 }
 0x205   :  { %v7999_v52 = vpack.c.bf16 %v3437_v14, %v3430_v9 }
 0x206   :  { %6269 = vmatpush3.bf16.msra.mxu0 %v7133_v59  ;;  %v7182_v59 = vld [vmem:[#allocation3 + $0xad0] ss:$28 sps:$4 sm:$0xff]   ;;  %v2957_v51 = vpop.f32.mrf.mxu1 }
 0x207   :  { %6291 = vmatpush3.bf16.msra.mxu1 %v7134_v60  ;;  %6270 = vmatprep.subr.bf16.mxu0 %v7135_v43  ;;  %v7185_v60 = vld [vmem:[#allocation7 + $0x4] ss:$12 sps:$4 sm:$0xff]   ;;  %v7183_v43 = vld [vmem:[#allocation7] ss:$12 sps:$4 sm:$0xff]  }
 0x208   :  { %6292 = vmatprep.subr.bf16.mxu1 %v7136_v15  ;;  %v7186_v15 = vld [vmem:[#allocation3 + $0xa98] ss:$28 sps:$4 sm:$0xff]   ;;  %v8015_v7 = vpop.f32.mrf.mxu1 }
 0x20a   :  { %6271 = vmatpush3.bf16.msra.mxu0 %v7137_v3  ;;  %v8020_v3 = vld [vmem:[#allocation5] sm:$0xff]  ;;  %v2961_v40 = vpop.f32.mrf.mxu1 }
 0x20b   :  { %6293 = vmatpush3.bf16.msra.mxu1 %v7138_v37  ;;  %6272 = vmatprep.subr.bf16.mxu0 %v7139_v19  ;;  %v7190_v19 = vld [vmem:[#allocation7 + $0x228] ss:$12 sps:$4 sm:$0xff]  }
 0x20c   :  { %6294 = vmatprep.subr.bf16.mxu1 %v7140_v5  ;;  %v7195_v5 = vld [vmem:[#allocation7 + $0x154] ss:$12 sps:$4 sm:$0xff]  }
 0x20e   :  { %6273 = vmatpush3.bf16.msra.mxu0 %v7141_v54 }
 0x20f   :  { %6295 = vmatpush3.bf16.msra.mxu1 %v7142_v6  ;;  %6274 = vmatprep.subr.bf16.mxu0 %v7143_v0  ;;  %v7193_v0 = vld [vmem:[#allocation7 + $0x150] ss:$12 sps:$4 sm:$0xff]  }
 0x210   :  { %6296 = vmatprep.subr.bf16.mxu1 %v7144_v8  ;;  %v7196_v8 = vld [vmem:[#allocation7 + $0x210] ss:$12 sps:$4 sm:$0xff]  }
 0x212   :  { %6275 = vmatpush3.bf16.msra.mxu0 %v7145_v16  ;;  %v7201_v16 = vld [vmem:[#allocation7 + $0x13c] ss:$12 sps:$4 sm:$0xff]  }
 0x213   :  { %6297 = vmatpush3.bf16.msra.mxu1 %v7146_v17  ;;  %6276 = vmatprep.subr.bf16.mxu0 %v7147_v18 }
 0x214   :  { %6298 = vmatprep.subr.bf16.mxu1 %v7148_v20 }
 0x216   :  { %6277 = vmatpush3.bf16.msra.mxu0 %v7149_v63  ;;  %v7204_v63 = vld [vmem:[#allocation7 + $0x1fc] ss:$12 sps:$4 sm:$0xff]  }
 0x217   :  { %6299 = vmatpush3.bf16.msra.mxu1 %v7150_v21  ;;  %6278 = vmatprep.subr.bf16.mxu0 %v7151_v49 }
 0x218   :  { %6300 = vmatprep.subr.bf16.mxu1 %v7152_v22 }
 0x21a   :  { %6279 = vmatpush3.bf16.msra.mxu0 %v7153_v25 }
 0x21b   :  { %6301 = vmatpush3.bf16.msra.mxu1 %v7154_v26  ;;  %6450 = vmatprep.subr.bf16.mxu0 %v7726_v31 }
 0x21c   :  { %4587 = vmatprep.subr.bf16.mxu1 %v7157_v27  ;;  %v7199_v27 = vld [vmem:[#allocation7 + $0x138] ss:$12 sps:$4 sm:$0xff]  }
 0x21d   :  { %3339 = vmatmul.mubr.bf16.vlgmr.msra.gmra.mxu0 %v7946_v13  ;;  %v676_v13 = vsub.s32 3, %v7921_v12  ;;  %v8011_v58 = vpop.f32.mrf.mxu0 }
 0x21e   :  { %3380 = vmatmul.mubr.bf16.vlgmr.msra.gmra.mxu1 %v7982_v53  ;;  %6451 = vmatpush3.bf16.msra.mxu0 %v7158_v29  ;;  %v7178_v53 = vld [vmem:[#allocation3 + $0xb08] ss:$28 sps:$4 sm:$0xff]   ;;  %v7207_v29 = vld [vmem:[#allocation7 + $0x124] ss:$12 sps:$4 sm:$0xff]  }
 0x21f   :  { %4588 = vmatpush1.bf16.msra.mxu1 %v7155_v28  ;;  %4619 = vmatprep.mubr.bf16.mxu1 %v7999_v52  ;;  %v3000_v11 = vpop.f32.mrf.mxu0  ;;  %v677_v37 = vrot.slane %v8020_v3, %v676_v13  ;;  %v7208_v13 = vld [vmem:[#allocation7 + $0x1e0] ss:$12 sps:$4 sm:$0xff]  }
 0x220   :  { %6452 = vmatprep.subr.bf16.mxu0 %v7726_v31  ;;  %4589 = vmatprep.subr.bf16.mxu1 %v7161_v30  ;;  %v7210_v30 = vld [vmem:[#allocation7 + $0x1e4] ss:$12 sps:$4 sm:$0xff]  }
 0x221   :  { %6466 = vmatprep.mubr.msk.bf16.mxu0 %vm7727_vm0, %v7726_v31  ;;  %v8017_v2 = vpop.f32.mrf.mxu0  ;;  %v2958_v6 = vadd.f32 %v2957_v51, %v677_v37  ;;  %v2962_v21 = vadd.f32 %v2961_v40, %v677_v37  ;;  %v7223_v51 = vld [vmem:[#allocation7 + $0xd8] ss:$12 sps:$4 sm:$0xff]   ;;  %v7264_v40 = vld [vmem:[#allocation7 + $0x394] ss:$12 sps:$4 sm:$0xff]  }
 0x222   :  { %6453 = vmatpush3.bf16.msra.mxu0 %v7162_v10  ;;  %v7237_v37 = vld [vmem:[#allocation7 + $0x2ec] ss:$12 sps:$4 sm:$0xff]  }
 0x223   :  { %4590 = vmatpush1.bf16.msra.mxu1 %v7159_v32  ;;  %6454 = vmatprep.subr.bf16.mxu0 %v7726_v31  ;;  %v3004_v54 = vpop.f32.mrf.mxu0  ;;  %v3001_v17 = vadd.f32 %v3000_v11, %v2958_v6  ;;  %v7226_v11 = vld [vmem:[#allocation7 + $0x198] ss:$12 sps:$4 sm:$0xff]   ;;  %v7262_v6 = vld [vmem:[#allocation7 + $0x390] ss:$12 sps:$4 sm:$0xff]  }
 0x224   :  { %4591 = vmatprep.subr.bf16.mxu1 %v7165_v33  ;;  %v3005_v26 = vadd.f32 %v3004_v54, %v2962_v21  ;;  %v7238_v54 = vld [vmem:[#allocation7 + $0x2d0] ss:$12 sps:$4 sm:$0xff]   ;;  %v7244_v21 = vld [vmem:[#allocation7 + $0x2a0] ss:$12 sps:$4 sm:$0xff]  }
 0x226   :  { %6455 = vmatpush3.bf16.msra.mxu0 %v7166_v39  ;;  %v7205_v39 = vld [vmem:[#allocation7 + $0x120] ss:$12 sps:$4 sm:$0xff]  }
 0x227   :  { %4592 = vmatpush1.bf16.msra.mxu1 %v7163_v34  ;;  %6456 = vmatprep.subr.bf16.mxu0 %v7726_v31 }
 0x228   :  { %4593 = vmatprep.subr.bf16.mxu1 %v7169_v41  ;;  %v7213_v41 = vld [vmem:[#allocation7 + $0x10c] ss:$12 sps:$4 sm:$0xff]  }
 0x22a   :  { %6457 = vmatpush3.bf16.msra.mxu0 %v7170_v44 }
 0x22b   :  { %4594 = vmatpush1.bf16.msra.mxu1 %v7167_v42  ;;  %6458 = vmatprep.subr.bf16.mxu0 %v7726_v31  ;;  %v7216_v42 = vld [vmem:[#allocation7 + $0x1cc] ss:$12 sps:$4 sm:$0xff]  }
 0x22c   :  { %4595 = vmatprep.subr.bf16.mxu1 %v7173_v45 }
 0x22e   :  { %6459 = vmatpush3.bf16.msra.mxu0 %v7174_v47  ;;  %v7211_v47 = vld [vmem:[#allocation7 + $0x108] ss:$12 sps:$4 sm:$0xff]  }
 0x22f   :  { %4596 = vmatpush1.bf16.msra.mxu1 %v7171_v46  ;;  %6460 = vmatprep.subr.bf16.mxu0 %v7726_v31 }
 0x230   :  { %4597 = vmatprep.subr.bf16.mxu1 %v7177_v48  ;;  %v7214_v48 = vld [vmem:[#allocation7 + $0x1c8] ss:$12 sps:$4 sm:$0xff]  }
 0x232   :  { %6461 = vmatpush3.bf16.msra.mxu0 %v7178_v53  ;;  %v7222_v53 = vld [vmem:[#allocation7 + $0x1b4] ss:$12 sps:$4 sm:$0xff]  }
 0x233   :  { %4598 = vmatpush1.bf16.msra.mxu1 %v7175_v50  ;;  %6462 = vmatprep.subr.bf16.mxu0 %v7726_v31  ;;  %v7219_v50 = vld [vmem:[#allocation7 + $0xf4] ss:$12 sps:$4 sm:$0xff]  }
 0x234   :  { %4599 = vmatprep.subr.bf16.mxu1 %v7181_v55  ;;  %v7217_v55 = vld [vmem:[#allocation7 + $0xf0] ss:$12 sps:$4 sm:$0xff]  }
 0x236   :  { %6463 = vmatpush3.bf16.msra.mxu0 %v7182_v59  ;;  %v7225_v59 = vld [vmem:[#allocation7 + $0xdc] ss:$12 sps:$4 sm:$0xff]  }
 0x237   :  { %4600 = vmatpush1.bf16.msra.mxu1 %v7179_v23  ;;  %6464 = vmatprep.subr.bf16.mxu0 %v7726_v31  ;;  %v7220_v23 = vld [vmem:[#allocation7 + $0x1b0] ss:$12 sps:$4 sm:$0xff]  }
 0x238   :  { %4601 = vmatprep.subr.bf16.mxu1 %v7185_v60  ;;  %v7228_v60 = vld [vmem:[#allocation7 + $0x19c] ss:$12 sps:$4 sm:$0xff]  }
 0x23a   :  { %6465 = vmatpush3.bf16.msra.mxu0 %v7186_v15  ;;  %v7234_v15 = vld [vmem:[#allocation7 + $0x184] ss:$12 sps:$4 sm:$0xff]  }
 0x23b   :  { %4602 = vmatpush1.bf16.msra.mxu1 %v7183_v43  ;;  %4630 = vmatprep.subr.bf16.mxu0 %v7192_v57  ;;  %v7231_v43 = vld [vmem:[#allocation7 + $0xc4] ss:$12 sps:$4 sm:$0xff]   ;;  %v7232_v57 = vld [vmem:[#allocation7 + $0x180] ss:$12 sps:$4 sm:$0xff]  }
 0x23c   :  { %4603 = vmatprep.subr.bf16.mxu1 %v7189_v36  ;;  %v7229_v36 = vld [vmem:[#allocation7 + $0xc0] ss:$12 sps:$4 sm:$0xff]  }
 0x23d   :  { %v8025_v14 = vpop.f32.mrf.mxu0  ;;  %6467 = vmatmul.mubr.bf16.vlgmr.msra.gmra.mxu0 %v7963_v61  ;;  %v7202_v61 = vld [vmem:[#allocation7 + $0x1f8] ss:$12 sps:$4 sm:$0xff]  }
 0x23e   :  { %v8023_v9 = vpop.f32.mrf.mxu1  ;;  %4631 = vmatpush1.bf16.msra.mxu0 %v7190_v19  ;;  %v7235_v19 = vld [vmem:[#allocation7 + $0x2e8] ss:$12 sps:$4 sm:$0xff]  }
 0x23f   :  { %4604 = vmatpush2.bf16.msra.mxu1 %v7187_v4  ;;  %v3086_v20 = vpop.f32.mrf.mxu0  ;;  %4632 = vmatprep.subr.bf16.mxu0 %v7198_v38  ;;  %v7261_v4 = vld [vmem:[#allocation7 + $0x3ac] ss:$12 sps:$4 sm:$0xff]   ;;  %v7240_v38 = vld [vmem:[#allocation7 + $0x2d4] ss:$12 sps:$4 sm:$0xff]  }
 0x240   :  { %v3043_v18 = vpop.f32.mrf.mxu1  ;;  %4605 = vmatprep.subr.bf16.mxu1 %v7195_v5  ;;  %v7259_v5 = vld [vmem:[#allocation7 + $0x3a8] ss:$12 sps:$4 sm:$0xff]  }
 0x241   :  { %v3044_v49 = vadd.f32 %v3043_v18, %v3001_v17  ;;  %v8030_v25 = vpop.f32.mrf.mxu0  ;;  %v7265_v17 = vld [vmem:[#allocation7 + $0x378] ss:$12 sps:$4 sm:$0xff]   ;;  %v672_v18 = vsub.s32 2, %v7921_v12 }
 0x242   :  { %v8028_v22 = vpop.f32.mrf.mxu1  ;;  %4633 = vmatpush1.bf16.msra.mxu0 %v7196_v8  ;;  %v7267_v8 = vld [vmem:[#allocation7 + $0x37c] ss:$12 sps:$4 sm:$0xff]  }
 0x243   :  { %4606 = vmatpush2.bf16.msra.mxu1 %v7193_v0  ;;  %4634 = vmatprep.subr.bf16.mxu0 %v7204_v63  ;;  %v3087_v32 = vadd.f32 %v3086_v20, %v3044_v49  ;;  %v3090_v33 = vpop.f32.mrf.mxu0  ;;  %v7243_v0 = vld [vmem:[#allocation7 + $0x2bc] ss:$12 sps:$4 sm:$0xff]   ;;  %v7246_v20 = vld [vmem:[#allocation7 + $0x2a4] ss:$12 sps:$4 sm:$0xff]   ;;  %v7268_v49 = vld [vmem:[#allocation7 + $0x360] ss:$12 sps:$4 sm:$0xff]  }
 0x244   :  { %v3047_v28 = vpop.f32.mrf.mxu1  ;;  %4607 = vmatprep.subr.bf16.mxu1 %v7201_v16  ;;  %v7241_v16 = vld [vmem:[#allocation7 + $0x2b8] ss:$12 sps:$4 sm:$0xff]  }
 0x245   :  { %v3048_v10 = vadd.f32 %v3047_v28, %v3005_v26  ;;  %v3432_v44 = vmax.f32 %v3087_v32, 0.0  ;;  %v7270_v63 = vld [vmem:[#allocation7 + $0x364] ss:$12 sps:$4 sm:$0xff]   ;;  %v673_v26 = vrot.slane %v8020_v3, %v672_v18  ;;  %v7247_v28 = vld [vmem:[#allocation7 + $0x288] ss:$12 sps:$4 sm:$0xff]  }
 0x246   :  { %4635 = vmatpush1.bf16.msra.mxu0 %v7202_v61  ;;  %v7273_v61 = vld [vmem:[#allocation7 + $0x34c] ss:$12 sps:$4 sm:$0xff]   ;;  %v7252_v32 = vld [vmem:[#allocation7 + $0x274] ss:$12 sps:$4 sm:$0xff]  }
 0x247   :  { %v3091_v34 = vadd.f32 %v3090_v33, %v3048_v10  ;;  %4608 = vmatpush2.bf16.msra.mxu1 %v7199_v27  ;;  %4636 = vmatprep.subr.bf16.mxu0 %v7210_v30  ;;  %v7249_v27 = vld [vmem:[#allocation7 + $0x28c] ss:$12 sps:$4 sm:$0xff]   ;;  %v2960_v30 = vadd.f32 %v8015_v7, %v673_v26  ;;  %v7276_v10 = vld [vmem:[#allocation7 + $0x334] ss:$12 sps:$4 sm:$0xff]   ;;  %v2956_v33 = vadd.f32 %v8009_v56, %v673_v26  ;;  %v7279_v7 = vld [vmem:[#allocation7 + $0x31c] ss:$12 sps:$4 sm:$0xff]  }
 0x248   :  { %4609 = vmatprep.subr.bf16.mxu1 %v7207_v29  ;;  %v7271_v29 = vld [vmem:[#allocation7 + $0x348] ss:$12 sps:$4 sm:$0xff]   ;;  %v7277_v56 = vld [vmem:[#allocation7 + $0x318] ss:$12 sps:$4 sm:$0xff]  }
 0x249   :  { %v3439_v45 = vmax.f32 %v3091_v34, 0.0  ;;  %v3003_v34 = vadd.f32 %v8017_v2, %v2960_v30  ;;  %v7346_v26 = vld [vmem:[#allocation7 + $0x498] ss:$12 sps:$4 sm:$0xff]   ;;  %v7307_v30 = vld [vmem:[#allocation7 + $0x2f0] ss:$12 sps:$4 sm:$0xff]  }
 0x24a   :  { %4637 = vmatpush1.bf16.msra.mxu0 %v7208_v13  ;;  %v7274_v13 = vld [vmem:[#allocation7 + $0x330] ss:$12 sps:$4 sm:$0xff]  }
 0x24b   :  { %v8032_v46 = vpack.c.bf16 %v3439_v45, %v3432_v44  ;;  %4610 = vmatpush2.bf16.msra.mxu1 %v7205_v39  ;;  %4638 = vmatprep.subr.bf16.mxu0 %v7216_v42  ;;  %v7250_v39 = vld [vmem:[#allocation7 + $0x270] ss:$12 sps:$4 sm:$0xff]   ;;  %v3046_v42 = vadd.f32 %v8028_v22, %v3003_v34  ;;  %v7256_v22 = vld [vmem:[#allocation7 + $0x240] ss:$12 sps:$4 sm:$0xff]  }
 0x24c   :  { %4611 = vmatprep.subr.bf16.mxu1 %v7213_v41  ;;  %v2999_v41 = vadd.f32 %v8011_v58, %v2956_v33  ;;  %v7255_v44 = vld [vmem:[#allocation7 + $0x25c] ss:$12 sps:$4 sm:$0xff]  }
 0x24d   :  { %4662 = vmatprep.mubr.bf16.mxu0 %v8032_v46  ;;  %v3089_v2 = vadd.f32 %v8030_v25, %v3046_v42  ;;  %v7321_v25 = vld [vmem:[#allocation7 + $0x528] ss:$12 sps:$4 sm:$0xff]  }
 0x24e   :  { %4639 = vmatpush1.bf16.msra.mxu0 %v7214_v48  ;;  %v3042_v45 = vadd.f32 %v8023_v9, %v2999_v41  ;;  %v7258_v48 = vld [vmem:[#allocation7 + $0x244] ss:$12 sps:$4 sm:$0xff]   ;;  %v7285_v9 = vld [vmem:[#allocation7 + $0x46c] ss:$12 sps:$4 sm:$0xff]  }
 0x24f   :  { %4612 = vmatpush2.bf16.msra.mxu1 %v7211_v47  ;;  %4640 = vmatprep.subr.bf16.mxu0 %v7222_v53  ;;  %v7253_v47 = vld [vmem:[#allocation7 + $0x258] ss:$12 sps:$4 sm:$0xff]   ;;  %v7280_v53 = vld [vmem:[#allocation7 + $0x300] ss:$12 sps:$4 sm:$0xff]  }
 0x250   :  { %4613 = vmatprep.subr.bf16.mxu1 %v7219_v50  ;;  %v7282_v50 = vld [vmem:[#allocation7 + $0x304] ss:$12 sps:$4 sm:$0xff]   ;;  %v3085_v58 = vadd.f32 %v8025_v14, %v3042_v45  ;;  %v7328_v14 = vld [vmem:[#allocation7 + $0x514] ss:$12 sps:$4 sm:$0xff]  }
 0x252   :  { %4641 = vmatpush1.bf16.msra.mxu0 %v7220_v23  ;;  %v7323_v23 = vld [vmem:[#allocation7 + $0x52c] ss:$12 sps:$4 sm:$0xff]  }
 0x253   :  { %4614 = vmatpush2.bf16.msra.mxu1 %v7217_v55  ;;  %4642 = vmatprep.subr.bf16.mxu0 %v7228_v60  ;;  %v3438_v55 = vmax.f32 %v3089_v2, 0.0  ;;  %v7283_v60 = vld [vmem:[#allocation7 + $0x468] ss:$12 sps:$4 sm:$0xff]  }
 0x254   :  { %4615 = vmatprep.subr.bf16.mxu1 %v7225_v59  ;;  %v3431_v59 = vmax.f32 %v3085_v58, 0.0 }
 0x256   :  { %4643 = vmatpush1.bf16.msra.mxu0 %v7226_v11  ;;  %v7288_v11 = vld [vmem:[#allocation7 + $0x454] ss:$12 sps:$4 sm:$0xff]  }
 0x257   :  { %4616 = vmatpush2.bf16.msra.mxu1 %v7223_v51  ;;  %4644 = vmatprep.subr.bf16.mxu0 %v7234_v15  ;;  %v8048_v51 = vpack.c.bf16 %v3438_v55, %v3431_v59  ;;  %v7326_v15 = vld [vmem:[#allocation7 + $0x510] ss:$12 sps:$4 sm:$0xff]  }
 0x258   :  { %4617 = vmatprep.subr.bf16.mxu1 %v7231_v43  ;;  %v7286_v43 = vld [vmem:[#allocation7 + $0x450] ss:$12 sps:$4 sm:$0xff]  }
 0x25a   :  { %4645 = vmatpush1.bf16.msra.mxu0 %v7232_v57  ;;  %v7332_v57 = vld [vmem:[#allocation7 + $0x4fc] ss:$12 sps:$4 sm:$0xff]  }
 0x25b   :  { %4618 = vmatpush2.bf16.msra.mxu1 %v7229_v36  ;;  %4646 = vmatprep.subr.bf16.mxu0 %v7237_v37  ;;  %v7291_v36 = vld [vmem:[#allocation7 + $0x43c] ss:$12 sps:$4 sm:$0xff]   ;;  %v7289_v37 = vld [vmem:[#allocation7 + $0x438] ss:$12 sps:$4 sm:$0xff]  }
 0x25c   :  { %4673 = vmatprep.subr.bf16.mxu1 %v7261_v4  ;;  %v7330_v4 = vld [vmem:[#allocation7 + $0x4f8] ss:$12 sps:$4 sm:$0xff]  }
 0x25e   :  { %4620 = vmatmul.mubr.bf16.vlgmr.msra.gmra.mxu1 %v7973_v62  ;;  %4647 = vmatpush2.bf16.msra.mxu0 %v7235_v19  ;;  %v7294_v19 = vld [vmem:[#allocation7 + $0x424] ss:$12 sps:$4 sm:$0xff]  }
 0x25f   :  { %4674 = vmatpush1.bf16.msra.mxu1 %v7259_v5  ;;  %4648 = vmatprep.subr.bf16.mxu0 %v7240_v38  ;;  %v7336_v5 = vld [vmem:[#allocation7 + $0x4e4] ss:$12 sps:$4 sm:$0xff]   ;;  %v7292_v38 = vld [vmem:[#allocation7 + $0x420] ss:$12 sps:$4 sm:$0xff]  }
 0x260   :  { %4675 = vmatprep.subr.bf16.mxu1 %v7264_v40  ;;  %v7334_v40 = vld [vmem:[#allocation7 + $0x4e0] ss:$12 sps:$4 sm:$0xff]  }
 0x262   :  { %4649 = vmatpush2.bf16.msra.mxu0 %v7238_v54  ;;  %v7297_v54 = vld [vmem:[#allocation7 + $0x40c] ss:$12 sps:$4 sm:$0xff]  }
 0x263   :  { %4676 = vmatpush1.bf16.msra.mxu1 %v7262_v6  ;;  %4650 = vmatprep.subr.bf16.mxu0 %v7243_v0  ;;  %v7340_v6 = vld [vmem:[#allocation7 + $0x4cc] ss:$12 sps:$4 sm:$0xff]   ;;  %v7295_v0 = vld [vmem:[#allocation7 + $0x408] ss:$12 sps:$4 sm:$0xff]  }
 0x264   :  { %4677 = vmatprep.subr.bf16.mxu1 %v7267_v8  ;;  %v7300_v8 = vld [vmem:[#allocation7 + $0x3f4] ss:$12 sps:$4 sm:$0xff]  }
 0x266   :  { %4651 = vmatpush2.bf16.msra.mxu0 %v7241_v16  ;;  %v7344_v16 = vld [vmem:[#allocation7 + $0x4b4] ss:$12 sps:$4 sm:$0xff]  }
 0x267   :  { %4678 = vmatpush1.bf16.msra.mxu1 %v7265_v17  ;;  %4652 = vmatprep.subr.bf16.mxu0 %v7246_v20  ;;  %v7298_v17 = vld [vmem:[#allocation7 + $0x3f0] ss:$12 sps:$4 sm:$0xff]  }
 0x268   :  { %4679 = vmatprep.subr.bf16.mxu1 %v7270_v63  ;;  %v7342_v20 = vld [vmem:[#allocation7 + $0x4b0] ss:$12 sps:$4 sm:$0xff]  }
 0x269   :  { %v7303_v63 = vld [vmem:[#allocation7 + $0x3dc] ss:$12 sps:$4 sm:$0xff]  }
 0x26a   :  { %4653 = vmatpush2.bf16.msra.mxu0 %v7244_v21  ;;  %v7348_v21 = vld [vmem:[#allocation7 + $0x49c] ss:$12 sps:$4 sm:$0xff]  }
 0x26b   :  { %4680 = vmatpush1.bf16.msra.mxu1 %v7268_v49  ;;  %4654 = vmatprep.subr.bf16.mxu0 %v7249_v27  ;;  %v7301_v49 = vld [vmem:[#allocation7 + $0x3d8] ss:$12 sps:$4 sm:$0xff]  }
 0x26c   :  { %4681 = vmatprep.subr.bf16.mxu1 %v7273_v61  ;;  %v7306_v27 = vld [vmem:[#allocation7 + $0x3c4] ss:$12 sps:$4 sm:$0xff]  }
 0x26d   :  { %v7352_v61 = vld [vmem:[#allocation7 + $0x484] ss:$12 sps:$4 sm:$0xff]  }
 0x26e   :  { %4655 = vmatpush2.bf16.msra.mxu0 %v7247_v28  ;;  %v7304_v28 = vld [vmem:[#allocation7 + $0x3c0] ss:$12 sps:$4 sm:$0xff]  }
 0x26f   :  { %4682 = vmatpush1.bf16.msra.mxu1 %v7271_v29  ;;  %4656 = vmatprep.subr.bf16.mxu0 %v7252_v32  ;;  %v7350_v29 = vld [vmem:[#allocation7 + $0x480] ss:$12 sps:$4 sm:$0xff]   ;;  %v7354_v32 = vld [vmem:[#allocation7 + $0x170] ss:$12 sps:$4 sm:$0xff]  }
 0x270   :  { %4683 = vmatprep.subr.bf16.mxu1 %v7276_v10 }
 0x272   :  { %4657 = vmatpush2.bf16.msra.mxu0 %v7250_v39  ;;  %v684_v39 = vsub.s32 5, %v7921_v12 }
 0x273   :  { %4684 = vmatpush1.bf16.msra.mxu1 %v7274_v13  ;;  %4658 = vmatprep.subr.bf16.mxu0 %v7255_v44  ;;  %v680_v13 = vsub.s32 4, %v7921_v12 }
 0x274   :  { %4685 = vmatprep.subr.bf16.mxu1 %v7279_v7  ;;  %v685_v44 = vrot.slane %v8020_v3, %v684_v39  ;;  %v7325_v39 = vld [vmem:[#allocation7 + $0x188] ss:$12 sps:$4 sm:$0xff]  }
 0x275   :  { %v681_v7 = vrot.slane %v8020_v3, %v680_v13 }
 0x276   :  { %4659 = vmatpush2.bf16.msra.mxu0 %v7253_v47 }
 0x277   :  { %4686 = vmatpush1.bf16.msra.mxu1 %v7277_v56  ;;  %4660 = vmatprep.subr.bf16.mxu0 %v7258_v48 }
 0x278   :  { %4687 = vmatprep.subr.bf16.mxu1 %v7282_v50 }
 0x27a   :  { %4661 = vmatpush2.bf16.msra.mxu0 %v7256_v22 }
 0x27b   :  { %4688 = vmatpush1.bf16.msra.mxu1 %v7280_v53  ;;  %4716 = vmatprep.subr.bf16.mxu0 %v7323_v23 }
 0x27c   :  { %4689 = vmatprep.subr.bf16.mxu1 %v7285_v9 }
 0x27d   :  { %4663 = vmatmul.mubr.bf16.vlgmr.msra.gmra.mxu0 %v8048_v51  ;;  %v3127_v33 = vpop.f32.mrf.mxu0 }
 0x27e   :  { %4717 = vmatpush1.bf16.msra.mxu0 %v7321_v25  ;;  %4748 = vmatprep.mubr.bf16.mxu0 %v7725_v1  ;;  %v7338_v1 = vld [vmem:[#allocation7 + $0x4c8] ss:$12 sps:$4 sm:$0xff]   ;;  %v3170_v10 = vpop.f32.mrf.mxu1  ;;  %v3128_v48 = vadd.f32 %v3127_v33, %v681_v7 }
 0x27f   :  { %4690 = vmatpush2.bf16.msra.mxu1 %v7283_v60  ;;  %4718 = vmatprep.subr.bf16.mxu0 %v7328_v14  ;;  %v3129_v41 = vpop.f32.mrf.mxu0 }
 0x280   :  { %4691 = vmatprep.subr.bf16.mxu1 %v7288_v11  ;;  %v3172_v34 = vpop.f32.mrf.mxu1  ;;  %v3130_v2 = vadd.f32 %v3129_v41, %v685_v44  ;;  %v3171_v23 = vadd.f32 %v3170_v10, %v3128_v48  ;;  %v7320_v10 = vld [vmem:[#allocation7 + $0x1a0] ss:$12 sps:$4 sm:$0xff]  }
 0x281   :  { %v3131_v45 = vpop.f32.mrf.mxu0 }
 0x282   :  { %4719 = vmatpush1.bf16.msra.mxu0 %v7326_v15  ;;  %v3174_v42 = vpop.f32.mrf.mxu1  ;;  %v3132_v58 = vadd.f32 %v3131_v45, %v681_v7  ;;  %v3173_v55 = vadd.f32 %v3172_v34, %v3130_v2  ;;  %v7324_v34 = vld [vmem:[#allocation7 + $0x248] ss:$12 sps:$4 sm:$0xff]  }
 0x283   :  { %4692 = vmatpush2.bf16.msra.mxu1 %v7286_v43  ;;  %4720 = vmatprep.subr.bf16.mxu0 %v7332_v57  ;;  %v3133_v50 = vpop.f32.mrf.mxu0 }
 0x284   :  { %4693 = vmatprep.subr.bf16.mxu1 %v7291_v36  ;;  %v3176_v47 = vpop.f32.mrf.mxu1  ;;  %v3134_v9 = vadd.f32 %v3133_v50, %v685_v44  ;;  %v3175_v60 = vadd.f32 %v3174_v42, %v3132_v58  ;;  %v7329_v42 = vld [vmem:[#allocation7 + $0x530] ss:$12 sps:$4 sm:$0xff]   ;;  %v7337_v50 = vld [vmem:[#allocation7 + $0x500] ss:$12 sps:$4 sm:$0xff]  }
 0x286   :  { %4721 = vmatpush1.bf16.msra.mxu0 %v7330_v4  ;;  %v3177_v15 = vadd.f32 %v3176_v47, %v3134_v9  ;;  %v7333_v47 = vld [vmem:[#allocation7 + $0x518] ss:$12 sps:$4 sm:$0xff]  }
 0x287   :  { %4694 = vmatpush2.bf16.msra.mxu1 %v7289_v37  ;;  %4722 = vmatprep.subr.bf16.mxu0 %v7336_v5 }
 0x288   :  { %4695 = vmatprep.subr.bf16.mxu1 %v7294_v19 }
 0x28a   :  { %4723 = vmatpush1.bf16.msra.mxu0 %v7334_v40 }
 0x28b   :  { %4696 = vmatpush2.bf16.msra.mxu1 %v7292_v38  ;;  %4724 = vmatprep.subr.bf16.mxu0 %v7340_v6 }
 0x28c   :  { %4697 = vmatprep.subr.bf16.mxu1 %v7297_v54 }
 0x28e   :  { %4725 = vmatpush1.bf16.msra.mxu0 %v7338_v1 }
 0x28f   :  { %4698 = vmatpush2.bf16.msra.mxu1 %v7295_v0  ;;  %4726 = vmatprep.subr.bf16.mxu0 %v7344_v16  ;;  %v7308_v16 = vld [vmem:[#allocation7 + $0x230] ss:$12 sps:$4 sm:$0xff]  }
 0x290   :  { %4699 = vmatprep.subr.bf16.mxu1 %v7300_v8 }
 0x292   :  { %4727 = vmatpush1.bf16.msra.mxu0 %v7342_v20  ;;  %v7309_v20 = vld [vmem:[#allocation7 + $0x2d8] ss:$12 sps:$4 sm:$0xff]  }
 0x293   :  { %4700 = vmatpush2.bf16.msra.mxu1 %v7298_v17  ;;  %4728 = vmatprep.subr.bf16.mxu0 %v7348_v21  ;;  %v7311_v21 = vld [vmem:[#allocation7 + $0x2c0] ss:$12 sps:$4 sm:$0xff]  }
 0x294   :  { %4701 = vmatprep.subr.bf16.mxu1 %v7303_v63  ;;  %v7310_v63 = vld [vmem:[#allocation7 + $0x218] ss:$12 sps:$4 sm:$0xff]  }
 0x296   :  { %4729 = vmatpush1.bf16.msra.mxu0 %v7346_v26  ;;  %v7313_v26 = vld [vmem:[#allocation7 + $0x2a8] ss:$12 sps:$4 sm:$0xff]  }
 0x297   :  { %4702 = vmatpush2.bf16.msra.mxu1 %v7301_v49  ;;  %4730 = vmatprep.subr.bf16.mxu0 %v7352_v61  ;;  %v7312_v49 = vld [vmem:[#allocation7 + $0x200] ss:$12 sps:$4 sm:$0xff]   ;;  %v7315_v61 = vld [vmem:[#allocation7 + $0x290] ss:$12 sps:$4 sm:$0xff]  }
 0x298   :  { %4703 = vmatprep.subr.bf16.mxu1 %v7306_v27  ;;  %v7314_v27 = vld [vmem:[#allocation7 + $0x1e8] ss:$12 sps:$4 sm:$0xff]  }
 0x29a   :  { %4731 = vmatpush1.bf16.msra.mxu0 %v7350_v29  ;;  %v7317_v29 = vld [vmem:[#allocation7 + $0x278] ss:$12 sps:$4 sm:$0xff]  }
 0x29b   :  { %4704 = vmatpush2.bf16.msra.mxu1 %v7304_v28  ;;  %6317 = vmatprep.subr.bf16.mxu0 %v7354_v32  ;;  %v7316_v28 = vld [vmem:[#allocation7 + $0x1d0] ss:$12 sps:$4 sm:$0xff]  }
 0x29c   :  { %6339 = vmatprep.subr.bf16.mxu1 %v7307_v30  ;;  %v7318_v30 = vld [vmem:[#allocation7 + $0x1b8] ss:$12 sps:$4 sm:$0xff]  }
 0x29e   :  { %v3256_v56 = vpop.f32.mrf.mxu1 }
 0x2a0   :  { %v3258_v22 = vpop.f32.mrf.mxu1 }
 0x2a2   :  { %v3260_v11 = vpop.f32.mrf.mxu1 }
 0x2a4   :  { %v3262_v5 = vpop.f32.mrf.mxu1 }
 0x2bd   :  { %v3213_v53 = vpop.f32.mrf.mxu0 }
 0x2be   :  { %v3214_v14 = vadd.f32 %v3213_v53, %v3171_v23  ;;  %v6258_v32 = vpop.f32.mrf.mxu1  ;;  %v7341_v23 = vld [vmem:[#allocation7 + $0x4e8] ss:$12 sps:$4 sm:$0xff]  }
 0x2bf   :  { %v3215_v59 = vpop.f32.mrf.mxu0 }
 0x2c0   :  { %v3216_v25 = vadd.f32 %v3215_v59, %v3173_v55  ;;  %v3257_v38 = vadd.f32 %v3256_v56, %v3214_v14  ;;  %v6259_v33 = vpop.f32.mrf.mxu1  ;;  %v688_v56 = vsub.s32 6, %v7921_v12 }
 0x2c1   :  { %v3217_v43 = vpop.f32.mrf.mxu0 }
 0x2c2   :  { %v3218_v36 = vadd.f32 %v3217_v43, %v3175_v60  ;;  %v3259_v37 = vadd.f32 %v3258_v22, %v3216_v25  ;;  %v3433_v1 = vmax.f32 %v3257_v38, 0.0  ;;  %v6261_v13 = vpop.f32.mrf.mxu1  ;;  %v689_v58 = vrot.slane %v8020_v3, %v688_v56  ;;  %v7378_v56 = vld [vmem:[#allocation7 + $0x368] ss:$12 sps:$4 sm:$0xff]  }
 0x2c3   :  { %v3219_v57 = vpop.f32.mrf.mxu0  ;;  %v6260_v22 = vadd.f32 %v6259_v33, %v6258_v32  ;;  %v7365_v32 = vld [vmem:[#allocation7 + $0xf8] ss:$12 sps:$4 sm:$0xff]   ;;  %v7368_v33 = vld [vmem:[#allocation7 + $0x20] ss:$12 sps:$4 sm:$0xff]  }
 0x2c4   :  { %v3261_v4 = vadd.f32 %v3260_v11, %v3218_v36  ;;  %v3220_v19 = vadd.f32 %v3219_v57, %v3177_v15  ;;  %v3434_v6 = vmax.f32 %v3259_v37, 0.0  ;;  %v6262_v44 = vpop.f32.mrf.mxu1  ;;  %v7345_v15 = vld [vmem:[#allocation7 + $0x4d0] ss:$12 sps:$4 sm:$0xff]  }
 0x2c5   :  { %v6263_v55 = vadd.f32 %v6262_v44, %v6261_v13  ;;  %v3300_v59 = vadd.f32 %v6260_v22, %v689_v58  ;;  %v7371_v13 = vld [vmem:[#allocation7 + $0x470] ss:$12 sps:$4 sm:$0xff]   ;;  %v7374_v44 = vld [vmem:[#allocation7 + $0x398] ss:$12 sps:$4 sm:$0xff]   ;;  %v7385_v22 = vld [vmem:[#allocation7 + $0x3c8] ss:$12 sps:$4 sm:$0xff]  }
 0x2c6   :  { %v3263_v40 = vadd.f32 %v3262_v5, %v3220_v19  ;;  %v3440_v54 = vmax.f32 %v3261_v4, 0.0  ;;  %v7349_v4 = vld [vmem:[#allocation7 + $0x4b8] ss:$12 sps:$4 sm:$0xff]  }
 0x2c7   :  { %v3303_v11 = vadd.f32 %v6263_v55, %v689_v58  ;;  %v7383_v58 = vld [vmem:[#allocation7 + $0x3e0] ss:$12 sps:$4 sm:$0xff]  }
 0x2c8   :  { %v3441_v0 = vmax.f32 %v3263_v40, 0.0  ;;  %v8058_v17 = vpack.c.bf16 %v3440_v54, %v3433_v1  ;;  %v7388_v55 = vld [vmem:[#allocation10 + $0x38] sm:$0xff]  }
 0x2ca   :  { %v8056_v8 = vpack.c.bf16 %v3441_v0, %v3434_v6  ;;  %v7353_v6 = vld [vmem:[#allocation7 + $0x4a0] ss:$12 sps:$4 sm:$0xff]  }
 0x2cc   :  { %4705 = vmatprep.mubr.bf16.mxu1 %v8056_v8 }
 0x2cd   :  { %4706 = vmatmul.mubr.bf16.vlgmr.msra.gmra.mxu1 %v8058_v17 }
 0x2ce   :  { %6340 = vmatpush3.bf16.msra.mxu1 %v7308_v16  ;;  %4832 = vmatprep.mubr.bf16.mxu1 %v8032_v46  ;;  %v7319_v46 = vld [vmem:[#allocation7 + $0x260] ss:$12 sps:$4 sm:$0xff]  }
 0x2cf   :  { %6341 = vmatprep.subr.bf16.mxu1 %v7309_v20  ;;  %v7355_v20 = vld [vmem:[#allocation7 + $0xb0] ss:$12 sps:$4 sm:$0xff]  }
 0x2d2   :  { %6342 = vmatpush3.bf16.msra.mxu1 %v7310_v63 }
 0x2d3   :  { %6343 = vmatprep.subr.bf16.mxu1 %v7311_v21  ;;  %v7356_v21 = vld [vmem:[#allocation7 + $0x488] ss:$12 sps:$4 sm:$0xff]  }
 0x2d6   :  { %6344 = vmatpush3.bf16.msra.mxu1 %v7312_v49  ;;  %v7357_v49 = vld [vmem:[#allocation7 + $0x158] ss:$12 sps:$4 sm:$0xff]  }
 0x2d7   :  { %6345 = vmatprep.subr.bf16.mxu1 %v7313_v26  ;;  %v7358_v26 = vld [vmem:[#allocation7 + $0x98] ss:$12 sps:$4 sm:$0xff]  }
 0x2da   :  { %6346 = vmatpush3.bf16.msra.mxu1 %v7314_v27  ;;  %v7359_v27 = vld [vmem:[#allocation7 + $0x140] ss:$12 sps:$4 sm:$0xff]  }
 0x2db   :  { %6347 = vmatprep.subr.bf16.mxu1 %v7315_v61  ;;  %v7360_v61 = vld [vmem:[#allocation7 + $0x80] ss:$12 sps:$4 sm:$0xff]  }
 0x2dd   :  { %v6280_v41 = vpop.f32.mrf.mxu0 }
 0x2de   :  { %6348 = vmatpush3.bf16.msra.mxu1 %v7316_v28  ;;  %v6302_v45 = vpop.f32.mrf.mxu1  ;;  %v7361_v28 = vld [vmem:[#allocation7 + $0x128] ss:$12 sps:$4 sm:$0xff]  }
 0x2df   :  { %6349 = vmatprep.subr.bf16.mxu1 %v7317_v29  ;;  %v6281_v7 = vpop.f32.mrf.mxu0  ;;  %v7362_v29 = vld [vmem:[#allocation7 + $0x68] ss:$12 sps:$4 sm:$0xff]  }
 0x2e0   :  { %v6303_v48 = vpop.f32.mrf.mxu1  ;;  %v6282_v9 = vadd.f32 %v6281_v7, %v6280_v41  ;;  %v7372_v41 = vld [vmem:[#allocation7 + $0x3b0] ss:$12 sps:$4 sm:$0xff]   ;;  %v7375_v7 = vld [vmem:[#allocation7 + $0x440] ss:$12 sps:$4 sm:$0xff]  }
 0x2e1   :  { %v6283_v2 = vpop.f32.mrf.mxu0  ;;  %v6304_v43 = vadd.f32 %v6303_v48, %v6302_v45  ;;  %v7376_v45 = vld [vmem:[#allocation7 + $0x380] ss:$12 sps:$4 sm:$0xff]   ;;  %v7380_v48 = vld [vmem:[#allocation7 + $0x350] ss:$12 sps:$4 sm:$0xff]  }
 0x2e2   :  { %6350 = vmatpush3.bf16.msra.mxu1 %v7318_v30  ;;  %v3341_v14 = vadd.f32 %v6282_v9, %v3300_v59  ;;  %v7363_v30 = vld [vmem:[#allocation7 + $0x110] ss:$12 sps:$4 sm:$0xff]   ;;  %v7389_v9 = vld [vmem:[#allocation10 + $0x70] sm:$0xff]  }
 0x2e3   :  { %6351 = vmatprep.subr.bf16.mxu1 %v7319_v46  ;;  %v6284_v53 = vpop.f32.mrf.mxu0  ;;  %v7366_v46 = vld [vmem:[#allocation7 + $0x38] ss:$12 sps:$4 sm:$0xff]   ;;  %v7391_v59 = vld [vmem:[#allocation10 + $0x68] sm:$0xff]  }
 0x2e4   :  { %v6285_v60 = vadd.f32 %v6284_v53, %v6283_v2  ;;  %v3382_v37 = vadd.f32 %v6304_v43, %v3341_v14  ;;  %v7379_v2 = vld [vmem:[#allocation7 + $0x410] ss:$12 sps:$4 sm:$0xff]   ;;  %v7386_v53 = vld [vmem:[#allocation7 + $0x308] ss:$12 sps:$4 sm:$0xff]  }
 0x2e5   :  { %v7395_v14 = vld [vmem:[#allocation10 + $0x58] sm:$0xff]  }
 0x2e6   :  { %6352 = vmatpush3.bf16.msra.mxu1 %v7320_v10  ;;  %v3344_v3 = vadd.f32 %v6285_v60, %v3303_v11  ;;  %v7367_v10 = vld [vmem:[#allocation7 + $0xe0] ss:$12 sps:$4 sm:$0xff]   ;;  %v7394_v11 = vld [vmem:[#allocation10 + $0x20] sm:$0xff]  }
 0x2e7   :  { %6353 = vmatprep.subr.bf16.mxu1 %v7324_v34  ;;  %v7369_v34 = vld [vmem:[#allocation7 + $0xc8] ss:$12 sps:$4 sm:$0xff]   ;;  %v7392_v60 = vld [vmem:[#allocation10 + $0x28] sm:$0xff]   ;;  %v7396_v43 = vld [vmem:[#allocation10 + $0x18] sm:$0xff]  }
 0x2ea   :  { %6354 = vmatpush3.bf16.msra.mxu1 %v7325_v39  ;;  %v7370_v39 = vld [vmem:[#allocation7 + $0x8] ss:$12 sps:$4 sm:$0xff]  }
 0x2eb   :  { %6470 = vmatprep.subr.bf16.mxu1 %v7726_v31 }
 0x2ed   :  { %4833 = vmatmul.mubr.bf16.vlgmr.msra.gmra.mxu1 %v8048_v51  ;;  %v6305_v51 = vpop.f32.mrf.mxu1 }
 0x2ee   :  { %6471 = vmatpush3.bf16.msra.mxu1 %v7329_v42  ;;  %6486 = vmatprep.mubr.msk.bf16.mxu1 %vm7727_vm0, %v7726_v31  ;;  %v7373_v42 = vld [vmem:[#allocation7 + $0x458] ss:$12 sps:$4 sm:$0xff]  }
 0x2ef   :  { %6472 = vmatprep.subr.bf16.mxu1 %v7726_v31  ;;  %v6306_v25 = vpop.f32.mrf.mxu1 }
 0x2f0   :  { %v6307_v36 = vadd.f32 %v6306_v25, %v6305_v51  ;;  %v7387_v51 = vld [vmem:[#allocation10 + $0x78] sm:$0xff]   ;;  %v7393_v25 = vld [vmem:[#allocation10 + $0x60] sm:$0xff]  }
 0x2f2   :  { %6473 = vmatpush3.bf16.msra.mxu1 %v7333_v47  ;;  %v3385_v38 = vadd.f32 %v6307_v36, %v3344_v3  ;;  %v7377_v47 = vld [vmem:[#allocation7 + $0x428] ss:$12 sps:$4 sm:$0xff]   ;;  %v7400_v36 = vld [vmem:[#allocation10 + $0x8] sm:$0xff]  }
 0x2f3   :  { %6474 = vmatprep.subr.bf16.mxu1 %v7726_v31  ;;  %v7398_v3 = vld [vmem:[#allocation10 + $0x10] sm:$0xff]  }
 0x2f6   :  { %6475 = vmatpush3.bf16.msra.mxu1 %v7337_v50  ;;  %v7381_v50 = vld [vmem:[#allocation7 + $0x3f8] ss:$12 sps:$4 sm:$0xff]  }
 0x2f7   :  { %6476 = vmatprep.subr.bf16.mxu1 %v7726_v31 }
 0x2fa   :  { %6477 = vmatpush3.bf16.msra.mxu1 %v7341_v23  ;;  %v7390_v23 = vld [vmem:[#allocation10 + $0x30] sm:$0xff]  }
 0x2fb   :  { %6478 = vmatprep.subr.bf16.mxu1 %v7726_v31 }
 0x2fd   :  { %v3422_v57 = vpop.f32.mrf.mxu0 }
 0x2fe   :  { %6479 = vmatpush3.bf16.msra.mxu1 %v7345_v15  ;;  %v3423_v5 = vadd.f32 %v3422_v57, %v3382_v37  ;;  %v7397_v15 = vld [vmem:[#allocation10 + $0x50] sm:$0xff]   ;;  %v7401_v57 = vld [vmem:[#allocation10 + $0x40] sm:$0xff]  }
 0x2ff   :  { %v6468_v19 = vpop.f32.mrf.mxu0  ;;  %6480 = vmatprep.subr.bf16.mxu1 %v7726_v31  ;;  %v7402_v37 = vld [vmem:[#allocation10] sm:$0xff]  }
 0x300   :  { %v3435_v1 = vmax.f32 %v3423_v5, 0.0  ;;  %v7404_v19 = vld [vmem:[#allocation10 + $0xb0] sm:$0xff]   ;;  %v7405_v5 = vld [vmem:[#allocation10 + $0xa8] sm:$0xff]  }
 0x301   :  { %v3425_v40 = vpop.f32.mrf.mxu0 }
 0x302   :  { %v3426_v54 = vadd.f32 %v3425_v40, %v3385_v38  ;;  %6481 = vmatpush3.bf16.msra.mxu1 %v7349_v4  ;;  %v7403_v4 = vld [vmem:[#allocation10 + $0xb8] sm:$0xff]   ;;  %v7406_v38 = vld [vmem:[#allocation10 + $0xa0] sm:$0xff]  }
 0x303   :  { %v6469_v0 = vpop.f32.mrf.mxu0  ;;  %6482 = vmatprep.subr.bf16.mxu1 %v7726_v31  ;;  %v7407_v40 = vld [vmem:[#allocation10 + $0x98] sm:$0xff]  }
 0x304   :  { %v3442_v16 = vmax.f32 %v3426_v54, 0.0  ;;  %v7408_v54 = vld [vmem:[#allocation10 + $0x90] sm:$0xff]  }
 0x306   :  { %v3449_v63 = vpack.c.bf16 %v3442_v16, %v3435_v1  ;;  %6483 = vmatpush3.bf16.msra.mxu1 %v7353_v6  ;;  %v7409_v6 = vld [vmem:[#allocation10 + $0x88] sm:$0xff]   ;;  %v7410_v1 = vld [vmem:[#allocation10 + $0x80] sm:$0xff]  }
 0x307   :  { %6484 = vmatprep.subr.bf16.mxu1 %v7726_v31 }
 0x308   :  { %4749 = vmatmul.mubr.bf16.vlgmr.msra.gmra.mxu0 %v3449_v63 }
 0x309   :  { %6318 = vmatpush3.bf16.msra.mxu0 %v7355_v20  ;;  %4791 = vmatprep.mubr.bf16.mxu0 %v7999_v52  ;;  %v7364_v52 = vld [vmem:[#allocation7 + $0x50] ss:$12 sps:$4 sm:$0xff]  }
 0x30a   :  { %6485 = vmatpush3.bf16.msra.mxu1 %v7356_v21  ;;  %6319 = vmatprep.subr.bf16.mxu0 %v7357_v49 }
 0x30b   :  { %6490 = vmatprep.subr.bf16.mxu1 %v7726_v31 }
 0x30d   :  { %6320 = vmatpush3.bf16.msra.mxu0 %v7358_v26  ;;  %6487 = vmatmul.mubr.bf16.vlgmr.msra.gmra.mxu1 %v3449_v63 }
 0x30e   :  { %6321 = vmatprep.subr.bf16.mxu0 %v7359_v27  ;;  %6506 = vmatprep.mubr.msk.bf16.mxu1 %vm7727_vm0, %v7726_v31 }
 0x30f   :  { %6491 = vmatpush3.bf16.msra.mxu1 %v7403_v4 }
 0x310   :  { %6492 = vmatprep.subr.bf16.mxu1 %v7726_v31 }
 0x311   :  { %6322 = vmatpush3.bf16.msra.mxu0 %v7360_v61 }
 0x312   :  { %6323 = vmatprep.subr.bf16.mxu0 %v7361_v28 }
 0x313   :  { %6493 = vmatpush3.bf16.msra.mxu1 %v7404_v19 }
 0x314   :  { %6494 = vmatprep.subr.bf16.mxu1 %v7726_v31 }
 0x315   :  { %6324 = vmatpush3.bf16.msra.mxu0 %v7362_v29 }
 0x316   :  { %6325 = vmatprep.subr.bf16.mxu0 %v7363_v30 }
 0x317   :  { %6495 = vmatpush3.bf16.msra.mxu1 %v7405_v5 }
 0x318   :  { %6496 = vmatprep.subr.bf16.mxu1 %v7726_v31 }
 0x319   :  { %6326 = vmatpush3.bf16.msra.mxu0 %v7364_v52 }
 0x31a   :  { %6327 = vmatprep.subr.bf16.mxu0 %v7365_v32 }
 0x31b   :  { %6497 = vmatpush3.bf16.msra.mxu1 %v7406_v38 }
 0x31c   :  { %6498 = vmatprep.subr.bf16.mxu1 %v7726_v31 }
 0x31d   :  { %6328 = vmatpush3.bf16.msra.mxu0 %v7366_v46 }
 0x31e   :  { %6329 = vmatprep.subr.bf16.mxu0 %v7367_v10  ;;  %v4621_v0 = vpop.f32.mrf.mxu1 }
 0x31f   :  { %6499 = vmatpush3.bf16.msra.mxu1 %v7407_v40 }
 0x320   :  { %6500 = vmatprep.subr.bf16.mxu1 %v7726_v31  ;;  %v4623_v16 = vpop.f32.mrf.mxu1 }
 0x321   :  { %6330 = vmatpush3.bf16.msra.mxu0 %v7368_v33  ;;  %v3674_v33 = vld [vmem:[#allocation8] sm:$0x7] }
 0x322   :  { %6331 = vmatprep.subr.bf16.mxu0 %v7369_v34  ;;  %v4625_v20 = vpop.f32.mrf.mxu1  ;;  %v3687_v19 = vrot.slane %v3674_v33, %v672_v18 }
 0x323   :  { %6501 = vmatpush3.bf16.msra.mxu1 %v7408_v54 }
 0x324   :  { %6502 = vmatprep.subr.bf16.mxu1 %v7726_v31  ;;  %v4627_v63 = vpop.f32.mrf.mxu1 }
 0x325   :  { %6332 = vmatpush3.bf16.msra.mxu0 %v7370_v39  ;;  %v3683_v39 = vrot.slane %v3674_v33, %v668_v35 }
 0x326   :  { %6361 = vmatprep.subr.bf16.mxu0 %v7371_v13  ;;  %v3679_v13 = vrot.slane %v3674_v33, %v664_v24  ;;  %v7415_v33 = vld [vmem:[#allocation14 + $0x30] sm:$0xff]  }
 0x327   :  { %6503 = vmatpush3.bf16.msra.mxu1 %v7409_v6 }
 0x328   :  { %4792 = vmatmul.mubr.bf16.vlgmr.msra.gmra.mxu0 %v7973_v62  ;;  %v7382_v62 = vld [vmem:[#allocation7 + $0x338] ss:$12 sps:$4 sm:$0xff]   ;;  %6504 = vmatprep.subr.bf16.mxu1 %v7726_v31 }
 0x329   :  { %6362 = vmatpush3.bf16.msra.mxu0 %v7372_v41  ;;  %4873 = vmatprep.mubr.bf16.mxu0 %v8056_v8  ;;  %v7384_v8 = vld [vmem:[#allocation7 + $0x320] ss:$12 sps:$4 sm:$0xff]  }
 0x32a   :  { %6363 = vmatprep.subr.bf16.mxu0 %v7373_v42  ;;  %v4624_v42 = vadd.f32 %v4623_v16, %v3683_v39 }
 0x32b   :  { %6505 = vmatpush3.bf16.msra.mxu1 %v7410_v1 }
 0x32c   :  { %6530 = vmatprep.subr.bf16.mxu1 %v7726_v31 }
 0x32d   :  { %6364 = vmatpush3.bf16.msra.mxu0 %v7374_v44  ;;  %v4626_v44 = vadd.f32 %v4625_v20, %v3679_v13 }
 0x32e   :  { %6365 = vmatprep.subr.bf16.mxu0 %v7375_v7  ;;  %v4622_v7 = vadd.f32 %v4621_v0, %v3679_v13  ;;  %v7419_v13 = vld [vmem:[#allocation14 + $0x20] sm:$0xff]  }
 0x331   :  { %6366 = vmatpush3.bf16.msra.mxu0 %v7376_v45 }
 0x332   :  { %6367 = vmatprep.subr.bf16.mxu0 %v7377_v47  ;;  %v4628_v47 = vadd.f32 %v4627_v63, %v3683_v39  ;;  %v7416_v39 = vld [vmem:[#allocation13 + $0x20] sm:$0xff]  }
 0x335   :  { %6368 = vmatpush3.bf16.msra.mxu0 %v7378_v56 }
 0x336   :  { %6369 = vmatprep.subr.bf16.mxu0 %v7379_v2 }
 0x339   :  { %6370 = vmatpush3.bf16.msra.mxu0 %v7380_v48 }
 0x33a   :  { %6371 = vmatprep.subr.bf16.mxu0 %v7381_v50 }
 0x33d   :  { %6372 = vmatpush3.bf16.msra.mxu0 %v7382_v62  ;;  %v4664_v46 = vpop.f32.mrf.mxu0 }
 0x33e   :  { %6373 = vmatprep.subr.bf16.mxu0 %v7383_v58  ;;  %v4665_v48 = vadd.f32 %v4664_v46, %v4622_v7  ;;  %v7411_v46 = vld [vmem:[#allocation13 + $0x38] sm:$0xff]   ;;  %v7422_v7 = vld [vmem:[#allocation13 + $0x8] sm:$0xff]  }
 0x33f   :  { %v4666_v10 = vpop.f32.mrf.mxu0 }
 0x340   :  { %v4667_v56 = vadd.f32 %v4666_v10, %v4624_v42  ;;  %v7413_v10 = vld [vmem:[#allocation14 + $0x38] sm:$0xff]  }
 0x341   :  { %6374 = vmatpush3.bf16.msra.mxu0 %v7384_v8  ;;  %v4668_v34 = vpop.f32.mrf.mxu0  ;;  %v7421_v42 = vld [vmem:[#allocation14 + $0x18] sm:$0xff]  }
 0x342   :  { %6375 = vmatprep.subr.bf16.mxu0 %v7385_v22  ;;  %v4669_v2 = vadd.f32 %v4668_v34, %v4626_v44  ;;  %v7417_v34 = vld [vmem:[#allocation14 + $0x28] sm:$0xff]   ;;  %v7420_v44 = vld [vmem:[#allocation13 + $0x10] sm:$0xff]  }
 0x343   :  { %v4670_v41 = vpop.f32.mrf.mxu0 }
 0x344   :  { %v4671_v62 = vadd.f32 %v4670_v41, %v4628_v47  ;;  %v7418_v41 = vld [vmem:[#allocation13 + $0x18] sm:$0xff]   ;;  %v7424_v47 = vld [vmem:[#allocation13] sm:$0xff]  }
 0x345   :  { %6376 = vmatpush3.bf16.msra.mxu0 %v7386_v53 }
 0x346   :  { %6392 = vmatprep.subr.bf16.mxu0 %v7387_v51 }
 0x348   :  { %4874 = vmatmul.mubr.bf16.vlgmr.msra.gmra.mxu0 %v8058_v17  ;;  %v7399_v17 = vld [vmem:[#allocation10 + $0x48] sm:$0xff]  }
 0x349   :  { %6393 = vmatpush3.bf16.msra.mxu0 %v7388_v55 }
 0x34a   :  { %6394 = vmatprep.subr.bf16.mxu0 %v7389_v9 }
 0x34d   :  { %6395 = vmatpush3.bf16.msra.mxu0 %v7390_v23 }
 0x34e   :  { %6396 = vmatprep.subr.bf16.mxu0 %v7391_v59 }
 0x351   :  { %6397 = vmatpush3.bf16.msra.mxu0 %v7392_v60 }
 0x352   :  { %6398 = vmatprep.subr.bf16.mxu0 %v7393_v25 }
 0x355   :  { %6399 = vmatpush3.bf16.msra.mxu0 %v7394_v11 }
 0x356   :  { %6400 = vmatprep.subr.bf16.mxu0 %v7395_v14 }
 0x359   :  { %6401 = vmatpush3.bf16.msra.mxu0 %v7396_v43 }
 0x35a   :  { %6402 = vmatprep.subr.bf16.mxu0 %v7397_v15 }
 0x35d   :  { %6403 = vmatpush3.bf16.msra.mxu0 %v7398_v3 }
 0x35e   :  { %6404 = vmatprep.subr.bf16.mxu0 %v7399_v17 }
 0x361   :  { %6405 = vmatpush3.bf16.msra.mxu0 %v7400_v36 }
 0x362   :  { %6406 = vmatprep.subr.bf16.mxu0 %v7401_v57 }
 0x365   :  { %6407 = vmatpush3.bf16.msra.mxu0 %v7402_v37 }
 0x366   :  { %6510 = vmatprep.subr.bf16.mxu0 %v7726_v31 }
 0x38d   :  { %v4707_v21 = vpop.f32.mrf.mxu1 }
 0x38e   :  { %v4708_v22 = vadd.f32 %v4707_v21, %v4665_v48  ;;  %v7427_v48 = vld [vmem:[#allocation14] sm:$0xff]  }
 0x38f   :  { %v4709_v49 = vpop.f32.mrf.mxu1 }
 0x390   :  { %v4710_v58 = vadd.f32 %v4709_v49, %v4667_v56  ;;  %v7425_v56 = vld [vmem:[#allocation14 + $0x8] sm:$0xff]  }
 0x391   :  { %v4711_v26 = vpop.f32.mrf.mxu1 }
 0x392   :  { %v4712_v8 = vadd.f32 %v4711_v26, %v4669_v2  ;;  %v7426_v2 = vld [vmem:[%s8148_s7] sm:$0xff]  }
 0x393   :  { %v4713_v27 = vpop.f32.mrf.mxu1 }
 0x394   :  { %v4714_v51 = vadd.f32 %v4713_v27, %v4671_v62 }
 0x3ad   :  { %v6355_v61 = vpop.f32.mrf.mxu1 }
 0x3af   :  { %v6356_v28 = vpop.f32.mrf.mxu1 }
 0x3b0   :  { %v6357_v29 = vadd.f32 %v6356_v28, %v6355_v61 }
 0x3b1   :  { %v6358_v30 = vpop.f32.mrf.mxu1 }
 0x3b3   :  { %v6359_v52 = vpop.f32.mrf.mxu1 }
 0x3b4   :  { %v6360_v32 = vadd.f32 %v6359_v52, %v6358_v30 }
 0x3c8   :  { %v4750_v45 = vpop.f32.mrf.mxu0 }
 0x3c9   :  { %v4751_v24 = vadd.f32 %v4750_v45, %v4708_v22  ;;  %v7423_v45 = vld [vmem:[#allocation14 + $0x10] sm:$0xff]  }
 0x3ca   :  { %v4752_v50 = vpop.f32.mrf.mxu0 }
 0x3cb   :  { %v4753_v35 = vadd.f32 %v4752_v50, %v4710_v58  ;;  %v4923_v15 = vmax.f32 %v4751_v24, 0.0 }
 0x3cc   :  { %v4754_v53 = vpop.f32.mrf.mxu0 }
 0x3cd   :  { %v4755_v55 = vadd.f32 %v4754_v53, %v4712_v8  ;;  %v4916_v9 = vpop.f32.mrf.mxu1  ;;  %v4924_v11 = vmax.f32 %v4753_v35, 0.0  ;;  %v6186_v53 = vld [vmem:[#allocation11] ss:$0 sm:$0xff] }
 0x3ce   :  { %v4756_v23 = vpop.f32.mrf.mxu0 }
 0x3cf   :  { %v4757_v59 = vadd.f32 %v4756_v23, %v4714_v51  ;;  %v6488_v60 = vpop.f32.mrf.mxu1  ;;  %v4926_v25 = vmax.f32 %v4755_v55, 0.0 }
 0x3d1   :  { %v4927_v14 = vmax.f32 %v4757_v59, 0.0  ;;  %v4919_v43 = vpop.f32.mrf.mxu1  ;;  %v4929_v36 = vpack.c.bf16 %v4926_v25, %v4923_v15 }
 0x3d3   :  { %v4930_v3 = vpack.c.bf16 %v4927_v14, %v4924_v11  ;;  %v6489_v17 = vpop.f32.mrf.mxu1 }
 0x3d4   :  { %v7430_v17 = vld [vmem:[#allocation17 + $0x28] sm:$0xff]  }
 0x3d5   :  { %5163 = vmatprep.mubr.bf16.mxu0 %v4930_v3  ;;  %v7429_v3 = vld [vmem:[#allocation17 + $0x30] sm:$0xff]  }
 0x3d6   :  { %5164 = vmatmul.mubr.bf16.vlgmr.msra.gmra.mxu0 %v4929_v36  ;;  %v7431_v36 = vld [vmem:[#allocation17 + $0x20] sm:$0xff]  }
 0x3d7   :  { %6526 = vmatprep.mubr.msk.bf16.mxu0 %vm7727_vm0, %v7726_v31  ;;  %6511 = vmatpush3.bf16.msra.mxu0 %v7413_v10 }
 0x3d8   :  { %6512 = vmatprep.subr.bf16.mxu0 %v7726_v31 }
 0x3db   :  { %6513 = vmatpush3.bf16.msra.mxu0 %v7415_v33 }
 0x3dc   :  { %6514 = vmatprep.subr.bf16.mxu0 %v7726_v31 }
 0x3df   :  { %6515 = vmatpush3.bf16.msra.mxu0 %v7417_v34 }
 0x3e0   :  { %6516 = vmatprep.subr.bf16.mxu0 %v7726_v31 }
 0x3e3   :  { %6517 = vmatpush3.bf16.msra.mxu0 %v7419_v13  ;;  %v6239_v13 = vld [vmem:[#allocation2] ss:$0 sm:$0xff] }
 0x3e4   :  { %6518 = vmatprep.subr.bf16.mxu0 %v7726_v31 }
 0x3e7   :  { %6519 = vmatpush3.bf16.msra.mxu0 %v7421_v42 }
 0x3e8   :  { %v6333_v57 = vpop.f32.mrf.mxu0  ;;  %6520 = vmatprep.subr.bf16.mxu0 %v7726_v31 }
 0x3ea   :  { %v6334_v37 = vpop.f32.mrf.mxu0 }
 0x3eb   :  { %v6335_v5 = vadd.f32 %v6334_v37, %v6333_v57  ;;  %6521 = vmatpush3.bf16.msra.mxu0 %v7423_v45  ;;  %v7432_v57 = vld [vmem:[#allocation17 + $0x18] sm:$0xff]  }
 0x3ec   :  { %v6336_v4 = vpop.f32.mrf.mxu0  ;;  %6522 = vmatprep.subr.bf16.mxu0 %v7726_v31 }
 0x3ed   :  { %v4794_v40 = vadd.f32 %v6335_v5, %v3687_v19 }
 0x3ee   :  { %v6337_v38 = vpop.f32.mrf.mxu0 }
 0x3ef   :  { %v6338_v54 = vadd.f32 %v6337_v38, %v6336_v4  ;;  %v4835_v16 = vadd.f32 %v6357_v29, %v4794_v40  ;;  %v7412_v29 = vld [vmem:[#allocation13 + $0x30] sm:$0xff]   ;;  %6523 = vmatpush3.bf16.msra.mxu0 %v7425_v56 }
 0x3f0   :  { %6524 = vmatprep.subr.bf16.mxu0 %v7726_v31  ;;  %v7433_v38 = vld [vmem:[#allocation17 + $0x10] sm:$0xff]   ;;  %v7434_v40 = vld [vmem:[#allocation17 + $0x8] sm:$0xff]  }
 0x3f1   :  { %v4797_v1 = vadd.f32 %v6338_v54, %v3687_v19  ;;  %v7435_v54 = vld [vmem:[#allocation17] sm:$0xff]  }
 0x3f3   :  { %v4838_v27 = vadd.f32 %v6360_v32, %v4797_v1  ;;  %v7414_v32 = vld [vmem:[#allocation13 + $0x28] sm:$0xff]   ;;  %6525 = vmatpush3.bf16.msra.mxu0 %v7427_v48  ;;  %v6228_v1 = vld [vmem:[#allocation16] ss:$0 sm:$0xff] }
 0x3f4   :  { %6550 = vmatprep.subr.bf16.mxu0 %v7726_v31 }
 0x408   :  { %v6377_v6 = vpop.f32.mrf.mxu0 }
 0x40a   :  { %v6378_v0 = vpop.f32.mrf.mxu0 }
 0x40b   :  { %v6379_v20 = vadd.f32 %v6378_v0, %v6377_v6 }
 0x40c   :  { %v6380_v63 = vpop.f32.mrf.mxu0 }
 0x40d   :  { %v4876_v21 = vadd.f32 %v6379_v20, %v4835_v16 }
 0x40e   :  { %v6381_v49 = vpop.f32.mrf.mxu0 }
 0x40f   :  { %v4917_v26 = vadd.f32 %v4916_v9, %v4876_v21  ;;  %v6382_v61 = vadd.f32 %v6381_v49, %v6380_v63 }
 0x411   :  { %v4879_v28 = vadd.f32 %v6382_v61, %v4838_v27  ;;  %v4925_v52 = vmax.f32 %v4917_v26, 0.0 }
 0x413   :  { %v4920_v30 = vadd.f32 %v4919_v43, %v4879_v28  ;;  %v7428_v43 = vld [vmem:[#allocation17 + $0x38] sm:$0xff]  }
 0x415   :  { %v4928_v12 = vmax.f32 %v4920_v30, 0.0  ;;  %v6229_v30 = vld [vmem:[#allocation19] ss:$0 sm:$0xff] }
 0x417   :  { %v4931_v18 = vpack.c.bf16 %v4928_v12, %v4925_v52 }
 0x419   :  { %6507 = vmatmul.mubr.bf16.vlgmr.msra.gmra.mxu1 %v4931_v18 }
 0x41a   :  { %6546 = vmatprep.mubr.msk.bf16.mxu1 %vm7727_vm0, %v7726_v31  ;;  %6531 = vmatpush3.bf16.msra.mxu1 %v7411_v46 }
 0x41b   :  { %6532 = vmatprep.subr.bf16.mxu1 %v7726_v31 }
 0x41e   :  { %6533 = vmatpush3.bf16.msra.mxu1 %v7412_v29 }
 0x41f   :  { %6534 = vmatprep.subr.bf16.mxu1 %v7726_v31 }
 0x422   :  { %6535 = vmatpush3.bf16.msra.mxu1 %v7414_v32 }
 0x423   :  { %6536 = vmatprep.subr.bf16.mxu1 %v7726_v31 }
 0x426   :  { %6537 = vmatpush3.bf16.msra.mxu1 %v7416_v39 }
 0x427   :  { %6538 = vmatprep.subr.bf16.mxu1 %v7726_v31 }
 0x42a   :  { %6539 = vmatpush3.bf16.msra.mxu1 %v7418_v41 }
 0x42b   :  { %6540 = vmatprep.subr.bf16.mxu1 %v7726_v31 }
 0x42e   :  { %6541 = vmatpush3.bf16.msra.mxu1 %v7420_v44 }
 0x42f   :  { %6542 = vmatprep.subr.bf16.mxu1 %v7726_v31 }
 0x432   :  { %6543 = vmatpush3.bf16.msra.mxu1 %v7422_v7 }
 0x433   :  { %6544 = vmatprep.subr.bf16.mxu1 %v7726_v31 }
 0x436   :  { %6545 = vmatpush3.bf16.msra.mxu1 %v7424_v47 }
 0x439   :  { %6547 = vmatmul.mubr.bf16.vlgmr.msra.gmra.mxu1 %v7426_v2 }
 0x496   :  { %v6408_v50 = vpop.f32.mrf.mxu0 }
 0x498   :  { %v6409_v62 = vpop.f32.mrf.mxu0 }
 0x499   :  { %v6410_v22 = vadd.f32 %v6409_v62, %v6408_v50 }
 0x49a   :  { %v6411_v58 = vpop.f32.mrf.mxu0 }
 0x49b   :  { %v5166_v55 = vadd.f32 %v6410_v22, %v6186_v53 }
 0x49c   :  { %v6412_v8 = vpop.f32.mrf.mxu0 }
 0x49d   :  { %v6413_v51 = vadd.f32 %v6412_v8, %v6411_v58 }
 0x49f   :  { %v5169_v23 = vadd.f32 %v6413_v51, %v6186_v53 }
 0x4d9   :  { %v5206_v35 = vpop.f32.mrf.mxu1 }
 0x4da   :  { %v5207_v24 = vadd.f32 %v5206_v35, %v5166_v55 }
 0x4db   :  { %v6508_v9 = vpop.f32.mrf.mxu1 }
 0x4dc   :  { %v5213_v11 = vmax.f32 %v5207_v24, 0.0 }
 0x4dd   :  { %v5209_v59 = vpop.f32.mrf.mxu1 }
 0x4de   :  { %v5210_v60 = vadd.f32 %v5209_v59, %v5169_v23 }
 0x4df   :  { %v6509_v25 = vpop.f32.mrf.mxu1 }
 0x4e0   :  { %v5214_v14 = vmax.f32 %v5210_v60, 0.0 }
 0x4e2   :  { %v5233_v15 = vpack.c.bf16 %v5214_v14, %v5213_v11 }
 0x4e4   :  { %6527 = vmatmul.mubr.bf16.vlgmr.msra.gmra.mxu0 %v5233_v15 }
 0x4e5   :  { %6551 = vmatpush3.bf16.msra.mxu0 %v7428_v43  ;;  %6566 = vmatprep.mubr.msk.bf16.mxu0 %vm7727_vm0, %v7726_v31 }
 0x4e6   :  { %6552 = vmatprep.subr.bf16.mxu0 %v7726_v31 }
 0x4e9   :  { %6553 = vmatpush3.bf16.msra.mxu0 %v7429_v3 }
 0x4ea   :  { %6554 = vmatprep.subr.bf16.mxu0 %v7726_v31 }
 0x4ed   :  { %6555 = vmatpush3.bf16.msra.mxu0 %v7430_v17 }
 0x4ee   :  { %6556 = vmatprep.subr.bf16.mxu0 %v7726_v31 }
 0x4f1   :  { %6557 = vmatpush3.bf16.msra.mxu0 %v7431_v36 }
 0x4f2   :  { %6558 = vmatprep.subr.bf16.mxu0 %v7726_v31 }
 0x4f5   :  { %6559 = vmatpush3.bf16.msra.mxu0 %v7432_v57 }
 0x4f6   :  { %6560 = vmatprep.subr.bf16.mxu0 %v7726_v31 }
 0x4f9   :  { %v5427_v37 = vpop.f32.mrf.mxu1  ;;  %6561 = vmatpush3.bf16.msra.mxu0 %v7433_v38 }
 0x4fa   :  { %6562 = vmatprep.subr.bf16.mxu0 %v7726_v31 }
 0x4fb   :  { %v6548_v4 = vpop.f32.mrf.mxu1 }
 0x4fd   :  { %v5430_v19 = vpop.f32.mrf.mxu1  ;;  %6563 = vmatpush3.bf16.msra.mxu0 %v7434_v40 }
 0x4fe   :  { %6564 = vmatprep.subr.bf16.mxu0 %v7726_v31  ;;  %v6238_v31 = vld [vmem:[#allocation20] ss:$0 sm:$0xff] }
 0x4ff   :  { %v6549_v5 = vpop.f32.mrf.mxu1 }
 0x501   :  { %6565 = vmatpush3.bf16.msra.mxu0 %v7435_v54 }
 0x5a4   :  { %v5332_v6 = vpop.f32.mrf.mxu0 }
 0x5a5   :  { %v5428_v0 = vadd.f32 %v5427_v37, %v5332_v6 }
 0x5a6   :  { %v6528_v16 = vpop.f32.mrf.mxu0 }
 0x5a7   :  { %v5441_v63 = vadd.f32 %v6228_v1, %v5428_v0 }
 0x5a8   :  { %v5335_v20 = vpop.f32.mrf.mxu0 }
 0x5a9   :  { %v5431_v21 = vadd.f32 %v5430_v19, %v5335_v20  ;;  %v5443_v27 = vmax.f32 %v5441_v63, 0.0 }
 0x5aa   :  { %v6529_v49 = vpop.f32.mrf.mxu0 }
 0x5ab   :  { %v5442_v26 = vadd.f32 %v6228_v1, %v5431_v21 }
 0x5ad   :  { %v5444_v61 = vmax.f32 %v5442_v26, 0.0 }
 0x5af   :  { %v5445_v28 = vpack.c.bf16 %v5444_v61, %v5443_v27 }
 0x5b1   :  { %6567 = vmatmul.mubr.bf16.vlgmr.msra.gmra.mxu0 %v5445_v28 }
 0x671   :  { %v5551_v52 = vpop.f32.mrf.mxu0 }
 0x672   :  { %v5552_v12 = vadd.f32 %v6229_v30, %v5551_v52 }
 0x673   :  { %v6568_v18 = vpop.f32.mrf.mxu0 }
 0x674   :  { %v5558_v46 = vmax.f32 %v5552_v12, 0.0 }
 0x675   :  { %v5554_v10 = vpop.f32.mrf.mxu0 }
 0x676   :  { %5594 = vst [vmem:[%s8156_s15] sm:$0xff] %v5558_v46  ;;  %v5555_v29 = vadd.f32 %v6229_v30, %v5554_v10  ;;  %v5567_v33 = vmul.f32 %v6238_v31, %v5558_v46 }
 0x677   :  { %v6569_v32 = vpop.f32.mrf.mxu0 }
 0x678   :  { %v5559_v34 = vmax.f32 %v5555_v29, 0.0  ;;  %5569 = vadd.xlane.f32.xlu0 %v5567_v33 }
 0x67a   :  { %5595 = vst [vmem:[%s8156_s15 + $0x10] sm:$0xff] %v5559_v34  ;;  %v5568_v39 = vmul.f32 %v6238_v31, %v5559_v34 }
 0x67c   :  { %5571 = vadd.xlane.f32.xlu0 %v5568_v39 }
 0x701   :  { %v5570_v41 = vpop.xlane.xlu0 %5569 }
 0x702   :  { %v5580_v42 = vadd.f32 %v6239_v13, %v5570_v41 }
 0x704   :  { %v6240_v44 = vmul.f32 -1.442695, %v5580_v42 }
 0x705   :  { %v5572_v7 = vpop.xlane.xlu0 %5571 }
 0x706   :  { %7436 = vpow2.f32 %v6240_v44  ;;  %v5581_v45 = vadd.f32 %v6239_v13, %v5572_v7 }
 0x708   :  { %v6241_v47 = vmul.f32 -1.442695, %v5581_v45 }
 0x70a   :  { %7438 = vpow2.f32 %v6241_v47 }
 0x713   :  { %v7437_v56 = vpop.eup %7436 }
 0x714   :  { %v5588_v2 = vadd.f32 1.0, %v7437_v56 }
 0x716   :  { %7440 = vrcp.f32 %v5588_v2 }
 0x717   :  { %v7439_v48 = vpop.eup %7438 }
 0x718   :  { %v5589_v50 = vadd.f32 1.0, %v7439_v48 }
 0x71a   :  { %7442 = vrcp.f32 %v5589_v50 }
 0x723   :  { %v7441_v62 = vpop.eup %7440 }
 0x724   :  { %5598 = vperm.xlu1 %6591, %v7441_v62  }
 0x727   :  { %v7443_v58 = vpop.eup %7442 }
 0x728   :  { %5603 = vperm.xlu1 %6591, %v7443_v58  }
 0x79f   :  { %v5599_v8 = vpop.permute.xlu1 %5598 }
 0x7a0   :  { %5606 = vst [vmem:[%s8156_s15 + $0x8] sm:$0xff] %v5599_v8 }
 0x7a3   :  { %v5604_v22 = vpop.permute.xlu1 %5603 }
 0x7a4   :  { %5607 = vst [vmem:[%s8156_s15 + $0x18] sm:$0xff] %v5604_v22 }
 0x7a5   :  { %5612 = vsyncpa [#allocation4], 1 }
 0x7a6   :  { %5613 = vsyncpa [#allocation6], 1 }
 0x7a7   :  { %5614 = vsyncpa [#allocation9], 1 }
 0x7a8   :  { %5615 = vsyncpa [#allocation12], 1 }
 0x7a9   :  { %5616 = vsyncpa [#allocation15], 1 }
 0x7aa   :  { %5617 = vsyncpa [#allocation18], 1 }
 0x7ab   :  { %5618 = vsyncpa [#allocation21], 1 }

</bundles_post_ra>
